<compile_context>
chip_gen: v7x
topology: tpu7x:2x2x1
jax: 0.10.0
libtpu: 0.0.40
codegen_flags: <defaults>
</compile_context>

<pallas_src>
import math
from functools import partial

import numpy as np
import jax
import jax.numpy as jnp
from jax import lax
from jax.experimental import pallas as pl
from jax.experimental.pallas import tpu as pltpu


LAYER_KEYS = ('ln1_g', 'ln1_b', 'wqkv', 'bqkv', 'wo', 'bo',
              'ln2_g', 'ln2_b', 'w1', 'b1', 'w2', 'b2')


# ----------------------------- in-kernel helpers -----------------------------

def _layernorm(x, g, b, eps=1e-5):
    # PyTorch nn.LayerNorm over the last dim (biased variance, eps=1e-5), f32 stats.
    mu = jnp.mean(x, axis=-1, keepdims=True)
    var = jnp.mean((x - mu) ** 2, axis=-1, keepdims=True)
    return (x - mu) * lax.rsqrt(var + eps) * g + b


def _gelu(x):
    # exact (erf-based) GELU, matching nn.GELU()
    return 0.5 * x * (1.0 + lax.erf(x * (1.0 / math.sqrt(2.0))))


# --------------------------- fused encoder kernel -----------------------------

def fused_encoder_kernel(x_ref, bppm_ref, madd_ref, relpos_ref, wp_ref,
                         ln1g_ref, ln1b_ref, wqkv_ref, bqkv_ref, wo_ref, bo_ref,
                         ln2g_ref, ln2b_ref, w1_ref, b1_ref, w2_ref, b2_ref,
                         woutt_ref, bout_ref,
                         out_ref,
                         x_scr, bias_scr, qkv_scr, o_scr,
                         *, nhead, head_size):
    f32, bf16 = jnp.float32, jnp.bfloat16
    H, hs = nhead, head_size
    L, D = x_scr.shape
    layer = pl.program_id(1)
    n_layers = pl.num_programs(1)

    # ---- per-batch-element init: residual stream + additive attention bias ----
    #   bias[h] = bppm * w_pair[h] + (relpos[h] + b_relpos[h] + b_pair[h]) + key_pad(-1e9)
    @pl.when(layer == 0)
    def _init():
        x_scr[...] = x_ref[0]
        bias_scr[...] = (bppm_ref[0][None, :, :] * wp_ref[...]
                         + relpos_ref[...].astype(f32)
                         + madd_ref[0][None, :, :]).astype(bf16)

    x = x_scr[...]                                              # (L, D) f32 residual

    # ---------------- self-attention block (norm_first) ----------------
    h_ln = _layernorm(x, ln1g_ref[0], ln1b_ref[0])
    # Fused QKV projection: one full-width matmul.  The 1/sqrt(hs) scale is pre-folded
    # into the q columns of wqkv / bqkv.
    qkv = jnp.dot(h_ln.astype(bf16), wqkv_ref[0],
                  preferred_element_type=f32) + bqkv_ref[0]      # (L, 3D) f32
    qkv_scr[...] = qkv.astype(bf16)

    for h in range(H):                                           # static, small H
        qh = qkv_scr[:, h * hs:(h + 1) * hs]                     # (L, hs) bf16
        kh = qkv_scr[:, D + h * hs:D + (h + 1) * hs]
        vh = qkv_scr[:, 2 * D + h * hs:2 * D + (h + 1) * hs]
        s = lax.dot_general(qh, kh, (((1,), (1,)), ((), ())),
                            preferred_element_type=f32)          # (L, L) f32
        s = s + bias_scr[h].astype(f32)
        s = s - jnp.max(s, axis=-1, keepdims=True)
        p = jnp.exp(s)
        p = p * pl.reciprocal(jnp.sum(p, axis=-1, keepdims=True), approx=True)
        oh = jnp.dot(p.astype(bf16), vh, preferred_element_type=f32)   # (L, hs) f32
        o_scr[:, h * hs:(h + 1) * hs] = oh.astype(bf16)          # head-major columns

    # Fused output projection: one (L, D) @ (D, D) matmul, no per-head reduction.
    x = x + jnp.dot(o_scr[...], wo_ref[0], preferred_element_type=f32) + bo_ref[0]

    # ---------------- feed-forward block (norm_first) -------------------
    h2 = _layernorm(x, ln2g_ref[0], ln2b_ref[0])
    ff = _gelu(jnp.dot(h2.astype(bf16), w1_ref[0],
                       preferred_element_type=f32) + b1_ref[0])
    x = x + jnp.dot(ff.astype(bf16), w2_ref[0],
                    preferred_element_type=f32) + b2_ref[0]

    x_scr[...] = x                                               # carry to next layer

    # --------- fused output head, stored transposed (2, L): L is lane-dense ---------
    @pl.when(layer == n_layers - 1)
    def _finalize():
        y_t = lax.dot_general(woutt_ref[...], x.astype(bf16),
                              (((1,), (1,)), ((), ())),
                              preferred_element_type=f32) + bout_ref[...]   # (2, L)
        out_ref[0] = y_t


def _vmem_limit_bytes():
    # Per-generation scoped-VMEM limit: ~96 MiB on v5e/v6e (128 MiB physical),
    # 48 MiB on v7x (64 MiB physical).  Safe fallback if the query is unavailable.
    try:
        cap = int(pltpu.get_tpu_info().vmem_capacity_bytes)
    except Exception:
        cap = 64 * 1024 * 1024
    return max(32 * 1024 * 1024, min(100 * 1024 * 1024, (cap * 3) // 4))


def fused_encoder(x, bppm, maskadd, relpos, params):
    B, L, D = x.shape
    H = relpos.shape[0]
    stk = params['layers']
    depth = stk['wqkv'].shape[0]
    head_size = D // H

    def batch_spec(a):          # per-batch-element block, constant across the depth axis
        nd = a.ndim
        return pl.BlockSpec((1,) + a.shape[1:],
                            lambda b, l, nd=nd: (b,) + (0,) * (nd - 1))

    def const_spec(a):          # shared across the whole grid (DMA'd once)
        nd = a.ndim
        return pl.BlockSpec(a.shape, lambda b, l, nd=nd: (0,) * nd)

    def layer_spec(a):          # streamed per-layer weights (stacked along depth)
        nd = a.ndim
        return pl.BlockSpec((1,) + a.shape[1:],
                            lambda b, l, nd=nd: (l,) + (0,) * (nd - 1))

    layer_args = [stk[k] for k in LAYER_KEYS]

    in_specs = ([batch_spec(x),                 # embedded tokens      (B, L, D) f32
                 batch_spec(bppm),              # pair matrix          (B, L, L) f32
                 batch_spec(maskadd),           # key-padding additive (B, 1, L) f32
                 const_spec(relpos),            # rel-pos bias table   (H, L, L) bf16
                 const_spec(params['w_pair'])]  # linear_pair weight   (H, 1, 1) f32
                + [layer_spec(a) for a in layer_args]
                + [const_spec(params['w_out_t']), const_spec(params['b_out'])])

    return pl.pallas_call(
        partial(fused_encoder_kernel, nhead=H, head_size=head_size),
        out_shape=jax.ShapeDtypeStruct((B, 2, L), jnp.float32),
        grid=(B, depth),
        in_specs=in_specs,
        out_specs=pl.BlockSpec((1, 2, L), lambda b, l: (b, 0, 0)),
        scratch_shapes=[
            pltpu.VMEM((L, D), jnp.float32),        # residual stream (carried over depth)
            pltpu.VMEM((H, L, L), jnp.bfloat16),    # attention bias (carried over depth)
            pltpu.VMEM((L, 3 * D), jnp.bfloat16),   # fused qkv
            pltpu.VMEM((L, D), jnp.bfloat16),       # concatenated head outputs
        ],
        compiler_params=pltpu.CompilerParams(
            dimension_semantics=("parallel", "arbitrary"),
            vmem_limit_bytes=_vmem_limit_bytes()),
    )(x, bppm, maskadd, relpos, params['w_pair'], *layer_args,
      params['w_out_t'], params['b_out'])


# ------------------------------- full forward ---------------------------------

def rna_model_forward(params, seq, mask, bppm, Lmax=None):
    if Lmax is None:
        # TODO(synk): data-dependent Lmax (mask.sum(-1).max()) forces a device->host sync
        # and a recompile per bucket; prefer passing the bucket length statically.
        Lmax = int(np.asarray(jax.device_get(mask)).sum(-1).max())
    Lpad = max(128, ((Lmax + 127) // 128) * 128)     # lane-dense bucket, bounds recompiles
    pad = Lpad - Lmax

    seq_c = jnp.pad(seq[:, :Lmax], ((0, 0), (0, pad)))
    mask_c = jnp.pad(mask[:, :Lmax], ((0, 0), (0, pad)), constant_values=False)
    bppm_c = jnp.pad(bppm[:, :Lmax, :Lmax].astype(jnp.float32),
                     ((0, 0), (0, pad), (0, pad)))

    # glue: embedding gather
    x = jnp.take(params['emb'], seq_c, axis=0)                    # (B, Lpad, D) f32

    # glue: rel-pos table via direct gather (no one-hot matmul); linear_pair / linear_relpos
    # biases folded in; stored bf16 (largest shared tensor -> half the DMA / VMEM).
    rk = params['relpos_k']
    res = jnp.arange(Lpad)
    rp = jnp.clip(res[:, None] - res[None, :], -rk, rk) + rk       # (Lpad, Lpad)
    relpos = jnp.take(params['w_relpos'], rp, axis=0)              # (Lpad, Lpad, H)
    relpos = (jnp.transpose(relpos, (2, 0, 1))
              + (params['b_relpos'] + params['b_pair'])[:, None, None]).astype(jnp.bfloat16)

    # key-padding mask as additive float (padded keys, incl. Lmax->Lpad pad, get -1e9)
    maskadd = jnp.where(mask_c, 0.0, -1e9).astype(jnp.float32)[:, None, :]   # (B, 1, Lpad)

    out_t = fused_encoder(x, bppm_c, maskadd, relpos, params)      # (B, 2, Lpad)
    return jnp.transpose(out_t, (0, 2, 1))[:, :Lmax, :]            # (B, Lmax, 2)


# ------------------------------- parameter init --------------------------------

def init_params(key, dim=64, depth=2, head_size=32, relpos_k=32):
    nhead = dim // head_size
    num_bins = 2 * relpos_k + 1
    keys = jax.random.split(key, 8 + depth)

    def w(k, shape, scale=0.02):
        return (scale * jax.random.normal(k, shape)).astype(jnp.float32)

    params = {
        'emb': w(keys[0], (4, dim)),
        'w_pair': w(keys[1], (nhead, 1, 1)),            # linear_pair.weight -> (H,1,1)
        'b_pair': w(keys[2], (nhead,)),
        'b_relpos': w(keys[4], (nhead,)),
        'w_relpos': w(keys[3], (num_bins, nhead)),      # linear_relpos.weight.T (in, out)
        'w_out_t': w(keys[5], (2, dim)).astype(jnp.bfloat16),   # proj_out.weight (out, in)
        'b_out': w(keys[6], (2, 1)),
        'relpos_k': relpos_k,
    }

    scale = 1.0 / math.sqrt(head_size)                  # softmax scale folded into Q
    layers = {k: [] for k in LAYER_KEYS}
    for d in range(depth):
        lk = jax.random.split(keys[8 + d], 12)
        # self_attn.in_proj_weight.T == (D, 3D): [q | k | v] blocks, head-major columns.
        wq = w(lk[0], (dim, dim)) * scale
        wk = w(lk[1], (dim, dim))
        wv = w(lk[2], (dim, dim))
        bq = w(lk[3], (dim,)) * scale
        bk = w(lk[4], (dim,))
        bv = w(lk[5], (dim,))
        layers['ln1_g'].append(jnp.ones((1, dim), jnp.float32))
        layers['ln1_b'].append(jnp.zeros((1, dim), jnp.float32))
        layers['wqkv'].append(jnp.concatenate([wq, wk, wv], axis=1).astype(jnp.bfloat16))
        layers['bqkv'].append(jnp.concatenate([bq, bk, bv]).reshape(1, 3 * dim))
        layers['wo'].append(w(lk[6], (dim, dim)).astype(jnp.bfloat16))   # out_proj.weight.T
        layers['bo'].append(jnp.zeros((1, dim), jnp.float32))
        layers['ln2_g'].append(jnp.ones((1, dim), jnp.float32))
        layers['ln2_b'].append(jnp.zeros((1, dim), jnp.float32))
        layers['w1'].append(w(lk[7], (dim, 4 * dim)).astype(jnp.bfloat16))  # linear1.weight.T
        layers['b1'].append(w(lk[8], (1, 4 * dim)))
        layers['w2'].append(w(lk[9], (4 * dim, dim)).astype(jnp.bfloat16))  # linear2.weight.T
        layers['b2'].append(jnp.zeros((1, dim), jnp.float32))

    params['layers'] = {k: jnp.stack(v, axis=0) for k, v in layers.items()}
    return params


# ----------------------------------- main --------------------------------------

if __name__ == "__main__":
    key = jax.random.PRNGKey(0)
    dim, depth, head_size = 64, 2, 32     # small config consistent with the module's knobs
    B, L = 2, 16                          # even B keeps both v7x TensorCores busy

    pkey, skey, bkey = jax.random.split(key, 3)
    params = init_params(pkey, dim=dim, depth=depth, head_size=head_size)

    seq = jax.random.randint(skey, (B, L), 0, 4, dtype=jnp.int32)
    mask = jnp.ones((B, L), dtype=bool)
    bppm_raw = jax.random.uniform(bkey, (B, L, L), dtype=jnp.float32)
    bppm = 0.5 * (bppm_raw + jnp.swapaxes(bppm_raw, 1, 2))   # symmetric, like a real bppm

    y = rna_model_forward(params, seq, mask, bppm, Lmax=L)   # Lmax passed statically
    jax.block_until_ready(y)
    assert y.shape == (B, L, 2) and y.dtype == jnp.float32
    assert bool(jnp.all(jnp.isfinite(y)))
    print("KERNEL_OK")
</pallas_src>

<mosaic_0001>
module attributes {stable_mosaic.version = 11 : i64} {
  func.func @fused_encoder_kernel(%arg0: i32, %arg1: i32, %arg2: memref<1x128x64xf32, #tpu.memory_space<vmem>>, %arg3: memref<1x128x128xf32, #tpu.memory_space<vmem>>, %arg4: memref<1x1x128xf32, #tpu.memory_space<vmem>>, %arg5: memref<2x128x128xbf16, #tpu.memory_space<vmem>>, %arg6: memref<2x1x1xf32, #tpu.memory_space<vmem>>, %arg7: memref<1x1x64xf32, #tpu.memory_space<vmem>>, %arg8: memref<1x1x64xf32, #tpu.memory_space<vmem>>, %arg9: memref<1x64x192xbf16, #tpu.memory_space<vmem>>, %arg10: memref<1x1x192xf32, #tpu.memory_space<vmem>>, %arg11: memref<1x64x64xbf16, #tpu.memory_space<vmem>>, %arg12: memref<1x1x64xf32, #tpu.memory_space<vmem>>, %arg13: memref<1x1x64xf32, #tpu.memory_space<vmem>>, %arg14: memref<1x1x64xf32, #tpu.memory_space<vmem>>, %arg15: memref<1x64x256xbf16, #tpu.memory_space<vmem>>, %arg16: memref<1x1x256xf32, #tpu.memory_space<vmem>>, %arg17: memref<1x256x64xbf16, #tpu.memory_space<vmem>>, %arg18: memref<1x1x64xf32, #tpu.memory_space<vmem>>, %arg19: memref<2x64xbf16, #tpu.memory_space<vmem>>, %arg20: memref<2x1xf32, #tpu.memory_space<vmem>>, %arg21: memref<1x2x128xf32, #tpu.memory_space<vmem>>, %arg22: memref<128x64xf32, #tpu.memory_space<vmem>>, %arg23: memref<2x128x128xbf16, #tpu.memory_space<vmem>>, %arg24: memref<128x192xbf16, #tpu.memory_space<vmem>>, %arg25: memref<128x64xbf16, #tpu.memory_space<vmem>>) attributes {dimension_semantics = [#tpu.dimension_semantics<parallel>, #tpu.dimension_semantics<arbitrary>], iteration_bounds = array<i64: 2, 2>, scalar_prefetch = 0 : i64, scratch_operands = 4 : i64, tpu.core_type = #tpu.core_type<tc>, window_params = [{transform_indices = @transform_0, window_bounds = array<i64: 1, 128, 64>}, {transform_indices = @transform_1, window_bounds = array<i64: 1, 128, 128>}, {transform_indices = @transform_2, window_bounds = array<i64: 1, 1, 128>}, {pipeline_mode = #tpu.pipeline_mode<synchronous>, transform_indices = @transform_3, window_bounds = array<i64: 2, 128, 128>}, {pipeline_mode = #tpu.pipeline_mode<synchronous>, transform_indices = @transform_4, window_bounds = array<i64: 2, 1, 1>}, {transform_indices = @transform_5, window_bounds = array<i64: 1, 1, 64>}, {transform_indices = @transform_6, window_bounds = array<i64: 1, 1, 64>}, {transform_indices = @transform_7, window_bounds = array<i64: 1, 64, 192>}, {transform_indices = @transform_8, window_bounds = array<i64: 1, 1, 192>}, {transform_indices = @transform_9, window_bounds = array<i64: 1, 64, 64>}, {transform_indices = @transform_10, window_bounds = array<i64: 1, 1, 64>}, {transform_indices = @transform_11, window_bounds = array<i64: 1, 1, 64>}, {transform_indices = @transform_12, window_bounds = array<i64: 1, 1, 64>}, {transform_indices = @transform_13, window_bounds = array<i64: 1, 64, 256>}, {transform_indices = @transform_14, window_bounds = array<i64: 1, 1, 256>}, {transform_indices = @transform_15, window_bounds = array<i64: 1, 256, 64>}, {transform_indices = @transform_16, window_bounds = array<i64: 1, 1, 64>}, {pipeline_mode = #tpu.pipeline_mode<synchronous>, transform_indices = @transform_17, window_bounds = array<i64: 2, 64>}, {pipeline_mode = #tpu.pipeline_mode<synchronous>, transform_indices = @transform_18, window_bounds = array<i64: 2, 1>}, {transform_indices = @transform_19, window_bounds = array<i64: 1, 2, 128>}]} {
    %c0_i32 = arith.constant 0 : i32
    %0 = arith.cmpi eq, %arg1, %c0_i32 : i32
    %1 = arith.extui %0 : i1 to i32
    %c0_i32_0 = arith.constant 0 : i32
    %2 = arith.cmpi ne, %1, %c0_i32_0 : i32
    scf.if %2 {
      %c0_85 = arith.constant 0 : index
      %c0_86 = arith.constant 0 : index
      %c0_87 = arith.constant 0 : index
      %148 = vector.load %arg2[%c0_85, %c0_86, %c0_87] : memref<1x128x64xf32, #tpu.memory_space<vmem>>, vector<1x128x64xf32>
      %149 = vector.shape_cast %148 : vector<1x128x64xf32> to vector<128x64xf32>
      %c0_88 = arith.constant 0 : index
      %c0_89 = arith.constant 0 : index
      %150 = vector.load %arg22[%c0_88, %c0_89] : memref<128x64xf32, #tpu.memory_space<vmem>>, vector<128x64xf32>
      tpu.vector_store %arg22[%c0_88, %c0_89], %149 {strides = array<i32>} : memref<128x64xf32, #tpu.memory_space<vmem>>, vector<128x64xf32>,
      %c0_90 = arith.constant 0 : index
      %c0_91 = arith.constant 0 : index
      %c0_92 = arith.constant 0 : index
      %151 = vector.load %arg3[%c0_90, %c0_91, %c0_92] : memref<1x128x128xf32, #tpu.memory_space<vmem>>, vector<1x128x128xf32>
      %152 = vector.shape_cast %151 : vector<1x128x128xf32> to vector<128x128xf32>
      %153 = vector.shape_cast %152 : vector<128x128xf32> to vector<1x128x128xf32>
      %c0_93 = arith.constant 0 : index
      %c0_94 = arith.constant 0 : index
      %c0_95 = arith.constant 0 : index
      %154 = vector.load %arg6[%c0_93, %c0_94, %c0_95] : memref<2x1x1xf32, #tpu.memory_space<vmem>>, vector<2x1x1xf32>
      %155 = vector.broadcast %153 : vector<1x128x128xf32> to vector<2x128x128xf32>
      %156 = vector.broadcast %154 : vector<2x1x1xf32> to vector<2x128x128xf32>
      %157 = arith.mulf %155, %156 : vector<2x128x128xf32>
      %c0_96 = arith.constant 0 : index
      %c0_97 = arith.constant 0 : index
      %c0_98 = arith.constant 0 : index
      %158 = vector.load %arg5[%c0_96, %c0_97, %c0_98] : memref<2x128x128xbf16, #tpu.memory_space<vmem>>, vector<2x128x128xbf16>
      %159 = arith.extf %158 : vector<2x128x128xbf16> to vector<2x128x128xf32>
      %160 = arith.addf %157, %159 : vector<2x128x128xf32>
      %c0_99 = arith.constant 0 : index
      %c0_100 = arith.constant 0 : index
      %c0_101 = arith.constant 0 : index
      %161 = vector.load %arg4[%c0_99, %c0_100, %c0_101] : memref<1x1x128xf32, #tpu.memory_space<vmem>>, vector<1x1x128xf32>
      %162 = vector.shape_cast %161 : vector<1x1x128xf32> to vector<1x128xf32>
      %163 = vector.shape_cast %162 : vector<1x128xf32> to vector<1x1x128xf32>
      %164 = vector.broadcast %163 : vector<1x1x128xf32> to vector<2x128x128xf32>
      %165 = arith.addf %160, %164 : vector<2x128x128xf32>
      %166 = arith.truncf %165 : vector<2x128x128xf32> to vector<2x128x128xbf16>
      %c0_102 = arith.constant 0 : index
      %c0_103 = arith.constant 0 : index
      %c0_104 = arith.constant 0 : index
      %167 = vector.load %arg23[%c0_102, %c0_103, %c0_104] : memref<2x128x128xbf16, #tpu.memory_space<vmem>>, vector<2x128x128xbf16>
      tpu.vector_store %arg23[%c0_102, %c0_103, %c0_104], %166 {strides = array<i32>} : memref<2x128x128xbf16, #tpu.memory_space<vmem>>, vector<2x128x128xbf16>,
    } else {
    }
    %c0 = arith.constant 0 : index
    %c0_1 = arith.constant 0 : index
    %3 = vector.load %arg22[%c0, %c0_1] : memref<128x64xf32, #tpu.memory_space<vmem>>, vector<128x64xf32>
    %c0_2 = arith.constant 0 : index
    %c0_3 = arith.constant 0 : index
    %c0_4 = arith.constant 0 : index
    %4 = vector.load %arg7[%c0_2, %c0_3, %c0_4] : memref<1x1x64xf32, #tpu.memory_space<vmem>>, vector<1x1x64xf32>
    %5 = vector.shape_cast %4 : vector<1x1x64xf32> to vector<1x64xf32>
    %c0_5 = arith.constant 0 : index
    %c0_6 = arith.constant 0 : index
    %c0_7 = arith.constant 0 : index
    %6 = vector.load %arg8[%c0_5, %c0_6, %c0_7] : memref<1x1x64xf32, #tpu.memory_space<vmem>>, vector<1x1x64xf32>
    %7 = vector.shape_cast %6 : vector<1x1x64xf32> to vector<1x64xf32>
    %cst = arith.constant dense<0.000000e+00> : vector<128xf32>
    %8 = vector.multi_reduction <add>, %3, %cst [1] : vector<128x64xf32> to vector<128xf32>
    %9 = vector.shape_cast %8 : vector<128xf32> to vector<128x1xf32>
    %cst_8 = arith.constant 6.400000e+01 : f32
    %10 = vector.broadcast %cst_8 : f32 to vector<128x1xf32>
    %11 = arith.divf %9, %10 : vector<128x1xf32>
    %12 = vector.broadcast %11 : vector<128x1xf32> to vector<128x64xf32>
    %13 = arith.subf %3, %12 : vector<128x64xf32>
    %14 = arith.mulf %13, %13 : vector<128x64xf32>
    %cst_9 = arith.constant dense<0.000000e+00> : vector<128xf32>
    %15 = vector.multi_reduction <add>, %14, %cst_9 [1] : vector<128x64xf32> to vector<128xf32>
    %16 = vector.shape_cast %15 : vector<128xf32> to vector<128x1xf32>
    %cst_10 = arith.constant 6.400000e+01 : f32
    %17 = vector.broadcast %cst_10 : f32 to vector<128x1xf32>
    %18 = arith.divf %16, %17 : vector<128x1xf32>
    %19 = vector.broadcast %11 : vector<128x1xf32> to vector<128x64xf32>
    %20 = arith.subf %3, %19 : vector<128x64xf32>
    %cst_11 = arith.constant 9.99999974E-6 : f32
    %21 = vector.broadcast %cst_11 : f32 to vector<128x1xf32>
    %22 = arith.addf %18, %21 : vector<128x1xf32>
    %23 = math.rsqrt %22 : vector<128x1xf32>
    %24 = vector.broadcast %23 : vector<128x1xf32> to vector<128x64xf32>
    %25 = arith.mulf %20, %24 : vector<128x64xf32>
    %26 = vector.broadcast %5 : vector<1x64xf32> to vector<128x64xf32>
    %27 = arith.mulf %25, %26 : vector<128x64xf32>
    %28 = vector.broadcast %7 : vector<1x64xf32> to vector<128x64xf32>
    %29 = arith.addf %27, %28 : vector<128x64xf32>
    %30 = arith.truncf %29 : vector<128x64xf32> to vector<128x64xbf16>
    %c0_12 = arith.constant 0 : index
    %c0_13 = arith.constant 0 : index
    %c0_14 = arith.constant 0 : index
    %31 = vector.load %arg9[%c0_12, %c0_13, %c0_14] : memref<1x64x192xbf16, #tpu.memory_space<vmem>>, vector<1x64x192xbf16>
    %32 = vector.shape_cast %31 : vector<1x64x192xbf16> to vector<64x192xbf16>
    %cst_15 = arith.constant dense<0.000000e+00> : vector<128x192xf32>
    %33 = tpu.matmul %30, %32, %cst_15 {dimension_numbers = #tpu.dot_dimension_numbers<[1], [0], [0], [1], [0, 0, 1, 1], [], []>} : vector<128x64xbf16>, vector<64x192xbf16>, vector<128x192xf32> -> vector<128x192xf32>
    %c0_16 = arith.constant 0 : index
    %c0_17 = arith.constant 0 : index
    %c0_18 = arith.constant 0 : index
    %34 = vector.load %arg10[%c0_16, %c0_17, %c0_18] : memref<1x1x192xf32, #tpu.memory_space<vmem>>, vector<1x1x192xf32>
    %35 = vector.shape_cast %34 : vector<1x1x192xf32> to vector<1x192xf32>
    %36 = vector.broadcast %35 : vector<1x192xf32> to vector<128x192xf32>
    %37 = arith.addf %33, %36 : vector<128x192xf32>
    %38 = arith.truncf %37 : vector<128x192xf32> to vector<128x192xbf16>
    %c0_19 = arith.constant 0 : index
    %c0_20 = arith.constant 0 : index
    %39 = vector.load %arg24[%c0_19, %c0_20] : memref<128x192xbf16, #tpu.memory_space<vmem>>, vector<128x192xbf16>
    tpu.vector_store %arg24[%c0_19, %c0_20], %38 {strides = array<i32>} : memref<128x192xbf16, #tpu.memory_space<vmem>>, vector<128x192xbf16>,
    %c0_21 = arith.constant 0 : index
    %c0_22 = arith.constant 0 : index
    %40 = vector.load %arg24[%c0_21, %c0_22] : memref<128x192xbf16, #tpu.memory_space<vmem>>, vector<128x32xbf16>
    %c0_23 = arith.constant 0 : index
    %c64 = arith.constant 64 : index
    %41 = vector.load %arg24[%c0_23, %c64] : memref<128x192xbf16, #tpu.memory_space<vmem>>, vector<128x32xbf16>
    %c0_24 = arith.constant 0 : index
    %c128 = arith.constant 128 : index
    %42 = vector.load %arg24[%c0_24, %c128] : memref<128x192xbf16, #tpu.memory_space<vmem>>, vector<128x32xbf16>
    %cst_25 = arith.constant dense<0.000000e+00> : vector<128x128xf32>
    %43 = tpu.matmul %40, %41, %cst_25 {dimension_numbers = #tpu.dot_dimension_numbers<[1], [1], [0], [0], [0, 0, 1, 0], [], []>} : vector<128x32xbf16>, vector<128x32xbf16>, vector<128x128xf32> -> vector<128x128xf32>
    %c0_26 = arith.constant 0 : index
    %c0_27 = arith.constant 0 : index
    %c0_28 = arith.constant 0 : index
    %44 = vector.load %arg23[%c0_26, %c0_27, %c0_28] : memref<2x128x128xbf16, #tpu.memory_space<vmem>>, vector<1x128x128xbf16>
    %45 = vector.shape_cast %44 : vector<1x128x128xbf16> to vector<128x128xbf16>
    %46 = arith.extf %45 : vector<128x128xbf16> to vector<128x128xf32>
    %47 = arith.addf %43, %46 : vector<128x128xf32>
    %cst_29 = arith.constant dense<0xFF800000> : vector<128xf32>
    %48 = vector.multi_reduction <maximumf>, %47, %cst_29 [1] : vector<128x128xf32> to vector<128xf32>
    %49 = vector.shape_cast %48 : vector<128xf32> to vector<128x1xf32>
    %50 = vector.broadcast %49 : vector<128x1xf32> to vector<128x128xf32>
    %51 = arith.subf %47, %50 : vector<128x128xf32>
    %52 = math.exp %51 : vector<128x128xf32>
    %cst_30 = arith.constant dense<0.000000e+00> : vector<128xf32>
    %53 = vector.multi_reduction <add>, %52, %cst_30 [1] : vector<128x128xf32> to vector<128xf32>
    %54 = vector.shape_cast %53 : vector<128xf32> to vector<128x1xf32>
    %55 = tpu.reciprocal %54 {approx = true} : vector<128x1xf32> -> vector<128x1xf32>
    %56 = vector.broadcast %55 : vector<128x1xf32> to vector<128x128xf32>
    %57 = arith.mulf %52, %56 : vector<128x128xf32>
    %58 = arith.truncf %57 : vector<128x128xf32> to vector<128x128xbf16>
    %cst_31 = arith.constant dense<0.000000e+00> : vector<128x32xf32>
    %59 = tpu.matmul %58, %42, %cst_31 {dimension_numbers = #tpu.dot_dimension_numbers<[1], [0], [0], [1], [0, 0, 1, 1], [], []>} : vector<128x128xbf16>, vector<128x32xbf16>, vector<128x32xf32> -> vector<128x32xf32>
    %60 = arith.truncf %59 : vector<128x32xf32> to vector<128x32xbf16>
    %c0_32 = arith.constant 0 : index
    %c0_33 = arith.constant 0 : index
    %61 = vector.load %arg25[%c0_32, %c0_33] : memref<128x64xbf16, #tpu.memory_space<vmem>>, vector<128x32xbf16>
    tpu.vector_store %arg25[%c0_32, %c0_33], %60 {strides = array<i32>} : memref<128x64xbf16, #tpu.memory_space<vmem>>, vector<128x32xbf16>,
    %c0_34 = arith.constant 0 : index
    %c32 = arith.constant 32 : index
    %62 = vector.load %arg24[%c0_34, %c32] : memref<128x192xbf16, #tpu.memory_space<vmem>>, vector<128x32xbf16>
    %c0_35 = arith.constant 0 : index
    %c96 = arith.constant 96 : index
    %63 = vector.load %arg24[%c0_35, %c96] : memref<128x192xbf16, #tpu.memory_space<vmem>>, vector<128x32xbf16>
    %c0_36 = arith.constant 0 : index
    %c160 = arith.constant 160 : index
    %64 = vector.load %arg24[%c0_36, %c160] : memref<128x192xbf16, #tpu.memory_space<vmem>>, vector<128x32xbf16>
    %cst_37 = arith.constant dense<0.000000e+00> : vector<128x128xf32>
    %65 = tpu.matmul %62, %63, %cst_37 {dimension_numbers = #tpu.dot_dimension_numbers<[1], [1], [0], [0], [0, 0, 1, 0], [], []>} : vector<128x32xbf16>, vector<128x32xbf16>, vector<128x128xf32> -> vector<128x128xf32>
    %c1 = arith.constant 1 : index
    %c0_38 = arith.constant 0 : index
    %c0_39 = arith.constant 0 : index
    %66 = vector.load %arg23[%c1, %c0_38, %c0_39] : memref<2x128x128xbf16, #tpu.memory_space<vmem>>, vector<1x128x128xbf16>
    %67 = vector.shape_cast %66 : vector<1x128x128xbf16> to vector<128x128xbf16>
    %68 = arith.extf %67 : vector<128x128xbf16> to vector<128x128xf32>
    %69 = arith.addf %65, %68 : vector<128x128xf32>
    %cst_40 = arith.constant dense<0xFF800000> : vector<128xf32>
    %70 = vector.multi_reduction <maximumf>, %69, %cst_40 [1] : vector<128x128xf32> to vector<128xf32>
    %71 = vector.shape_cast %70 : vector<128xf32> to vector<128x1xf32>
    %72 = vector.broadcast %71 : vector<128x1xf32> to vector<128x128xf32>
    %73 = arith.subf %69, %72 : vector<128x128xf32>
    %74 = math.exp %73 : vector<128x128xf32>
    %cst_41 = arith.constant dense<0.000000e+00> : vector<128xf32>
    %75 = vector.multi_reduction <add>, %74, %cst_41 [1] : vector<128x128xf32> to vector<128xf32>
    %76 = vector.shape_cast %75 : vector<128xf32> to vector<128x1xf32>
    %77 = tpu.reciprocal %76 {approx = true} : vector<128x1xf32> -> vector<128x1xf32>
    %78 = vector.broadcast %77 : vector<128x1xf32> to vector<128x128xf32>
    %79 = arith.mulf %74, %78 : vector<128x128xf32>
    %80 = arith.truncf %79 : vector<128x128xf32> to vector<128x128xbf16>
    %cst_42 = arith.constant dense<0.000000e+00> : vector<128x32xf32>
    %81 = tpu.matmul %80, %64, %cst_42 {dimension_numbers = #tpu.dot_dimension_numbers<[1], [0], [0], [1], [0, 0, 1, 1], [], []>} : vector<128x128xbf16>, vector<128x32xbf16>, vector<128x32xf32> -> vector<128x32xf32>
    %82 = arith.truncf %81 : vector<128x32xf32> to vector<128x32xbf16>
    %c0_43 = arith.constant 0 : index
    %c32_44 = arith.constant 32 : index
    %83 = vector.load %arg25[%c0_43, %c32_44] : memref<128x64xbf16, #tpu.memory_space<vmem>>, vector<128x32xbf16>
    tpu.vector_store %arg25[%c0_43, %c32_44], %82 {strides = array<i32>} : memref<128x64xbf16, #tpu.memory_space<vmem>>, vector<128x32xbf16>,
    %c0_45 = arith.constant 0 : index
    %c0_46 = arith.constant 0 : index
    %84 = vector.load %arg25[%c0_45, %c0_46] : memref<128x64xbf16, #tpu.memory_space<vmem>>, vector<128x64xbf16>
    %c0_47 = arith.constant 0 : index
    %c0_48 = arith.constant 0 : index
    %c0_49 = arith.constant 0 : index
    %85 = vector.load %arg11[%c0_47, %c0_48, %c0_49] : memref<1x64x64xbf16, #tpu.memory_space<vmem>>, vector<1x64x64xbf16>
    %86 = vector.shape_cast %85 : vector<1x64x64xbf16> to vector<64x64xbf16>
    %cst_50 = arith.constant dense<0.000000e+00> : vector<128x64xf32>
    %87 = tpu.matmul %84, %86, %cst_50 {dimension_numbers = #tpu.dot_dimension_numbers<[1], [0], [0], [1], [0, 0, 1, 1], [], []>} : vector<128x64xbf16>, vector<64x64xbf16>, vector<128x64xf32> -> vector<128x64xf32>
    %88 = arith.addf %3, %87 : vector<128x64xf32>
    %c0_51 = arith.constant 0 : index
    %c0_52 = arith.constant 0 : index
    %c0_53 = arith.constant 0 : index
    %89 = vector.load %arg12[%c0_51, %c0_52, %c0_53] : memref<1x1x64xf32, #tpu.memory_space<vmem>>, vector<1x1x64xf32>
    %90 = vector.shape_cast %89 : vector<1x1x64xf32> to vector<1x64xf32>
    %91 = vector.broadcast %90 : vector<1x64xf32> to vector<128x64xf32>
    %92 = arith.addf %88, %91 : vector<128x64xf32>
    %c0_54 = arith.constant 0 : index
    %c0_55 = arith.constant 0 : index
    %c0_56 = arith.constant 0 : index
    %93 = vector.load %arg13[%c0_54, %c0_55, %c0_56] : memref<1x1x64xf32, #tpu.memory_space<vmem>>, vector<1x1x64xf32>
    %94 = vector.shape_cast %93 : vector<1x1x64xf32> to vector<1x64xf32>
    %c0_57 = arith.constant 0 : index
    %c0_58 = arith.constant 0 : index
    %c0_59 = arith.constant 0 : index
    %95 = vector.load %arg14[%c0_57, %c0_58, %c0_59] : memref<1x1x64xf32, #tpu.memory_space<vmem>>, vector<1x1x64xf32>
    %96 = vector.shape_cast %95 : vector<1x1x64xf32> to vector<1x64xf32>
    %cst_60 = arith.constant dense<0.000000e+00> : vector<128xf32>
    %97 = vector.multi_reduction <add>, %92, %cst_60 [1] : vector<128x64xf32> to vector<128xf32>
    %98 = vector.shape_cast %97 : vector<128xf32> to vector<128x1xf32>
    %cst_61 = arith.constant 6.400000e+01 : f32
    %99 = vector.broadcast %cst_61 : f32 to vector<128x1xf32>
    %100 = arith.divf %98, %99 : vector<128x1xf32>
    %101 = vector.broadcast %100 : vector<128x1xf32> to vector<128x64xf32>
    %102 = arith.subf %92, %101 : vector<128x64xf32>
    %103 = arith.mulf %102, %102 : vector<128x64xf32>
    %cst_62 = arith.constant dense<0.000000e+00> : vector<128xf32>
    %104 = vector.multi_reduction <add>, %103, %cst_62 [1] : vector<128x64xf32> to vector<128xf32>
    %105 = vector.shape_cast %104 : vector<128xf32> to vector<128x1xf32>
    %cst_63 = arith.constant 6.400000e+01 : f32
    %106 = vector.broadcast %cst_63 : f32 to vector<128x1xf32>
    %107 = arith.divf %105, %106 : vector<128x1xf32>
    %108 = vector.broadcast %100 : vector<128x1xf32> to vector<128x64xf32>
    %109 = arith.subf %92, %108 : vector<128x64xf32>
    %cst_64 = arith.constant 9.99999974E-6 : f32
    %110 = vector.broadcast %cst_64 : f32 to vector<128x1xf32>
    %111 = arith.addf %107, %110 : vector<128x1xf32>
    %112 = math.rsqrt %111 : vector<128x1xf32>
    %113 = vector.broadcast %112 : vector<128x1xf32> to vector<128x64xf32>
    %114 = arith.mulf %109, %113 : vector<128x64xf32>
    %115 = vector.broadcast %94 : vector<1x64xf32> to vector<128x64xf32>
    %116 = arith.mulf %114, %115 : vector<128x64xf32>
    %117 = vector.broadcast %96 : vector<1x64xf32> to vector<128x64xf32>
    %118 = arith.addf %116, %117 : vector<128x64xf32>
    %119 = arith.truncf %118 : vector<128x64xf32> to vector<128x64xbf16>
    %c0_65 = arith.constant 0 : index
    %c0_66 = arith.constant 0 : index
    %c0_67 = arith.constant 0 : index
    %120 = vector.load %arg15[%c0_65, %c0_66, %c0_67] : memref<1x64x256xbf16, #tpu.memory_space<vmem>>, vector<1x64x256xbf16>
    %121 = vector.shape_cast %120 : vector<1x64x256xbf16> to vector<64x256xbf16>
    %cst_68 = arith.constant dense<0.000000e+00> : vector<128x256xf32>
    %122 = tpu.matmul %119, %121, %cst_68 {dimension_numbers = #tpu.dot_dimension_numbers<[1], [0], [0], [1], [0, 0, 1, 1], [], []>} : vector<128x64xbf16>, vector<64x256xbf16>, vector<128x256xf32> -> vector<128x256xf32>
    %c0_69 = arith.constant 0 : index
    %c0_70 = arith.constant 0 : index
    %c0_71 = arith.constant 0 : index
    %123 = vector.load %arg16[%c0_69, %c0_70, %c0_71] : memref<1x1x256xf32, #tpu.memory_space<vmem>>, vector<1x1x256xf32>
    %124 = vector.shape_cast %123 : vector<1x1x256xf32> to vector<1x256xf32>
    %125 = vector.broadcast %124 : vector<1x256xf32> to vector<128x256xf32>
    %126 = arith.addf %122, %125 : vector<128x256xf32>
    %cst_72 = arith.constant 5.000000e-01 : f32
    %127 = vector.broadcast %cst_72 : f32 to vector<128x256xf32>
    %128 = arith.mulf %127, %126 : vector<128x256xf32>
    %cst_73 = arith.constant 0.707106769 : f32
    %129 = vector.broadcast %cst_73 : f32 to vector<128x256xf32>
    %130 = arith.mulf %126, %129 : vector<128x256xf32>
    %131 = math.erf %130 : vector<128x256xf32>
    %cst_74 = arith.constant 1.000000e+00 : f32
    %132 = vector.broadcast %cst_74 : f32 to vector<128x256xf32>
    %133 = arith.addf %132, %131 : vector<128x256xf32>
    %134 = arith.mulf %128, %133 : vector<128x256xf32>
    %135 = arith.truncf %134 : vector<128x256xf32> to vector<128x256xbf16>
    %c0_75 = arith.constant 0 : index
    %c0_76 = arith.constant 0 : index
    %c0_77 = arith.constant 0 : index
    %136 = vector.load %arg17[%c0_75, %c0_76, %c0_77] : memref<1x256x64xbf16, #tpu.memory_space<vmem>>, vector<1x256x64xbf16>
    %137 = vector.shape_cast %136 : vector<1x256x64xbf16> to vector<256x64xbf16>
    %cst_78 = arith.constant dense<0.000000e+00> : vector<128x64xf32>
    %138 = tpu.matmul %135, %137, %cst_78 {dimension_numbers = #tpu.dot_dimension_numbers<[1], [0], [0], [1], [0, 0, 1, 1], [], []>} : vector<128x256xbf16>, vector<256x64xbf16>, vector<128x64xf32> -> vector<128x64xf32>
    %139 = arith.addf %92, %138 : vector<128x64xf32>
    %c0_79 = arith.constant 0 : index
    %c0_80 = arith.constant 0 : index
    %c0_81 = arith.constant 0 : index
    %140 = vector.load %arg18[%c0_79, %c0_80, %c0_81] : memref<1x1x64xf32, #tpu.memory_space<vmem>>, vector<1x1x64xf32>
    %141 = vector.shape_cast %140 : vector<1x1x64xf32> to vector<1x64xf32>
    %142 = vector.broadcast %141 : vector<1x64xf32> to vector<128x64xf32>
    %143 = arith.addf %139, %142 : vector<128x64xf32>
    %c0_82 = arith.constant 0 : index
    %c0_83 = arith.constant 0 : index
    %144 = vector.load %arg22[%c0_82, %c0_83] : memref<128x64xf32, #tpu.memory_space<vmem>>, vector<128x64xf32>
    tpu.vector_store %arg22[%c0_82, %c0_83], %143 {strides = array<i32>} : memref<128x64xf32, #tpu.memory_space<vmem>>, vector<128x64xf32>,
    %c1_i32 = arith.constant 1 : i32
    %145 = arith.cmpi eq, %arg1, %c1_i32 : i32
    %146 = arith.extui %145 : i1 to i32
    %c0_i32_84 = arith.constant 0 : i32
    %147 = arith.cmpi ne, %146, %c0_i32_84 : i32
    scf.if %147 {
      %c0_85 = arith.constant 0 : index
      %c0_86 = arith.constant 0 : index
      %148 = vector.load %arg19[%c0_85, %c0_86] : memref<2x64xbf16, #tpu.memory_space<vmem>>, vector<2x64xbf16>
      %149 = arith.truncf %143 : vector<128x64xf32> to vector<128x64xbf16>
      %cst_87 = arith.constant dense<0.000000e+00> : vector<2x128xf32>
      %150 = tpu.matmul %148, %149, %cst_87 {dimension_numbers = #tpu.dot_dimension_numbers<[1], [1], [0], [0], [0, 0, 1, 0], [], []>} : vector<2x64xbf16>, vector<128x64xbf16>, vector<2x128xf32> -> vector<2x128xf32>
      %c0_88 = arith.constant 0 : index
      %c0_89 = arith.constant 0 : index
      %151 = vector.load %arg20[%c0_88, %c0_89] : memref<2x1xf32, #tpu.memory_space<vmem>>, vector<2x1xf32>
      %152 = vector.broadcast %151 : vector<2x1xf32> to vector<2x128xf32>
      %153 = arith.addf %150, %152 : vector<2x128xf32>
      %c0_90 = arith.constant 0 : index
      %c0_91 = arith.constant 0 : index
      %c0_92 = arith.constant 0 : index
      %154 = vector.load %arg21[%c0_90, %c0_91, %c0_92] : memref<1x2x128xf32, #tpu.memory_space<vmem>>, vector<1x2x128xf32>
      %155 = vector.shape_cast %154 : vector<1x2x128xf32> to vector<2x128xf32>
      %156 = vector.shape_cast %153 : vector<2x128xf32> to vector<1x2x128xf32>
      tpu.vector_store %arg21[%c0_90, %c0_91, %c0_92], %156 {strides = array<i32>} : memref<1x2x128xf32, #tpu.memory_space<vmem>>, vector<1x2x128xf32>,
    } else {
    }
    return
  }
  func.func @transform_0(%arg0: i32, %arg1: i32) -> (i32, i32, i32) {
    %c0_i32 = arith.constant 0 : i32
    %c0_i32_0 = arith.constant 0 : i32
    %c0_i32_1 = arith.constant 0 : i32
    return %arg0, %c0_i32, %c0_i32_0 : i32, i32, i32
  }
  func.func @transform_1(%arg0: i32, %arg1: i32) -> (i32, i32, i32) {
    %c0_i32 = arith.constant 0 : i32
    %c0_i32_0 = arith.constant 0 : i32
    %c0_i32_1 = arith.constant 0 : i32
    return %arg0, %c0_i32, %c0_i32_0 : i32, i32, i32
  }
  func.func @transform_2(%arg0: i32, %arg1: i32) -> (i32, i32, i32) {
    %c0_i32 = arith.constant 0 : i32
    %c0_i32_0 = arith.constant 0 : i32
    %c0_i32_1 = arith.constant 0 : i32
    return %arg0, %c0_i32, %c0_i32_0 : i32, i32, i32
  }
  func.func @transform_3(%arg0: i32, %arg1: i32) -> (i32, i32, i32) {
    %c0_i32 = arith.constant 0 : i32
    %c0_i32_0 = arith.constant 0 : i32
    %c0_i32_1 = arith.constant 0 : i32
    %c0_i32_2 = arith.constant 0 : i32
    return %c0_i32, %c0_i32_0, %c0_i32_1 : i32, i32, i32
  }
  func.func @transform_4(%arg0: i32, %arg1: i32) -> (i32, i32, i32) {
    %c0_i32 = arith.constant 0 : i32
    %c0_i32_0 = arith.constant 0 : i32
    %c0_i32_1 = arith.constant 0 : i32
    %c0_i32_2 = arith.constant 0 : i32
    return %c0_i32, %c0_i32_0, %c0_i32_1 : i32, i32, i32
  }
  func.func @transform_5(%arg0: i32, %arg1: i32) -> (i32, i32, i32) {
    %c0_i32 = arith.constant 0 : i32
    %c0_i32_0 = arith.constant 0 : i32
    %c0_i32_1 = arith.constant 0 : i32
    return %arg1, %c0_i32, %c0_i32_0 : i32, i32, i32
  }
  func.func @transform_6(%arg0: i32, %arg1: i32) -> (i32, i32, i32) {
    %c0_i32 = arith.constant 0 : i32
    %c0_i32_0 = arith.constant 0 : i32
    %c0_i32_1 = arith.constant 0 : i32
    return %arg1, %c0_i32, %c0_i32_0 : i32, i32, i32
  }
  func.func @transform_7(%arg0: i32, %arg1: i32) -> (i32, i32, i32) {
    %c0_i32 = arith.constant 0 : i32
    %c0_i32_0 = arith.constant 0 : i32
    %c0_i32_1 = arith.constant 0 : i32
    return %arg1, %c0_i32, %c0_i32_0 : i32, i32, i32
  }
  func.func @transform_8(%arg0: i32, %arg1: i32) -> (i32, i32, i32) {
    %c0_i32 = arith.constant 0 : i32
    %c0_i32_0 = arith.constant 0 : i32
    %c0_i32_1 = arith.constant 0 : i32
    return %arg1, %c0_i32, %c0_i32_0 : i32, i32, i32
  }
  func.func @transform_9(%arg0: i32, %arg1: i32) -> (i32, i32, i32) {
    %c0_i32 = arith.constant 0 : i32
    %c0_i32_0 = arith.constant 0 : i32
    %c0_i32_1 = arith.constant 0 : i32
    return %arg1, %c0_i32, %c0_i32_0 : i32, i32, i32
  }
  func.func @transform_10(%arg0: i32, %arg1: i32) -> (i32, i32, i32) {
    %c0_i32 = arith.constant 0 : i32
    %c0_i32_0 = arith.constant 0 : i32
    %c0_i32_1 = arith.constant 0 : i32
    return %arg1, %c0_i32, %c0_i32_0 : i32, i32, i32
  }
  func.func @transform_11(%arg0: i32, %arg1: i32) -> (i32, i32, i32) {
    %c0_i32 = arith.constant 0 : i32
    %c0_i32_0 = arith.constant 0 : i32
    %c0_i32_1 = arith.constant 0 : i32
    return %arg1, %c0_i32, %c0_i32_0 : i32, i32, i32
  }
  func.func @transform_12(%arg0: i32, %arg1: i32) -> (i32, i32, i32) {
    %c0_i32 = arith.constant 0 : i32
    %c0_i32_0 = arith.constant 0 : i32
    %c0_i32_1 = arith.constant 0 : i32
    return %arg1, %c0_i32, %c0_i32_0 : i32, i32, i32
  }
  func.func @transform_13(%arg0: i32, %arg1: i32) -> (i32, i32, i32) {
    %c0_i32 = arith.constant 0 : i32
    %c0_i32_0 = arith.constant 0 : i32
    %c0_i32_1 = arith.constant 0 : i32
    return %arg1, %c0_i32, %c0_i32_0 : i32, i32, i32
  }
  func.func @transform_14(%arg0: i32, %arg1: i32) -> (i32, i32, i32) {
    %c0_i32 = arith.constant 0 : i32
    %c0_i32_0 = arith.constant 0 : i32
    %c0_i32_1 = arith.constant 0 : i32
    return %arg1, %c0_i32, %c0_i32_0 : i32, i32, i32
  }
  func.func @transform_15(%arg0: i32, %arg1: i32) -> (i32, i32, i32) {
    %c0_i32 = arith.constant 0 : i32
    %c0_i32_0 = arith.constant 0 : i32
    %c0_i32_1 = arith.constant 0 : i32
    return %arg1, %c0_i32, %c0_i32_0 : i32, i32, i32
  }
  func.func @transform_16(%arg0: i32, %arg1: i32) -> (i32, i32, i32) {
    %c0_i32 = arith.constant 0 : i32
    %c0_i32_0 = arith.constant 0 : i32
    %c0_i32_1 = arith.constant 0 : i32
    return %arg1, %c0_i32, %c0_i32_0 : i32, i32, i32
  }
  func.func @transform_17(%arg0: i32, %arg1: i32) -> (i32, i32) {
    %c0_i32 = arith.constant 0 : i32
    %c0_i32_0 = arith.constant 0 : i32
    %c0_i32_1 = arith.constant 0 : i32
    return %c0_i32, %c0_i32_0 : i32, i32
  }
  func.func @transform_18(%arg0: i32, %arg1: i32) -> (i32, i32) {
    %c0_i32 = arith.constant 0 : i32
    %c0_i32_0 = arith.constant 0 : i32
    %c0_i32_1 = arith.constant 0 : i32
    return %c0_i32, %c0_i32_0 : i32, i32
  }
  func.func @transform_19(%arg0: i32, %arg1: i32) -> (i32, i32, i32) {
    %c0_i32 = arith.constant 0 : i32
    %c0_i32_0 = arith.constant 0 : i32
    %c0_i32_1 = arith.constant 0 : i32
    return %arg0, %c0_i32, %c0_i32_0 : i32, i32, i32
  }
}

</mosaic_0001>

<bundles_post_ra>
// kernel: tpu_custom_call.1
= control target key start
LH: loop header
LB: loop body
LE: loop exit
PB: predicated region body
PF: predicated region fallthrough
CT: control target
= control target key end

     0   :  { %s7110_s0 = inlined_call_operand.vmem [shape: f32[2,128,64], index: 0, kind: input, shape index: {}]   ;;  %s7111_s1 = inlined_call_operand.vmem [shape: f32[2,128,128], index: 1, kind: input, shape index: {}]   ;;  %s7112_s2 = inlined_call_operand.vmem [shape: f32[2,1,128], index: 2, kind: input, shape index: {}]   ;;  %s7113_s3 = inlined_call_operand.vmem [shape: bf16[2,128,128], index: 3, kind: input, shape index: {}]   ;;  %s7114_s4 = inlined_call_operand.vmem [shape: f32[2,1,1], index: 4, kind: input, shape index: {}]   ;;  %s7115_s5 = inlined_call_operand.vmem [shape: f32[2,1,64], index: 5, kind: input, shape index: {}]   ;;  %s7116_s6 = inlined_call_operand.vmem [shape: f32[2,1,64], index: 6, kind: input, shape index: {}]   ;;  %s7117_s7 = inlined_call_operand.vmem [shape: bf16[2,64,192], index: 7, kind: input, shape index: {}]   ;;  %s7118_s8 = inlined_call_operand.vmem [shape: f32[2,1,192], index: 8, kind: input, shape index: {}]   ;;  %s7119_s9 = inlined_call_operand.hbm [shape: bf16[2,64,64], index: 9, kind: input, shape index: {}]   ;;  %s7120_s10 = inlined_call_operand.vmem [shape: f32[2,1,64], index: 10, kind: input, shape index: {}]   ;;  %s7121_s11 = inlined_call_operand.vmem [shape: f32[2,1,64], index: 11, kind: input, shape index: {}]   ;;  %s7122_s12 = inlined_call_operand.vmem [shape: f32[2,1,64], index: 12, kind: input, shape index: {}]   ;;  %s7123_s13 = inlined_call_operand.vmem [shape: bf16[2,64,256], index: 13, kind: input, shape index: {}]   ;;  %s7124_s14 = inlined_call_operand.vmem [shape: f32[2,1,256], index: 14, kind: input, shape index: {}]   ;;  %s7125_s15 = inlined_call_operand.vmem [shape: bf16[2,256,64], index: 15, kind: input, shape index: {}]   ;;  %s7126_s16 = inlined_call_operand.vmem [shape: f32[2,1,64], index: 16, kind: input, shape index: {}]   ;;  %s7127_s17 = inlined_call_operand.vmem [shape: bf16[2,64], index: 17, kind: input, shape index: {}]   ;;  %s7128_s18 = inlined_call_operand.vmem [shape: f32[2,1], index: 18, kind: input, shape index: {}]   ;;  %s7129_s19 = inlined_call_operand.hbm [shape: f32[2,2,128], index: 19, kind: output, shape index: {}]  }
   0x1   :  { %7159 = sst [smem:[#allocation33_spill]] %s7110_s0 }
   0x2   :  { %7160 = sst [smem:[#allocation34_spill]] %s7111_s1 }
   0x3   :  { %7161 = sst [smem:[#allocation35_spill]] %s7112_s2 }
   0x4   :  { %7162 = sst [smem:[#allocation36_spill]] %s7113_s3 }
   0x5   :  { %7163 = sst [smem:[#allocation37_spill]] %s7114_s4 }
   0x6   :  { %7164 = sst [smem:[#allocation38_spill]] %s7117_s7 }
   0x7   :  { %7165 = sst [smem:[#allocation39_spill]] %s7118_s8 }
   0x8   :  { %7166 = sst [smem:[#allocation40_spill]] %s7119_s9 }
   0x9   :  { %7167 = sst [smem:[#allocation41_spill]] %s7120_s10 }
   0xa   :  { %7168 = sst [smem:[#allocation42_spill]] %s7123_s13 }
   0xb   :  { %7169 = sst [smem:[#allocation43_spill]] %s7124_s14 }
   0xc   :  { %7170 = sst [smem:[#allocation44_spill]] %s7125_s15 }
   0xd   :  { %7171 = sst [smem:[#allocation45_spill]] %s7126_s16 }
   0xe   :  { %7172 = sst [smem:[#allocation46_spill]] %s7127_s17 }
   0xf   :  { %7173 = sst [smem:[#allocation47_spill]] %s7128_s18 }
  0x10   :  { %7174 = sst [smem:[#allocation48_spill]] %s7129_s19 }
  0x11   :  { %24 = vsyncpa [#allocation7], 0 }
  0x12   :  { %26 = vsyncpa [#allocation7 + $0x1], 0 }
  0x13   :  { %27 = vsyncpa [#allocation8], 0 }
  0x14   :  { %29 = vsyncpa [#allocation8 + $0x1], 0  ;;  %s5370_s0 = smov 0   ;;  %s5372_s30 = smov 0  }
  0x15   :  { %s5374_s20 = smov 0   ;;  %s5376_s21 = smov 0  }
  0x16   :  { %s5378_s1 = smov 0   ;;  %s5380_s22 = smov 0  }
  0x17   :  { %s5382_s2 = smov 0   ;;  %s5384_s23 = smov 0  }
  0x18   :  { %s5386_s24 = smov 0   ;;  %s5388_s25 = smov 0  }
  0x19   :  { %s5390_s3 = smov 0  }
  0x1a LB: > { %7175 = sst [smem:[#allocation12_spill]] %s5216_s0  ;;  %s4122_s26 = sadd.s32 4294967295, %s5256_s3   ;;  %s5256_s3 = sphi %s5390_s3, %s35_s3   ;;  %s5252_s25 = sphi %s5388_s25, %s7284_s25   ;;  %s5248_s24 = sphi %s5386_s24, %s7283_s24   ;;  %s5244_s23 = sphi %s5384_s23, %s7282_s23   ;;  %s5240_s2 = sphi %s5382_s2, %s7281_s2   ;;  %s5236_s22 = sphi %s5380_s22, %s7280_s22   ;;  %s5232_s1 = sphi %s5378_s1, %s7279_s1   ;;  %s5228_s21 = sphi %s5376_s21, %s7278_s21   ;;  %s5224_s20 = sphi %s5374_s20, %s7277_s20   ;;  %s5220_s30 = sphi %s5372_s30, %s7276_s30   ;;  %s5216_s0 = sphi %s5370_s0, %s7275_s0  }
  0x1b   : > { %7176 = sst [smem:[#allocation13_spill]] %s5220_s30  ;;  %s4123_s27 = sadd.s32 4294967294, %s5256_s3  }
  0x1c   : > { %7177 = sst [smem:[#allocation14_spill]] %s5224_s20  ;;  %s44_s28 = sadd.s32 1, %s5248_s24 }
  0x1d   : > { %7178 = sst [smem:[#allocation15_spill]] %s5232_s1  ;;  %s47_s29 = sadd.s32 1, %s5252_s25 }
  0x1e   : > { %7179 = sst [smem:[#allocation16_spill]] %s5236_s22  ;;  %p45_p0 = scmp.ge.s32.totalorder %s44_s28, 2 }
  0x1f   : > { %7180 = sst [smem:[#allocation17_spill]] %s5244_s23  ;;  %s278_s19 = sadd.s32 1, %s5236_s22 }
  0x20   : > { %7181 = sst [smem:[#allocation18_spill]] %s5248_s24  ;;  %p285_p1 = scmp.ne.s32.totalorder %s5236_s22, %s5232_s1 }
  0x21   : > { %7182 = sst [smem:[#allocation19_spill]] %s5252_s25  ;;  %p286_p2 = scmp.eq.s32.totalorder %s5256_s3, 0 }
  0x22   : > { %7183 = sst [smem:[#allocation20_spill]] %s5256_s3  ;;  %s7286_s28 = smov (%p45_p0, %s44_s28), 0 }
  0x23   : > { %7184 = sst [smem:[#allocation21_spill]] %s7286_s28  ;;  %s7288_s29 = smov (!%p45_p0, %s47_s29), %s5252_s25 }
  0x24   : > { %s275_s17 = ssub.s32 %s5248_s24, %s7286_s28  ;;  %p5436_p3 = por %p286_p2, %p285_p1 }
  0x25   : > { %p49_p4 = scmp.ge.s32.totalorder %s7288_s29, 2  ;;  %p276_p5 = scmp.eq.s32.totalorder %s275_s17, 0 }
  0x26   : > { %p291_p6 = scmp.ne.s32.totalorder %s5232_s1, %s5228_s21  ;;  %p292_p7 = scmp.eq.s32.totalorder %s4122_s26, 0 }
  0x27   : > { %s7290_s29 = smov (%p49_p4, %s7288_s29), 0  ;;  %s528_s15 = sadd.s32 1, %s5224_s20 }
  0x28   : > { %7186 = sst [smem:[#allocation22_spill]] %s7290_s29  ;;  %p5446_p8 = por %p292_p7, %p291_p6 }
  0x29   : > { %s5444_s4 = scalar_select %p276_p5, %s5236_s22, %s278_s19  }
  0x2a   : > { %s525_s16 = ssub.s32 %s5252_s25, %s7290_s29  ;;  %p538_p10 = scmp.ne.s32.totalorder %s5224_s20, %s5220_s30 }
  0x2b   : > { %7187 = sst [smem:[#allocation23_spill]] %s5444_s4  ;;  %p526_p9 = scmp.eq.s32.totalorder %s525_s16, 0 }
  0x2c   : > { %p539_p11 = scmp.eq.s32.totalorder %s4122_s26, 3  ;;  %p544_p13 = scmp.ne.s32.totalorder %s5220_s30, %s5216_s0 }
  0x2d   : > { %s5456_s17 = scalar_select %p526_p9, %s5224_s20, %s528_s15  }
  0x2e   : > { %p5458_p12 = por %p539_p11, %p538_p10  ;;  %p545_p0 = scmp.eq.s32.totalorder %s4123_s27, 3 }
  0x2f   : > { %7189 = sst [smem:[#allocation24_spill]] %s5456_s17  ;;  %p4686_p1 = scmp.lt.s32.totalorder %s5256_s3, 4 }
  0x30   : > { %s7190_s21 = scalar_select %p5458_p12, 1, 0 }
  0x31   : > { %s626_s19 = sand.u32 1, %s5236_s22   ;;  %p5466_p2 = por %p545_p0, %p544_p13 }
  0x32   : > { %7191 = sst [smem:[#allocation25_spill]] %s7190_s21  ;;  %s4126_s29 = sshll.u32 %s626_s19, 5 }
  0x33   : > { %s7192_s4 = scalar_select %p5466_p2, 1, 0 }
  0x34   : > { %s4236_s16 = sshll.u32 %s5248_s24, 9  ;;  %s7194_s9 = sld [smem:[#allocation40_spill]] }
  0x35   : > { %7193 = sst [smem:[#allocation26_spill]] %s7192_s4  ;;  %s630_s15 = scalar_lea.vmem [#allocation6], %s4126_s29 }
  0x36   : > { %s637_s17 = sshll.u32 %s630_s15, 4  ;;  %p5478_p4 = pnand %p4686_p1, %p5436_p3  ;;  %s5482_s17 = int_to_ptr.vmem [resolvable:$true] %s637_s17 }
  0x37   : > { %s5484_s24 = scalar_lea.sflag [#allocation7], %s626_s19 }
  0x38   : > { %p5106_p6 = pneg %p5478_p4 }
  0x3a   : > { %s5474_s26 = scalar_lea.hbm %s7194_s9, %s4236_s16  ;;  %s5109_s29 = scalar_lea.hbm %s7194_s9, 1024 }
  0x3b   : > { %s5104_s14 = scalar_lea.hbm %s5474_s26, 512  ;;  %p5110_p3 = scmp.lt.u32.totalorder %s5474_s26, %s7194_s9 }
  0x3c   : > { %p5105_p5 = scmp.ne.s32.totalorder %s5474_s26, %s5104_s14  ;;  %p5111_p10 = scmp.lt.u32.totalorder %s5109_s29, %s5104_s14 }
  0x3d   : > { %p5113_p13 = scmp.lt.u32.totalorder %s5104_s14, %s5474_s26 }
  0x3e   : > { %p5107_p7 = pnand %p5106_p6, %p5105_p5  ;;  %p5112_p11 = por %p5111_p10, %p5110_p3 }
  0x40   : > { %p5108_p9 = pneg %p5107_p7  ;;  %p5114_p0 = por %p5113_p13, %p5112_p11 }
  0x42   : > { %p5115_p1 = pnand %p5114_p0, %p5108_p9 }
  0x44   : > { %5118 = shalt.err (!%p5115_p1)
}
  0x45   : > { %s5119_s19 = scalar_lea.vmem %s5482_s17, 512  ;;  %s5258_s25 = smov [#allocation6]  }
  0x46   : > { %p5120_p5 = scmp.ne.s32.totalorder %s5482_s17, %s5119_s19  ;;  %s5124_s18 = sshll.u32 %s5258_s25, 4  ;;  %s5125_s18 = int_to_ptr.vmem [resolvable:$false] %s5124_s18 }
  0x47   : > { %s5126_s16 = scalar_lea.vmem %s5125_s18, 1024  ;;  %p5127_p12 = scmp.lt.s32.totalorder %s5482_s17, %s5125_s18 }
  0x48   : > { %p5122_p7 = pnand %p5120_p5, %p5106_p6  ;;  %p5128_p3 = scmp.lt.s32.totalorder %s5126_s16, %s5119_s19 }
  0x4a   : > { %p5123_p2 = pneg %p5122_p7  ;;  %p5129_p10 = por %p5128_p3, %p5127_p12 }
  0x4c   : > { %p5130_p11 = pnand %p5129_p10, %p5123_p2 }
  0x4e   : > { %5133 = shalt.err (!%p5130_p11)
}
  0x4f   : > { %s5259_s14 = smov 64   ;;  %s5260_s29 = smov 4  }
  0x50   : > { %4681 = dma.hbm_to_vmem [thread:$0]  (!%p5478_p4), %s5474_s26, 512, %s5482_s17, %s5484_s24, %s5259_s14, %s5259_s14, %s5260_s29  }
  0x51   : > { %p4129_p6 = scmp.ge.s32.totalorder %s5256_s3, 1  ;;  %p692_p9 = scmp.lt.s32.totalorder %s5256_s3, 5 }
  0x53   : > { %p693_p13 = pnand %p4129_p6, %p692_p9 }
  0x55   : > { %696 = sbr.rel (%p693_p13) target bundleno = 3339 (0xd0b), region = 96 }
  0x5c   : > { %s698_s15 = sand.u32 1, %s5232_s1  }
  0x5d   : > { %s4130_s19 = sshll.u32 %s698_s15, 5  ;;  %s699_s25 = scalar_lea.sflag [#allocation7], %s698_s15 }
  0x5e   : > { %s5515_s18 = scalar_lea.vmem [#allocation6], %s4130_s19 }
  0x5f   : > { %7196 = sst [smem:[#allocation27_spill]] %s5515_s18 }
  0x60   : > { %5207 = dma.done.wait (%p5446_p8), %s699_s25, 512  }
  0x61   : > { %5209 = vsyncadd (%p5446_p8), %s699_s25, 4294966784  ;;  %s7138_s24 = sand.u32 1, %s5220_s30   ;;  %p811_p12 = scmp.lt.s32.totalorder %s5244_s23, 1 }
  0x62   : > { %s5525_s17 = sshll.u32 %s7138_s24, 1  ;;  %p824_p2 = scmp.lt.s32.totalorder %s5240_s2, 1 }
  0x63   : > { %s5529_s26 = scalar_select %p811_p12, %s5244_s23, 1 }
  0x64   : > { %s5532_s27 = scalar_select %p824_p2, %s5240_s2, 1 }
  0x65   : > { %s4237_s28 = sshll.u32 %s5529_s26, 7  ;;  %s7198_s24 = sld [smem:[#allocation33_spill]] }
  0x66   : > { %s7199_s20 = sld [smem:[#allocation34_spill]]  ;;  %s4239_s14 = sshll.u32 %s5532_s27, 6 }
  0x67   : > { %s4138_s29 = sshll.u32 %s5532_s27, 1  ;;  %s7200_s7 = sld [smem:[#allocation38_spill]] }
  0x68   : > { %s7201_s8 = sld [smem:[#allocation39_spill]]  ;;  %s7204_s13 = sld [smem:[#allocation42_spill]] }
  0x69   : > { %s4241_s22 = sshll.u32 %s5532_s27, 7  ;;  %s7206_s10 = sld [smem:[#allocation44_spill]] }
  0x6a   : > { %s7207_s16 = sld [smem:[#allocation45_spill]]  ;;  %s810_s18 = scalar_lea.vmem [#allocation9], %s5525_s17 }
  0x6b   : > { %s5542_s9 = scalar_lea.vmem %s7198_s24, %s4237_s28  ;;  %p4144_p8 = scmp.ne.s32.totalorder %s5240_s2, 0 }
  0x6c   : > { %s5547_s4 = scalar_lea.vmem %s7199_s20, %s4237_s28 }
  0x6d   : > { %s5562_s24 = scalar_lea.vmem %s7200_s7, %s4239_s14 }
  0x6e   : > { %s5567_s20 = scalar_lea.vmem %s7201_s8, %s4138_s29  ;;  %s5584_s7 = scalar_lea.vmem %s7204_s13, %s4239_s14 }
  0x6f   : > { %7202 = sst [smem:[#allocation28_spill]] %s5567_s20  ;;  %s7205_s8 = sld [smem:[#allocation43_spill]] }
  0x70   : > { %s5595_s21 = scalar_lea.vmem %s7206_s10, %s4241_s22  ;;  %s864_s23 = scalar_lea.vmem %s7207_s16, %s5532_s27 }
  0x71   : > { %869 = sbr.rel (%p4144_p8) target bundleno = 297 (0x129), region = 104 }
  0x75   : > { %s5589_s20 = scalar_lea.vmem %s7205_s8, %s4138_s29 }
  0x78   : > { %s7208_s25 = sld [smem:[#allocation37_spill]]  ;;  %v5261_v1 = vmov 0   ;;  %v870_v3 = vld [vmem:[%s5542_s9] sm:$0xff]  ;;  %v871_v4 = vld [vmem:[%s5542_s9 + $0x8] sm:$0xff]  ;;  %v872_v5 = vld [vmem:[%s5542_s9 + $0x10] sm:$0xff]  ;;  %vm886_vm0 = vcmask 523264  }
  0x79   : > { %4786 = vset.pattern.permute.xlu0 %v5261_v1  ;;  %v873_v6 = vld [vmem:[%s5542_s9 + $0x18] sm:$0xff]  ;;  %v874_v7 = vld [vmem:[%s5542_s9 + $0x20] sm:$0xff]  ;;  %v875_v8 = vld [vmem:[%s5542_s9 + $0x28] sm:$0xff]  ;;  %887 = vst.msk [vmem:[#allocation2] sm:$0xff] %vm886_vm0, %v870_v3  ;;  %s7210_s30 = sld [smem:[#allocation36_spill]] }
  0x7a   : > { %888 = vst.msk [vmem:[#allocation2 + $0x8] sm:$0xff] %vm886_vm0, %v871_v4  ;;  %889 = vst.msk [vmem:[#allocation2 + $0x10] sm:$0xff] %vm886_vm0, %v872_v5  ;;  %v876_v9 = vld [vmem:[%s5542_s9 + $0x30] sm:$0xff]  ;;  %v877_v10 = vld [vmem:[%s5542_s9 + $0x38] sm:$0xff] }
  0x7b   : > { %v878_v11 = vld [vmem:[%s5542_s9 + $0x40] sm:$0xff]  ;;  %890 = vst.msk [vmem:[#allocation2 + $0x18] sm:$0xff] %vm886_vm0, %v873_v6  ;;  %891 = vst.msk [vmem:[#allocation2 + $0x20] sm:$0xff] %vm886_vm0, %v874_v7  ;;  %v879_v12 = vld [vmem:[%s5542_s9 + $0x48] sm:$0xff] }
  0x7c   : > { %892 = vst.msk [vmem:[#allocation2 + $0x28] sm:$0xff] %vm886_vm0, %v875_v8  ;;  %v880_v13 = vld [vmem:[%s5542_s9 + $0x50] sm:$0xff]  ;;  %v881_v14 = vld [vmem:[%s5542_s9 + $0x58] sm:$0xff]  ;;  %893 = vst.msk [vmem:[#allocation2 + $0x30] sm:$0xff] %vm886_vm0, %v876_v9 }
  0x7d   : > { %894 = vst.msk [vmem:[#allocation2 + $0x38] sm:$0xff] %vm886_vm0, %v877_v10  ;;  %895 = vst.msk [vmem:[#allocation2 + $0x40] sm:$0xff] %vm886_vm0, %v878_v11  ;;  %v882_v15 = vld [vmem:[%s5542_s9 + $0x60] sm:$0xff]  ;;  %v883_v16 = vld [vmem:[%s5542_s9 + $0x68] sm:$0xff] }
  0x7e   : > { %s7209_s13 = smov %s7208_s25  ;;  %v4145_v0 = vld [vmem:[%s7208_s25] ss:$0 sm:$0xff]  ;;  %v884_v17 = vld [vmem:[%s5542_s9 + $0x70] sm:$0xff]  ;;  %896 = vst.msk [vmem:[#allocation2 + $0x48] sm:$0xff] %vm886_vm0, %v879_v12  ;;  %897 = vst.msk [vmem:[#allocation2 + $0x50] sm:$0xff] %vm886_vm0, %v880_v13 }
  0x7f   : > { %932 = vperm.xlu0 %4786, %v4145_v0   ;;  %v4146_v2 = vld [vmem:[%s7209_s13 + $0x1] ss:$0 sm:$0xff]  ;;  %898 = vst.msk [vmem:[#allocation2 + $0x58] sm:$0xff] %vm886_vm0, %v881_v14  ;;  %v885_v18 = vld [vmem:[%s5542_s9 + $0x78] sm:$0xff]  ;;  %899 = vst.msk [vmem:[#allocation2 + $0x60] sm:$0xff] %vm886_vm0, %v882_v15  ;;  %s7211_s15 = smov %s7210_s30  ;;  %s7236_s9 = sld [smem:[#allocation35_spill]] }
  0x80   : > { %900 = vst.msk [vmem:[#allocation2 + $0x68] sm:$0xff] %vm886_vm0, %v883_v16  ;;  %901 = vst.msk [vmem:[#allocation2 + $0x70] sm:$0xff] %vm886_vm0, %v884_v17  ;;  %v5644_v19 = vld [vmem:[%s7210_s30] sm:$0xff]   ;;  %v5649_v20 = vld [vmem:[%s7211_s15 + $0x8] sm:$0xff]  }
  0x81   : > { %902 = vst.msk [vmem:[#allocation2 + $0x78] sm:$0xff] %vm886_vm0, %v885_v18  ;;  %v5654_v21 = vld [vmem:[%s7211_s15 + $0x10] sm:$0xff]   ;;  %v5659_v22 = vld [vmem:[%s7211_s15 + $0x18] sm:$0xff]   ;;  %v5664_v23 = vld [vmem:[%s7211_s15 + $0x20] sm:$0xff]  }
  0x82   : > { %v5669_v24 = vld [vmem:[%s7211_s15 + $0x28] sm:$0xff]   ;;  %v5678_v29 = vld [vmem:[%s7211_s15 + $0x30] sm:$0xff]   ;;  %v5683_v30 = vld [vmem:[%s7211_s15 + $0x38] sm:$0xff]  }
  0x83   : > { %936 = vperm.xlu0 %4786, %v4146_v2   ;;  %v5692_v35 = vld [vmem:[%s7211_s15 + $0x40] sm:$0xff]   ;;  %v5697_v36 = vld [vmem:[%s7211_s15 + $0x48] sm:$0xff]   ;;  %v5702_v37 = vld [vmem:[%s7211_s15 + $0x50] sm:$0xff]  }
  0x84   : > { %v5711_v42 = vld [vmem:[%s7211_s15 + $0x58] sm:$0xff]   ;;  %v5716_v43 = vld [vmem:[%s7211_s15 + $0x60] sm:$0xff]   ;;  %v5721_v44 = vld [vmem:[%s7211_s15 + $0x68] sm:$0xff]  }
  0x85   : > { %7212 = vst [vmem:[#allocation29_spill] sm:$0xff] %v5716_v43  ;;  %7213 = vst [vmem:[#allocation30_spill] sm:$0xff] %v5721_v44  ;;  %v5730_v49 = vld [vmem:[%s7211_s15 + $0x70] sm:$0xff]   ;;  %v5735_v50 = vld [vmem:[%s7211_s15 + $0x78] sm:$0xff]   ;;  %v7216_v44 = vunpack.c.l.bf16 %v5644_v19  ;;  %s7237_s3 = scalar_lea.vmem %s7236_s9, %s5529_s26 }
  0x86   : > { %7214 = vst [vmem:[#allocation31_spill] sm:$0xff] %v5730_v49  ;;  %7215 = vst [vmem:[#allocation32_spill] sm:$0xff] %v5735_v50  ;;  %v903_v51 = vld [vmem:[%s5547_s4] sm:$0xff]  ;;  %v904_v56 = vld [vmem:[%s5547_s4 + $0x8] sm:$0xff] }
  0x87   : > { %v905_v57 = vld [vmem:[%s5547_s4 + $0x10] sm:$0xff]  ;;  %v906_v58 = vld [vmem:[%s5547_s4 + $0x18] sm:$0xff]  ;;  %v907_v63 = vld [vmem:[%s5547_s4 + $0x20] sm:$0xff] }
  0x88   : > { %v908_v0 = vld [vmem:[%s5547_s4 + $0x28] sm:$0xff]  ;;  %v909_v1 = vld [vmem:[%s5547_s4 + $0x30] sm:$0xff]  ;;  %v910_v6 = vld [vmem:[%s5547_s4 + $0x38] sm:$0xff] }
  0x89   : > { %v911_v7 = vld [vmem:[%s5547_s4 + $0x40] sm:$0xff]  ;;  %v912_v8 = vld [vmem:[%s5547_s4 + $0x48] sm:$0xff]  ;;  %v913_v14 = vld [vmem:[%s5547_s4 + $0x50] sm:$0xff] }
  0x8a   : > { %v914_v15 = vld [vmem:[%s5547_s4 + $0x58] sm:$0xff]  ;;  %v915_v16 = vld [vmem:[%s5547_s4 + $0x60] sm:$0xff]  ;;  %v916_v17 = vld [vmem:[%s5547_s4 + $0x68] sm:$0xff] }
  0x8b   : > { %v917_v18 = vld [vmem:[%s5547_s4 + $0x70] sm:$0xff]  ;;  %v918_v4 = vld [vmem:[%s5547_s4 + $0x78] sm:$0xff] }
  0xfe   : > { %v933_v9 = vpop.permute.xlu0 %932 }
  0xff   : > { %v939_v3 = vmul.f32 %v933_v9, %v903_v51  ;;  %v940_v5 = vmul.f32 %v933_v9, %v904_v56  ;;  %v941_v2 = vmul.f32 %v933_v9, %v905_v57  ;;  %v942_v62 = vmul.f32 %v933_v9, %v906_v58 }
 0x100   : > { %v943_v61 = vmul.f32 %v933_v9, %v907_v63  ;;  %v944_v60 = vmul.f32 %v933_v9, %v908_v0  ;;  %v945_v59 = vmul.f32 %v933_v9, %v909_v1  ;;  %v946_v10 = vmul.f32 %v933_v9, %v910_v6 }
 0x101   : > { %v947_v55 = vmul.f32 %v933_v9, %v911_v7  ;;  %v948_v11 = vmul.f32 %v933_v9, %v912_v8  ;;  %v949_v54 = vmul.f32 %v933_v9, %v913_v14  ;;  %v950_v12 = vmul.f32 %v933_v9, %v914_v15 }
 0x102   : > { %v937_v53 = vpop.permute.xlu0 %936  ;;  %v951_v13 = vmul.f32 %v933_v9, %v915_v16  ;;  %v952_v52 = vmul.f32 %v933_v9, %v916_v17  ;;  %v953_v48 = vmul.f32 %v933_v9, %v917_v18  ;;  %v954_v47 = vmul.f32 %v933_v9, %v918_v4 }
 0x103   : > { %v955_v46 = vmul.f32 %v937_v53, %v903_v51  ;;  %v956_v45 = vmul.f32 %v937_v53, %v904_v56  ;;  %v957_v41 = vmul.f32 %v937_v53, %v905_v57  ;;  %v958_v40 = vmul.f32 %v937_v53, %v906_v58 }
 0x104   : > { %v959_v39 = vmul.f32 %v937_v53, %v907_v63  ;;  %v960_v38 = vmul.f32 %v937_v53, %v908_v0  ;;  %v961_v34 = vmul.f32 %v937_v53, %v909_v1  ;;  %v962_v33 = vmul.f32 %v937_v53, %v910_v6 }
 0x105   : > { %v963_v32 = vmul.f32 %v937_v53, %v911_v7  ;;  %v964_v31 = vmul.f32 %v937_v53, %v912_v8  ;;  %v965_v28 = vmul.f32 %v937_v53, %v913_v14  ;;  %v966_v27 = vmul.f32 %v937_v53, %v914_v15 }
 0x106   : > { %v967_v26 = vmul.f32 %v937_v53, %v915_v16  ;;  %v968_v25 = vmul.f32 %v937_v53, %v916_v17  ;;  %v969_v50 = vmul.f32 %v937_v53, %v917_v18  ;;  %v970_v49 = vmul.f32 %v937_v53, %v918_v4 }
 0x107   : > { %v1035_v43 = vadd.f32 %v7216_v44, %v939_v3  ;;  %v7217_v51 = vunpack.c.h.bf16 %v5644_v19  ;;  %v7218_v57 = vunpack.c.l.bf16 %v5649_v20  ;;  %v7219_v63 = vunpack.c.h.bf16 %v5649_v20 }
 0x108   : > { %v7220_v1 = vunpack.c.l.bf16 %v5654_v21  ;;  %v7221_v7 = vunpack.c.h.bf16 %v5654_v21  ;;  %v7222_v53 = vunpack.c.l.bf16 %v5659_v22  ;;  %v7223_v44 = vunpack.c.h.bf16 %v5659_v22 }
 0x109   : > { %v1036_v56 = vadd.f32 %v7217_v51, %v940_v5  ;;  %v1037_v58 = vadd.f32 %v7218_v57, %v941_v2  ;;  %v1038_v0 = vadd.f32 %v7219_v63, %v942_v62  ;;  %v7224_v3 = vunpack.c.l.bf16 %v5664_v23  ;;  %v7242_v51 = vld [vmem:[#allocation29_spill] sm:$0xff] }
 0x10a   : > { %v1039_v6 = vadd.f32 %v7220_v1, %v943_v61  ;;  %v1040_v8 = vadd.f32 %v7221_v7, %v944_v60  ;;  %v1041_v4 = vadd.f32 %v7222_v53, %v945_v59  ;;  %v1042_v19 = vadd.f32 %v7223_v44, %v946_v10  ;;  %v7245_v1 = vld [vmem:[#allocation30_spill] sm:$0xff] }
 0x10b   : > { %v1043_v5 = vadd.f32 %v7224_v3, %v947_v55  ;;  %v7225_v2 = vunpack.c.h.bf16 %v5664_v23  ;;  %v7226_v62 = vunpack.c.l.bf16 %v5669_v24  ;;  %v7227_v61 = vunpack.c.h.bf16 %v5669_v24 }
 0x10c   : > { %v7228_v60 = vunpack.c.l.bf16 %v5678_v29  ;;  %v7229_v59 = vunpack.c.h.bf16 %v5678_v29  ;;  %v7230_v22 = vunpack.c.l.bf16 %v5683_v30  ;;  %v7231_v55 = vunpack.c.h.bf16 %v5683_v30  ;;  %v4147_v29 = vld [vmem:[%s7237_s3] ss:$0 sm:$0xff] }
 0x10d   : > { %v1044_v20 = vadd.f32 %v7225_v2, %v948_v11  ;;  %v1045_v9 = vadd.f32 %v7226_v62, %v949_v54  ;;  %v1046_v21 = vadd.f32 %v7227_v61, %v950_v12  ;;  %v7232_v23 = vunpack.c.l.bf16 %v5692_v35 }
 0x10e   : > { %v1047_v14 = vadd.f32 %v7228_v60, %v951_v13  ;;  %v1048_v15 = vadd.f32 %v7229_v59, %v952_v52  ;;  %v1049_v10 = vadd.f32 %v7230_v22, %v953_v48  ;;  %v1050_v16 = vadd.f32 %v7231_v55, %v954_v47 }
 0x10f   : > { %v1051_v11 = vadd.f32 %v7232_v23, %v955_v46  ;;  %v7233_v54 = vunpack.c.h.bf16 %v5692_v35  ;;  %v7234_v24 = vunpack.c.l.bf16 %v5697_v36  ;;  %v7235_v13 = vunpack.c.h.bf16 %v5697_v36 }
 0x110   : > { %v7238_v30 = vunpack.c.l.bf16 %v5702_v37  ;;  %v7239_v48 = vunpack.c.h.bf16 %v5702_v37  ;;  %v7240_v35 = vunpack.c.l.bf16 %v5711_v42  ;;  %v7241_v52 = vunpack.c.h.bf16 %v5711_v42  ;;  %v7248_v37 = vld [vmem:[#allocation31_spill] sm:$0xff]  ;;  %v7251_v42 = vld [vmem:[#allocation32_spill] sm:$0xff] }
 0x111   : > { %v1052_v17 = vadd.f32 %v7233_v54, %v956_v45  ;;  %v1053_v12 = vadd.f32 %v7234_v24, %v957_v41  ;;  %v1054_v18 = vadd.f32 %v7235_v13, %v958_v40  ;;  %v7243_v36 = vunpack.c.l.bf16 %v7242_v51 }
 0x112   : > { %v1055_v47 = vadd.f32 %v7238_v30, %v959_v39  ;;  %v1056_v46 = vadd.f32 %v7239_v48, %v960_v38  ;;  %v1057_v45 = vadd.f32 %v7240_v35, %v961_v34  ;;  %v1058_v41 = vadd.f32 %v7241_v52, %v962_v33 }
 0x113   : > { %v1059_v40 = vadd.f32 %v7243_v36, %v963_v32  ;;  %v7244_v57 = vunpack.c.h.bf16 %v7242_v51  ;;  %v7246_v7 = vunpack.c.l.bf16 %v7245_v1  ;;  %v7247_v39 = vunpack.c.h.bf16 %v7245_v1 }
 0x114   : > { %v7249_v38 = vunpack.c.l.bf16 %v7248_v37  ;;  %v7250_v34 = vunpack.c.h.bf16 %v7248_v37  ;;  %v7252_v33 = vunpack.c.l.bf16 %v7251_v42  ;;  %v7253_v32 = vunpack.c.h.bf16 %v7251_v42 }
 0x115   : > { %v1060_v63 = vadd.f32 %v7244_v57, %v964_v31  ;;  %v1061_v53 = vadd.f32 %v7246_v7, %v965_v28  ;;  %v1062_v44 = vadd.f32 %v7247_v39, %v966_v27  ;;  %v1074_v60 = vadd.f32 %v4147_v29, %v1035_v43 }
 0x116   : > { %v1063_v3 = vadd.f32 %v7249_v38, %v967_v26  ;;  %v1064_v2 = vadd.f32 %v7250_v34, %v968_v25  ;;  %v1065_v62 = vadd.f32 %v7252_v33, %v969_v50  ;;  %v1066_v61 = vadd.f32 %v7253_v32, %v970_v49 }
 0x117   : > { %v1075_v31 = vadd.f32 %v4147_v29, %v1036_v56  ;;  %v1076_v59 = vadd.f32 %v4147_v29, %v1037_v58  ;;  %v1077_v22 = vadd.f32 %v4147_v29, %v1038_v0  ;;  %v1078_v28 = vadd.f32 %v4147_v29, %v1039_v6 }
 0x118   : > { %v1079_v55 = vadd.f32 %v4147_v29, %v1040_v8  ;;  %v1080_v23 = vadd.f32 %v4147_v29, %v1041_v4  ;;  %v1081_v27 = vadd.f32 %v4147_v29, %v1042_v19  ;;  %v1082_v54 = vadd.f32 %v4147_v29, %v1043_v5 }
 0x119   : > { %v1083_v24 = vadd.f32 %v4147_v29, %v1044_v20  ;;  %v1084_v26 = vadd.f32 %v4147_v29, %v1045_v9  ;;  %v1085_v13 = vadd.f32 %v4147_v29, %v1046_v21  ;;  %v1086_v30 = vadd.f32 %v4147_v29, %v1047_v14 }
 0x11a   : > { %v1087_v25 = vadd.f32 %v4147_v29, %v1048_v15  ;;  %v1088_v48 = vadd.f32 %v4147_v29, %v1049_v10  ;;  %v1089_v35 = vadd.f32 %v4147_v29, %v1050_v16  ;;  %v1090_v50 = vadd.f32 %v4147_v29, %v1051_v11 }
 0x11b   : > { %v1091_v52 = vadd.f32 %v4147_v29, %v1052_v17  ;;  %v1092_v51 = vadd.f32 %v4147_v29, %v1053_v12  ;;  %v1093_v49 = vadd.f32 %v4147_v29, %v1054_v18  ;;  %v1094_v43 = vadd.f32 %v4147_v29, %v1055_v47 }
 0x11c   : > { %v1095_v56 = vadd.f32 %v4147_v29, %v1056_v46  ;;  %v1096_v58 = vadd.f32 %v4147_v29, %v1057_v45  ;;  %v1097_v0 = vadd.f32 %v4147_v29, %v1058_v41  ;;  %v1098_v6 = vadd.f32 %v4147_v29, %v1059_v40 }
 0x11d   : > { %v1099_v8 = vadd.f32 %v4147_v29, %v1060_v63  ;;  %v1100_v4 = vadd.f32 %v4147_v29, %v1061_v53  ;;  %v1101_v19 = vadd.f32 %v4147_v29, %v1062_v44  ;;  %v1102_v5 = vadd.f32 %v4147_v29, %v1063_v3 }
 0x11e   : > { %v1103_v20 = vadd.f32 %v4147_v29, %v1064_v2  ;;  %v1104_v9 = vadd.f32 %v4147_v29, %v1065_v62  ;;  %v1105_v21 = vadd.f32 %v4147_v29, %v1066_v61  ;;  %v1106_v14 = vpack.c.bf16 %v1075_v31, %v1074_v60 }
 0x11f   : > { %v1107_v15 = vpack.c.bf16 %v1077_v22, %v1076_v59  ;;  %v1108_v10 = vpack.c.bf16 %v1079_v55, %v1078_v28  ;;  %v1109_v16 = vpack.c.bf16 %v1081_v27, %v1080_v23  ;;  %v1110_v11 = vpack.c.bf16 %v1083_v24, %v1082_v54 }
 0x120   : > { %v1111_v17 = vpack.c.bf16 %v1085_v13, %v1084_v26  ;;  %v1112_v12 = vpack.c.bf16 %v1087_v25, %v1086_v30  ;;  %v1113_v18 = vpack.c.bf16 %v1089_v35, %v1088_v48  ;;  %v1114_v47 = vpack.c.bf16 %v1091_v52, %v1090_v50  ;;  %1122 = vst [vmem:[#allocation3] sm:$0xff] %v1106_v14 }
 0x121   : > { %v1115_v46 = vpack.c.bf16 %v1093_v49, %v1092_v51  ;;  %v1116_v45 = vpack.c.bf16 %v1095_v56, %v1094_v43  ;;  %v1117_v41 = vpack.c.bf16 %v1097_v0, %v1096_v58  ;;  %1123 = vst [vmem:[#allocation3 + $0x8] sm:$0xff] %v1107_v15  ;;  %1124 = vst [vmem:[#allocation3 + $0x10] sm:$0xff] %v1108_v10 }
 0x122   : > { %1125 = vst [vmem:[#allocation3 + $0x18] sm:$0xff] %v1109_v16  ;;  %v1118_v36 = vpack.c.bf16 %v1099_v8, %v1098_v6  ;;  %v1119_v40 = vpack.c.bf16 %v1101_v19, %v1100_v4  ;;  %v1120_v57 = vpack.c.bf16 %v1103_v20, %v1102_v5  ;;  %v1121_v29 = vpack.c.bf16 %v1105_v21, %v1104_v9 }
 0x123   : > { %1126 = vst [vmem:[#allocation3 + $0x20] sm:$0xff] %v1110_v11  ;;  %1127 = vst [vmem:[#allocation3 + $0x28] sm:$0xff] %v1111_v17 }
 0x124   : > { %1128 = vst [vmem:[#allocation3 + $0x30] sm:$0xff] %v1112_v12  ;;  %1129 = vst [vmem:[#allocation3 + $0x38] sm:$0xff] %v1113_v18 }
 0x125   : > { %1130 = vst [vmem:[#allocation3 + $0x40] sm:$0xff] %v1114_v47  ;;  %1131 = vst [vmem:[#allocation3 + $0x48] sm:$0xff] %v1115_v46 }
 0x126   : > { %1132 = vst [vmem:[#allocation3 + $0x50] sm:$0xff] %v1116_v45  ;;  %1133 = vst [vmem:[#allocation3 + $0x58] sm:$0xff] %v1117_v41 }
 0x127   : > { %1134 = vst [vmem:[#allocation3 + $0x60] sm:$0xff] %v1118_v36  ;;  %1135 = vst [vmem:[#allocation3 + $0x68] sm:$0xff] %v1119_v40 }
 0x128   : > { %1136 = vst [vmem:[#allocation3 + $0x70] sm:$0xff] %v1120_v57  ;;  %1137 = vst [vmem:[#allocation3 + $0x78] sm:$0xff] %v1121_v29 }
 0x129 PF: > { %v1138_v63 = vld [vmem:[#allocation2] sm:$0xff]  ;;  %vm1156_vm1 = vcmask 523264   ;;  %v1140_v1 = vld [vmem:[#allocation2 + $0x10] sm:$0xff]  ;;  %v1139_v7 = vld [vmem:[#allocation2 + $0x8] sm:$0xff]  ;;  %s7254_s16 = scalar_lea.vmem %s7115_s5, %s5532_s27  ;;  %s7255_s25 = scalar_lea.vmem %s7116_s6, %s5532_s27  ;;  %vm1711_vm2 = vcmask 261120   ;;  %vm2669_vm3 = vcmask 523520  }
 0x12a   : > { %v1157_v53 = vsel %vm1156_vm1, %v1138_v63, 0.0  ;;  %v1163_v39 = vsel %vm1156_vm1, %v1140_v1, 0.0  ;;  %v1141_v44 = vld [vmem:[#allocation2 + $0x18] sm:$0xff]  ;;  %v1160_v37 = vsel %vm1156_vm1, %v1139_v7, 0.0  ;;  %v1142_v3 = vld [vmem:[#allocation2 + $0x20] sm:$0xff]  ;;  %v1143_v34 = vld [vmem:[#allocation2 + $0x28] sm:$0xff]  ;;  %s7260_s3 = scalar_lea.vmem %s7121_s11, %s5532_s27 }
 0x12b   : > { %1158 = vadd.xlane.f32.xlu0 %v1157_v53  ;;  %1164 = vadd.xlane.f32.xlu1 %v1163_v39  ;;  %v1166_v38 = vsel %vm1156_vm1, %v1141_v44, 0.0  ;;  %v5842_v2 = vld [vmem:[#allocation2 + $0x30] sm:$0xff]  ;;  %v5844_v42 = vld [vmem:[#allocation2 + $0x38] sm:$0xff]  ;;  %v5846_v33 = vld [vmem:[#allocation2 + $0x40] sm:$0xff]  ;;  %v1169_v32 = vsel %vm1156_vm1, %v1142_v3, 0.0  ;;  %v1172_v61 = vsel %vm1156_vm1, %v1143_v34, 0.0 }
 0x12c   : > { %v5848_v62 = vld [vmem:[#allocation2 + $0x48] sm:$0xff]  ;;  %v5852_v60 = vld [vmem:[#allocation2 + $0x50] sm:$0xff]  ;;  %v5854_v31 = vld [vmem:[#allocation2 + $0x58] sm:$0xff]  ;;  %v1175_v28 = vsel %vm1156_vm1, %v5842_v2, 0.0  ;;  %v1178_v55 = vsel %vm1156_vm1, %v5844_v42, 0.0  ;;  %v1181_v23 = vsel %vm1156_vm1, %v5846_v33, 0.0 }
 0x12d   : > { %v5856_v59 = vld [vmem:[#allocation2 + $0x60] sm:$0xff]  ;;  %v5858_v22 = vld [vmem:[#allocation2 + $0x68] sm:$0xff]  ;;  %v1184_v27 = vsel %vm1156_vm1, %v5848_v62, 0.0  ;;  %v1187_v54 = vsel %vm1156_vm1, %v5852_v60, 0.0  ;;  %v1190_v24 = vsel %vm1156_vm1, %v5854_v31, 0.0  ;;  %v5876_v30 = vld [vmem:[#allocation2 + $0x70] sm:$0xff] }
 0x12e   : > { %v1193_v26 = vsel %vm1156_vm1, %v5856_v59, 0.0  ;;  %v1196_v13 = vsel %vm1156_vm1, %v5858_v22, 0.0  ;;  %v5878_v25 = vld [vmem:[#allocation2 + $0x78] sm:$0xff]  ;;  %v1199_v48 = vsel %vm1156_vm1, %v5876_v30, 0.0  ;;  %s7256_s8 = sld [smem:[#allocation28_spill]]  ;;  %s5263_s10 = smov 64  }
 0x12f   : > { %1161 = vadd.xlane.f32.xlu0 %v1160_v37  ;;  %1167 = vadd.xlane.f32.xlu1 %v1166_v38  ;;  %v1202_v35 = vsel %vm1156_vm1, %v5878_v25, 0.0  ;;  %s5264_s29 = smov 32   ;;  %s5265_s0 = smov 96  }
 0x130   : > { %s7257_s30 = sld [smem:[#allocation27_spill]]  ;;  %s7258_s4 = sld [smem:[#allocation41_spill]] }
 0x131   : > { %p4230_p4 = scmp.ne.s32.totalorder %s5240_s2, 1 }
 0x132   : > { %s7263_s19 = sld [smem:[#allocation47_spill]] (!%p4230_p4)  ;;  %vm5267_vm4 = vmmov (!%p4230_p4), 0  }
 0x133   : > { %1170 = vadd.xlane.f32.xlu0 %v1169_v32  ;;  %1173 = vadd.xlane.f32.xlu1 %v1172_v61 }
 0x136   : > { %s7259_s28 = scalar_lea.vmem %s7258_s4, %s5532_s27 }
 0x137   : > { %1176 = vadd.xlane.f32.xlu0 %v1175_v28  ;;  %1179 = vadd.xlane.f32.xlu1 %v1178_v55 }
 0x13b   : > { %1182 = vadd.xlane.f32.xlu0 %v1181_v23  ;;  %1185 = vadd.xlane.f32.xlu1 %v1184_v27 }
 0x13f   : > { %1188 = vadd.xlane.f32.xlu0 %v1187_v54  ;;  %1191 = vadd.xlane.f32.xlu1 %v1190_v24 }
 0x143   : > { %1194 = vadd.xlane.f32.xlu0 %v1193_v26  ;;  %1197 = vadd.xlane.f32.xlu1 %v1196_v13 }
 0x147   : > { %1200 = vadd.xlane.f32.xlu0 %v1199_v48  ;;  %1203 = vadd.xlane.f32.xlu1 %v1202_v35 }
 0x1b8   : > { %v1159_v50 = vpop.xlane.xlu0 %1158  ;;  %v1165_v52 = vpop.xlane.xlu1 %1164 }
 0x1b9   : > { %v1206_v51 = vmul.f32 0.015625, %v1159_v50  ;;  %v1208_v49 = vmul.f32 0.015625, %v1165_v52 }
 0x1bb   : > { %v5884_v43 = vsub.f32 %v1138_v63, %v1206_v51  ;;  %v5886_v56 = vsub.f32 %v1140_v1, %v1208_v49 }
 0x1bc   : > { %v1162_v58 = vpop.xlane.xlu0 %1161  ;;  %v1168_v0 = vpop.xlane.xlu1 %1167 }
 0x1bd   : > { %v1207_v6 = vmul.f32 0.015625, %v1162_v58  ;;  %v1209_v8 = vmul.f32 0.015625, %v1168_v0  ;;  %v1238_v4 = vmul.f32 %v5884_v43, %v5884_v43  ;;  %v1240_v19 = vmul.f32 %v5886_v56, %v5886_v56 }
 0x1bf   : > { %v5892_v5 = vsub.f32 %v1139_v7, %v1207_v6  ;;  %v5894_v20 = vsub.f32 %v1141_v44, %v1209_v8  ;;  %v1254_v9 = vsel %vm1156_vm1, %v1238_v4, 0.0  ;;  %v1260_v15 = vsel %vm1156_vm1, %v1240_v19, 0.0 }
 0x1c0   : > { %1255 = vadd.xlane.f32.xlu0 %v1254_v9  ;;  %v1171_v21 = vpop.xlane.xlu0 %1170  ;;  %v1174_v14 = vpop.xlane.xlu1 %1173 }
 0x1c1   : > { %v1210_v10 = vmul.f32 0.015625, %v1171_v21  ;;  %v1211_v16 = vmul.f32 0.015625, %v1174_v14  ;;  %v1239_v11 = vmul.f32 %v5892_v5, %v5892_v5  ;;  %v1241_v17 = vmul.f32 %v5894_v20, %v5894_v20 }
 0x1c3   : > { %v5902_v12 = vsub.f32 %v1142_v3, %v1210_v10  ;;  %v5904_v18 = vsub.f32 %v1143_v34, %v1211_v16  ;;  %v1257_v47 = vsel %vm1156_vm1, %v1239_v11, 0.0  ;;  %v1263_v41 = vsel %vm1156_vm1, %v1241_v17, 0.0  ;;  %v4789_v11 = vld [vmem:[%s5562_s24] ss:$8 sps:$4 sm:$0xff]   ;;  %v4790_v17 = vld [vmem:[%s5562_s24 + $0x14] ss:$8 sps:$4 sm:$0xff]  }
 0x1c4   : > { %1261 = vadd.xlane.f32.xlu0 %v1260_v15  ;;  %1258 = vadd.xlane.f32.xlu1 %v1257_v47  ;;  %v1177_v46 = vpop.xlane.xlu0 %1176  ;;  %v1180_v45 = vpop.xlane.xlu1 %1179  ;;  %v4787_v15 = vld [vmem:[%s5562_s24 + $0x4] ss:$8 sps:$4 sm:$0xff]  }
 0x1c5   : > { %v1212_v36 = vmul.f32 0.015625, %v1177_v46  ;;  %v1213_v40 = vmul.f32 0.015625, %v1180_v45  ;;  %v1242_v57 = vmul.f32 %v5902_v12, %v5902_v12  ;;  %v1243_v29 = vmul.f32 %v5904_v18, %v5904_v18  ;;  %1502 = vmatprep.subr.bf16.mxu0 %v4787_v15  ;;  %v4792_v46 = vld [vmem:[%s5562_s24 + $0x10] ss:$8 sps:$4 sm:$0xff]   ;;  %v4793_v45 = vld [vmem:[%s5562_s24 + $0x24] ss:$8 sps:$4 sm:$0xff]  }
 0x1c6   : > { %1503 = vmatpush1.bf16.msra.mxu0 %v4789_v11 }
 0x1c7   : > { %v5913_v63 = vsub.f32 %v5842_v2, %v1212_v36  ;;  %v5916_v1 = vsub.f32 %v5844_v42, %v1213_v40  ;;  %v1266_v7 = vsel %vm1156_vm1, %v1242_v57, 0.0  ;;  %v1269_v44 = vsel %vm1156_vm1, %v1243_v29, 0.0  ;;  %1504 = vmatprep.subr.bf16.mxu0 %v4790_v17  ;;  %v4796_v36 = vld [vmem:[%s5562_s24 + $0x34] ss:$8 sps:$4 sm:$0xff]   ;;  %v4798_v40 = vld [vmem:[%s5562_s24 + $0x30] ss:$8 sps:$4 sm:$0xff]  }
 0x1c8   : > { %1264 = vadd.xlane.f32.xlu1 %v1263_v41  ;;  %1267 = vadd.xlane.f32.xlu0 %v1266_v7  ;;  %v1183_v53 = vpop.xlane.xlu0 %1182  ;;  %v1186_v39 = vpop.xlane.xlu1 %1185  ;;  %v4795_v41 = vld [vmem:[%s5562_s24 + $0x20] ss:$8 sps:$4 sm:$0xff]   ;;  %v5262_v57 = vmov 0  }
 0x1c9   : > { %v1214_v37 = vmul.f32 0.015625, %v1183_v53  ;;  %v1215_v38 = vmul.f32 0.015625, %v1186_v39  ;;  %v1244_v3 = vmul.f32 %v5913_v63, %v5913_v63  ;;  %v1245_v34 = vmul.f32 %v5916_v1, %v5916_v1  ;;  %1534 = vmatprep.mubr.bf16.mxu0 %v5262_v57 }
 0x1ca   : > { %1505 = vmatpush1.bf16.msra.mxu0 %v4792_v46 }
 0x1cb   : > { %v5925_v2 = vsub.f32 %v5846_v33, %v1214_v37  ;;  %v5928_v42 = vsub.f32 %v5848_v62, %v1215_v38  ;;  %v1272_v32 = vsel %vm1156_vm1, %v1244_v3, 0.0  ;;  %v1275_v55 = vsel %vm1156_vm1, %v1245_v34, 0.0  ;;  %1506 = vmatprep.subr.bf16.mxu0 %v4793_v45 }
 0x1cc   : > { %1270 = vadd.xlane.f32.xlu1 %v1269_v44  ;;  %1273 = vadd.xlane.f32.xlu0 %v1272_v32  ;;  %v1189_v61 = vpop.xlane.xlu0 %1188  ;;  %v1192_v28 = vpop.xlane.xlu1 %1191 }
 0x1cd   : > { %v1216_v23 = vmul.f32 0.015625, %v1189_v61  ;;  %v1217_v27 = vmul.f32 0.015625, %v1192_v28  ;;  %v1246_v54 = vmul.f32 %v5925_v2, %v5925_v2  ;;  %v1247_v33 = vmul.f32 %v5928_v42, %v5928_v42 }
 0x1ce   : > { %1507 = vmatpush1.bf16.msra.mxu0 %v4795_v41 }
 0x1cf   : > { %v5937_v24 = vsub.f32 %v5852_v60, %v1216_v23  ;;  %v5940_v62 = vsub.f32 %v5854_v31, %v1217_v27  ;;  %v1278_v26 = vsel %vm1156_vm1, %v1246_v54, 0.0  ;;  %v1281_v35 = vsel %vm1156_vm1, %v1247_v33, 0.0  ;;  %1508 = vmatprep.subr.bf16.mxu0 %v4796_v36 }
 0x1d0   : > { %1276 = vadd.xlane.f32.xlu1 %v1275_v55  ;;  %1279 = vadd.xlane.f32.xlu0 %v1278_v26  ;;  %v1195_v13 = vpop.xlane.xlu0 %1194  ;;  %v1198_v48 = vpop.xlane.xlu1 %1197 }
 0x1d1   : > { %v1218_v50 = vmul.f32 0.015625, %v1195_v13  ;;  %v1219_v52 = vmul.f32 0.015625, %v1198_v48  ;;  %v1248_v51 = vmul.f32 %v5937_v24, %v5937_v24  ;;  %v1249_v60 = vmul.f32 %v5940_v62, %v5940_v62 }
 0x1d2   : > { %1509 = vmatpush1.bf16.msra.mxu0 %v4798_v40 }
 0x1d3   : > { %v5949_v49 = vsub.f32 %v5856_v59, %v1218_v50  ;;  %v5952_v31 = vsub.f32 %v5858_v22, %v1219_v52  ;;  %v1284_v58 = vsel %vm1156_vm1, %v1248_v51, 0.0  ;;  %v1287_v8 = vsel %vm1156_vm1, %v1249_v60, 0.0  ;;  %v5989_v51 = vld [vmem:[%s7254_s16] ss:$0 sm:$0xff]  ;;  %s7261_s16 = scalar_lea.vmem %s7122_s12, %s5532_s27 }
 0x1d4   : > { %1282 = vadd.xlane.f32.xlu1 %v1281_v35  ;;  %1285 = vadd.xlane.f32.xlu0 %v1284_v58  ;;  %v1201_v0 = vpop.xlane.xlu0 %1200  ;;  %v1204_v6 = vpop.xlane.xlu1 %1203 }
 0x1d5   : > { %v1220_v4 = vmul.f32 0.015625, %v1201_v0  ;;  %v1221_v19 = vmul.f32 0.015625, %v1204_v6  ;;  %v1250_v9 = vmul.f32 %v5949_v49, %v5949_v49  ;;  %v1251_v59 = vmul.f32 %v5952_v31, %v5952_v31 }
 0x1d7   : > { %v5961_v22 = vsub.f32 %v5876_v30, %v1220_v4  ;;  %v5964_v21 = vsub.f32 %v5878_v25, %v1221_v19  ;;  %v1290_v14 = vsel %vm1156_vm1, %v1250_v9, 0.0  ;;  %v1293_v10 = vsel %vm1156_vm1, %v1251_v59, 0.0 }
 0x1d8   : > { %1288 = vadd.xlane.f32.xlu1 %v1287_v8  ;;  %1291 = vadd.xlane.f32.xlu0 %v1290_v14 }
 0x1d9   : > { %v1252_v16 = vmul.f32 %v5961_v22, %v5961_v22  ;;  %v1253_v30 = vmul.f32 %v5964_v21, %v5964_v21 }
 0x1db   : > { %v1296_v25 = vsel %vm1156_vm1, %v1252_v16, 0.0  ;;  %v1299_v47 = vsel %vm1156_vm1, %v1253_v30, 0.0 }
 0x1dc   : > { %1294 = vadd.xlane.f32.xlu1 %v1293_v10  ;;  %1297 = vadd.xlane.f32.xlu0 %v1296_v25 }
 0x1e0   : > { %1300 = vadd.xlane.f32.xlu1 %v1299_v47 }
 0x24d   : > { %v1256_v29 = vpop.xlane.xlu0 %1255 }
 0x24e   : > { %v1302_v7 = vmul.f32 0.015625, %v1256_v29 }
 0x250   : > { %v1318_v53 = vadd.f32 1e-05, %v1302_v7 }
 0x251   : > { %v1259_v39 = vpop.xlane.xlu1 %1258  ;;  %v1262_v44 = vpop.xlane.xlu0 %1261 }
 0x252   : > { %4831 = vrsqrt.f32 %v1318_v53  ;;  %v1303_v37 = vmul.f32 0.015625, %v1259_v39  ;;  %v1304_v38 = vmul.f32 0.015625, %v1262_v44 }
 0x254   : > { %v1319_v3 = vadd.f32 1e-05, %v1303_v37  ;;  %v1320_v34 = vadd.f32 1e-05, %v1304_v38 }
 0x255   : > { %v1265_v32 = vpop.xlane.xlu1 %1264  ;;  %v1268_v61 = vpop.xlane.xlu0 %1267 }
 0x256   : > { %4833 = vrsqrt.f32 %v1319_v3  ;;  %v1305_v28 = vmul.f32 0.015625, %v1265_v32  ;;  %v1306_v23 = vmul.f32 0.015625, %v1268_v61 }
 0x257   : > { %4835 = vrsqrt.f32 %v1320_v34 }
 0x258   : > { %v1321_v55 = vadd.f32 1e-05, %v1305_v28  ;;  %v1322_v26 = vadd.f32 1e-05, %v1306_v23 }
 0x259   : > { %v1271_v27 = vpop.xlane.xlu1 %1270  ;;  %v1274_v48 = vpop.xlane.xlu0 %1273 }
 0x25a   : > { %4837 = vrsqrt.f32 %v1321_v55  ;;  %v1307_v54 = vmul.f32 0.015625, %v1271_v27  ;;  %v1308_v58 = vmul.f32 0.015625, %v1274_v48 }
 0x25c   : > { %v4832_v33 = vpop.eup %4831  ;;  %v1323_v13 = vadd.f32 1e-05, %v1307_v54  ;;  %v1324_v14 = vadd.f32 1e-05, %v1308_v58 }
 0x25d   : > { %v1277_v35 = vpop.xlane.xlu1 %1276  ;;  %v1350_v50 = vmul.f32 %v4832_v33, %v5884_v43  ;;  %v5998_v43 = vld [vmem:[%s7255_s25] ss:$0 sm:$0xff]  ;;  %v1280_v15 = vpop.xlane.xlu0 %1279 }
 0x25e   : > { %4839 = vrsqrt.f32 %v1323_v13  ;;  %v1309_v52 = vmul.f32 0.015625, %v1277_v35  ;;  %v1310_v46 = vmul.f32 0.015625, %v1280_v15 }
 0x25f   : > { %4841 = vrsqrt.f32 %v1322_v26  ;;  %v1372_v6 = vmul.f32 %v5989_v51, %v1350_v50 }
 0x260   : > { %v4834_v60 = vpop.eup %4833  ;;  %v1325_v4 = vadd.f32 1e-05, %v1309_v52  ;;  %v1326_v29 = vadd.f32 1e-05, %v1310_v46 }
 0x261   : > { %v1351_v0 = vmul.f32 %v4834_v60, %v5892_v5  ;;  %v4836_v8 = vpop.eup %4835  ;;  %v1283_v19 = vpop.xlane.xlu1 %1282  ;;  %v1394_v10 = vadd.f32 %v5998_v43, %v1372_v6 }
 0x262   : > { %v1352_v16 = vmul.f32 %v4836_v8, %v5886_v56  ;;  %4843 = vrsqrt.f32 %v1325_v4  ;;  %v1311_v11 = vmul.f32 0.015625, %v1283_v19  ;;  %v1286_v7 = vpop.xlane.xlu0 %1285 }
 0x263   : > { %v1373_v9 = vmul.f32 %v5989_v51, %v1351_v0  ;;  %4845 = vrsqrt.f32 %v1324_v14  ;;  %v1312_v34 = vmul.f32 0.015625, %v1286_v7 }
 0x264   : > { %v4838_v59 = vpop.eup %4837  ;;  %v1374_v45 = vmul.f32 %v5989_v51, %v1352_v16  ;;  %v1327_v36 = vadd.f32 1e-05, %v1311_v11 }
 0x265   : > { %v1395_v5 = vadd.f32 %v5998_v43, %v1373_v9  ;;  %v1353_v30 = vmul.f32 %v4838_v59, %v5894_v20  ;;  %v1289_v40 = vpop.xlane.xlu1 %1288  ;;  %v1328_v23 = vadd.f32 1e-05, %v1312_v34 }
 0x266   : > { %v1396_v53 = vadd.f32 %v5998_v43, %v1374_v45  ;;  %4847 = vrsqrt.f32 %v1327_v36  ;;  %v1313_v44 = vmul.f32 0.015625, %v1289_v40  ;;  %v1292_v27 = vpop.xlane.xlu0 %1291 }
 0x267   : > { %v1410_v25 = vpack.c.bf16 %v1395_v5, %v1394_v10  ;;  %v1375_v17 = vmul.f32 %v5989_v51, %v1353_v30  ;;  %4849 = vrsqrt.f32 %v1326_v29  ;;  %v1314_v50 = vmul.f32 0.015625, %v1292_v27 }
 0x268   : > { %v4840_v47 = vpop.eup %4839 }
 0x269   : > { %4158 = vmatmul.mubr.msk.bf16.vlgmr.msra.gmra.mrb[0].mxu0 %vm1156_vm1, %v1410_v25  ;;  %v4842_v41 = vpop.eup %4841  ;;  %v1397_v56 = vadd.f32 %v5998_v43, %v1375_v17  ;;  %v1355_v20 = vmul.f32 %v4840_v47, %v5904_v18  ;;  %v1329_v18 = vadd.f32 1e-05, %v1313_v44  ;;  %v1295_v28 = vpop.xlane.xlu1 %1294  ;;  %v1330_v6 = vadd.f32 1e-05, %v1314_v50 }
 0x26a   : > { %1544 = vmatprep.mubr.bf16.mxu0 %v5262_v57  ;;  %v1354_v39 = vmul.f32 %v4842_v41, %v5902_v12  ;;  %v1315_v26 = vmul.f32 0.015625, %v1295_v28  ;;  %v1298_v8 = vpop.xlane.xlu0 %1297 }
 0x26b   : > { %v1411_v37 = vpack.c.bf16 %v1397_v56, %v1396_v53  ;;  %v1377_v38 = vmul.f32 %v5989_v51, %v1355_v20  ;;  %4851 = vrsqrt.f32 %v1329_v18  ;;  %v1316_v10 = vmul.f32 0.015625, %v1298_v8 }
 0x26c   : > { %v4844_v3 = vpop.eup %4843  ;;  %v1376_v32 = vmul.f32 %v5989_v51, %v1354_v39  ;;  %4853 = vrsqrt.f32 %v1328_v23 }
 0x26d   : > { %v4846_v61 = vpop.eup %4845  ;;  %v1399_v55 = vadd.f32 %v5998_v43, %v1377_v38  ;;  %v1357_v12 = vmul.f32 %v4844_v3, %v5916_v1  ;;  %v1331_v1 = vadd.f32 1e-05, %v1315_v26  ;;  %v1301_v58 = vpop.xlane.xlu1 %1300  ;;  %v1332_v11 = vadd.f32 1e-05, %v1316_v10 }
 0x26e   : > { %v1398_v54 = vadd.f32 %v5998_v43, %v1376_v32  ;;  %v1356_v33 = vmul.f32 %v4846_v61, %v5913_v63  ;;  %v1317_v9 = vmul.f32 0.015625, %v1301_v58 }
 0x26f   : > { %v1379_v48 = vmul.f32 %v5989_v51, %v1357_v12  ;;  %4855 = vrsqrt.f32 %v1331_v1 }
 0x270   : > { %v1412_v13 = vpack.c.bf16 %v1399_v55, %v1398_v54  ;;  %v4848_v35 = vpop.eup %4847  ;;  %v1378_v52 = vmul.f32 %v5989_v51, %v1356_v33  ;;  %4857 = vrsqrt.f32 %v1330_v6  ;;  %v1426_v55 = vld [vmem:[%s7256_s8] sm:$0x3]  ;;  %s7264_s8 = sld [smem:[#allocation46_spill]] (!%p4230_p4) }
 0x271   : > { %4159 = vmatmul.mubr.msk.bf16.gmra.mrb[4].mxu0 %vm1156_vm1, %v1411_v37  ;;  %v4850_v60 = vpop.eup %4849  ;;  %v1401_v0 = vadd.f32 %v5998_v43, %v1379_v48  ;;  %v1359_v63 = vmul.f32 %v4848_v35, %v5928_v42  ;;  %v1333_v42 = vadd.f32 1e-05, %v1317_v9 }
 0x272   : > { %1554 = vmatprep.mubr.bf16.mxu0 %v5262_v57  ;;  %v1400_v4 = vadd.f32 %v5998_v43, %v1378_v52  ;;  %v1358_v19 = vmul.f32 %v4850_v60, %v5925_v2 }
 0x273   : > { %v1381_v14 = vmul.f32 %v5989_v51, %v1359_v63  ;;  %4859 = vrsqrt.f32 %v1333_v42 }
 0x274   : > { %v1413_v59 = vpack.c.bf16 %v1401_v0, %v1400_v4  ;;  %v1380_v5 = vmul.f32 %v5989_v51, %v1358_v19  ;;  %4861 = vrsqrt.f32 %v1332_v11 }
 0x275   : > { %v4852_v15 = vpop.eup %4851  ;;  %v1403_v30 = vadd.f32 %v5998_v43, %v1381_v14 }
 0x276   : > { %v4854_v16 = vpop.eup %4853  ;;  %v1361_v2 = vmul.f32 %v4852_v15, %v5940_v62  ;;  %v1402_v25 = vadd.f32 %v5998_v43, %v1380_v5 }
 0x277   : > { %v1360_v17 = vmul.f32 %v4854_v16, %v5937_v24 }
 0x278   : > { %v1414_v47 = vpack.c.bf16 %v1403_v30, %v1402_v25  ;;  %v1383_v46 = vmul.f32 %v5989_v51, %v1361_v2 }
 0x279   : > { %4160 = vmatmul.mubr.msk.bf16.gmra.mrb[8].mxu0 %vm1156_vm1, %v1412_v13  ;;  %v4856_v45 = vpop.eup %4855  ;;  %v1382_v41 = vmul.f32 %v5989_v51, %v1360_v17 }
 0x27a   : > { %1564 = vmatprep.mubr.bf16.mxu0 %v5262_v57  ;;  %v4858_v36 = vpop.eup %4857  ;;  %v1405_v62 = vadd.f32 %v5998_v43, %v1383_v46  ;;  %v1363_v40 = vmul.f32 %v4856_v45, %v5952_v31 }
 0x27b   : > { %v1404_v56 = vadd.f32 %v5998_v43, %v1382_v41  ;;  %v1362_v24 = vmul.f32 %v4858_v36, %v5949_v49 }
 0x27c   : > { %v1385_v29 = vmul.f32 %v5989_v51, %v1363_v40 }
 0x27d   : > { %v1415_v20 = vpack.c.bf16 %v1405_v62, %v1404_v56  ;;  %v4860_v7 = vpop.eup %4859  ;;  %v1384_v53 = vmul.f32 %v5989_v51, %v1362_v24 }
 0x27e   : > { %v4862_v39 = vpop.eup %4861  ;;  %v1407_v44 = vadd.f32 %v5998_v43, %v1385_v29  ;;  %v1365_v31 = vmul.f32 %v4860_v7, %v5964_v21  ;;  %v1428_v21 = vlaneseq }
 0x27f   : > { %v1406_v37 = vadd.f32 %v5998_v43, %v1384_v53  ;;  %v1364_v49 = vmul.f32 %v4862_v39, %v5961_v22 }
 0x280   : > { %v1387_v3 = vmul.f32 %v5989_v51, %v1365_v31  ;;  %v6060_v28 = vshrl.u32 %v1428_v21, 7 }
 0x281   : > { %4161 = vmatmul.mubr.msk.bf16.gmra.mrb[12].mxu0 %vm1156_vm1, %v1413_v59  ;;  %v1416_v38 = vpack.c.bf16 %v1407_v44, %v1406_v37  ;;  %v1386_v34 = vmul.f32 %v5989_v51, %v1364_v49 }
 0x282   : > { %1574 = vmatprep.mubr.bf16.mxu0 %v5262_v57  ;;  %v1409_v32 = vadd.f32 %v5998_v43, %v1387_v3  ;;  %v1430_v22 = vsub.s32 0, %v6060_v28  ;;  %v1434_v12 = vsub.s32 1, %v6060_v28 }
 0x283   : > { %v1408_v61 = vadd.f32 %v5998_v43, %v1386_v34 }
 0x284   : > { %v6067_v51 = vrot.slane %v1426_v55, %v1430_v22  ;;  %v6071_v27 = vrot.slane %v1426_v55, %v1434_v12 }
 0x285   : > { %v1417_v18 = vpack.c.bf16 %v1409_v32, %v1408_v61 }
 0x289   : > { %4162 = vmatmul.mubr.msk.bf16.gmra.mrb[16].mxu0 %vm1156_vm1, %v1414_v47 }
 0x28a   : > { %1584 = vmatprep.mubr.bf16.mxu0 %v5262_v57 }
 0x291   : > { %4163 = vmatmul.mubr.msk.bf16.gmra.mrb[20].mxu0 %vm1156_vm1, %v1415_v20 }
 0x292   : > { %1594 = vmatprep.mubr.bf16.mxu0 %v5262_v57 }
 0x299   : > { %4164 = vmatmul.mubr.msk.bf16.gmra.mrb[24].mxu0 %vm1156_vm1, %v1416_v38 }
 0x29a   : > { %1604 = vmatprep.mubr.bf16.mxu0 %v5262_v57 }
 0x2a1   : > { %4165 = vmatmul.mubr.msk.bf16.gmra.mrb[28].mxu0 %vm1156_vm1, %v1417_v18 }
 0x33c   : > { %v1536_v23 = vpop.f32.mrb[0].mxu0 }
 0x33d   : > { %v1538_v43 = vpop.f32.mrb[1].mxu0  ;;  %v1537_v33 = vadd.f32 %v1536_v23, %v6067_v51 }
 0x33e   : > { %v1540_v54 = vpop.f32.mrb[2].mxu0  ;;  %v1539_v48 = vadd.f32 %v1538_v43, %v6071_v27 }
 0x33f   : > { %v1541_v26 = vadd.f32 %v1540_v54, %v6067_v51  ;;  %v1542_v13 = vpop.f32.mrb[3].mxu0 }
 0x340   : > { %v1543_v35 = vadd.f32 %v1542_v13, %v6071_v27 }
 0x341   : > { %v6077_v50 = vpack.c.bf16 %v1541_v26, %v1537_v33 }
 0x342   : > { %v1616_v52 = vpack.c.bf16 %v1543_v35, %v1539_v48 }
 0x343   : > { %1695 = vrot.lane.b32.xlu0 %v6077_v50, %s5263_s10  ;;  %4486 = vmatprep.mubr.msk.bf16.mxu1 %vm1711_vm2, %v6077_v50 }
 0x344   : > { %1632 = vst.msk [vmem:[#allocation4 + $0x8] sm:$0xff] %vm1156_vm1, %v1616_v52  ;;  %v1546_v60 = vpop.f32.mrb[4].mxu0 }
 0x345   : > { %v1548_v1 = vpop.f32.mrb[5].mxu0  ;;  %v1547_v0 = vadd.f32 %v1546_v60, %v6067_v51 }
 0x346   : > { %v1550_v58 = vpop.f32.mrb[6].mxu0  ;;  %v1549_v8 = vadd.f32 %v1548_v1, %v6071_v27 }
 0x347   : > { %v1551_v63 = vadd.f32 %v1550_v58, %v6067_v51  ;;  %v1552_v6 = vpop.f32.mrb[7].mxu0 }
 0x348   : > { %v1553_v4 = vadd.f32 %v1552_v6, %v6071_v27 }
 0x349   : > { %v6088_v19 = vpack.c.bf16 %v1551_v63, %v1547_v0 }
 0x34a   : > { %v1618_v9 = vpack.c.bf16 %v1553_v4, %v1549_v8 }
 0x34b   : > { %v6090_v59 = vld [vmem:[#allocation4 + $0x8] sm:$0xff]  ;;  %1697 = vrot.lane.b32.xlu1 %v6088_v19, %s5263_s10 }
 0x34c   : > { %1634 = vst.msk [vmem:[#allocation4 + $0x18] sm:$0xff] %vm1156_vm1, %v1618_v9  ;;  %v1556_v14 = vpop.f32.mrb[8].mxu0  ;;  %4502 = vmatprep.subr.bf16.mxu0 %v6090_v59 }
 0x34d   : > { %v1558_v15 = vpop.f32.mrb[9].mxu0  ;;  %4503 = vmatpush3.bf16.msra.mxu0 %v6090_v59  ;;  %v1557_v5 = vadd.f32 %v1556_v14, %v6067_v51 }
 0x34e   : > { %v1560_v10 = vpop.f32.mrb[10].mxu0  ;;  %v1559_v30 = vadd.f32 %v1558_v15, %v6071_v27 }
 0x34f   : > { %v1561_v16 = vadd.f32 %v1560_v10, %v6067_v51  ;;  %v1562_v42 = vpop.f32.mrb[11].mxu0 }
 0x350   : > { %v1563_v2 = vadd.f32 %v1562_v42, %v6071_v27 }
 0x351   : > { %v6101_v11 = vpack.c.bf16 %v1561_v16, %v1557_v5 }
 0x352   : > { %v1620_v25 = vpack.c.bf16 %v1563_v2, %v1559_v30 }
 0x353   : > { %v6103_v17 = vld [vmem:[#allocation4 + $0x18] sm:$0xff]  ;;  %1699 = vrot.lane.b32.xlu1 %v6101_v11, %s5263_s10 }
 0x354   : > { %1636 = vst.msk [vmem:[#allocation4 + $0x28] sm:$0xff] %vm1156_vm1, %v1620_v25  ;;  %v1566_v47 = vpop.f32.mrb[12].mxu0  ;;  %4504 = vmatprep.subr.bf16.mxu0 %v6103_v17 }
 0x355   : > { %v1568_v46 = vpop.f32.mrb[13].mxu0  ;;  %4505 = vmatpush3.bf16.msra.mxu0 %v6103_v17  ;;  %v1567_v41 = vadd.f32 %v1566_v47, %v6067_v51 }
 0x356   : > { %v1570_v45 = vpop.f32.mrb[14].mxu0  ;;  %v1569_v40 = vadd.f32 %v1568_v46, %v6071_v27 }
 0x357   : > { %v1571_v36 = vadd.f32 %v1570_v45, %v6067_v51  ;;  %v1572_v62 = vpop.f32.mrb[15].mxu0 }
 0x358   : > { %v1573_v56 = vadd.f32 %v1572_v62, %v6071_v27 }
 0x359   : > { %v6114_v24 = vpack.c.bf16 %v1571_v36, %v1567_v41 }
 0x35a   : > { %v1622_v20 = vpack.c.bf16 %v1573_v56, %v1569_v40 }
 0x35b   : > { %v6116_v29 = vld [vmem:[#allocation4 + $0x28] sm:$0xff]  ;;  %1701 = vrot.lane.b32.xlu1 %v6114_v24, %s5263_s10 }
 0x35c   : > { %1638 = vst.msk [vmem:[#allocation4 + $0x38] sm:$0xff] %vm1156_vm1, %v1622_v20  ;;  %v1576_v7 = vpop.f32.mrb[16].mxu0  ;;  %4506 = vmatprep.subr.bf16.mxu0 %v6116_v29 }
 0x35d   : > { %v1578_v53 = vpop.f32.mrb[17].mxu0  ;;  %4507 = vmatpush3.bf16.msra.mxu0 %v6116_v29  ;;  %v1577_v44 = vadd.f32 %v1576_v7, %v6067_v51 }
 0x35e   : > { %v1580_v39 = vpop.f32.mrb[18].mxu0  ;;  %v1579_v49 = vadd.f32 %v1578_v53, %v6071_v27 }
 0x35f   : > { %v1581_v31 = vadd.f32 %v1580_v39, %v6067_v51  ;;  %v1582_v37 = vpop.f32.mrb[19].mxu0 }
 0x360   : > { %v1583_v38 = vadd.f32 %v1582_v37, %v6071_v27 }
 0x361   : > { %v6127_v3 = vpack.c.bf16 %v1581_v31, %v1577_v44 }
 0x362   : > { %v1624_v34 = vpack.c.bf16 %v1583_v38, %v1579_v49 }
 0x363   : > { %v6129_v32 = vld [vmem:[#allocation4 + $0x38] sm:$0xff]  ;;  %1703 = vrot.lane.b32.xlu0 %v6127_v3, %s5263_s10 }
 0x364   : > { %1640 = vst.msk [vmem:[#allocation4 + $0x48] sm:$0xff] %vm1156_vm1, %v1624_v34  ;;  %v1586_v61 = vpop.f32.mrb[20].mxu0  ;;  %4508 = vmatprep.subr.bf16.mxu0 %v6129_v32 }
 0x365   : > { %v1588_v18 = vpop.f32.mrb[21].mxu0  ;;  %4509 = vmatpush3.bf16.msra.mxu0 %v6129_v32  ;;  %v1587_v55 = vadd.f32 %v1586_v61, %v6067_v51 }
 0x366   : > { %v1590_v21 = vpop.f32.mrb[22].mxu0  ;;  %v1589_v54 = vadd.f32 %v1588_v18, %v6071_v27 }
 0x367   : > { %v1591_v23 = vadd.f32 %v1590_v21, %v6067_v51  ;;  %v1592_v43 = vpop.f32.mrb[23].mxu0 }
 0x368   : > { %v1593_v33 = vadd.f32 %v1592_v43, %v6071_v27 }
 0x369   : > { %v6140_v26 = vpack.c.bf16 %v1591_v23, %v1587_v55 }
 0x36a   : > { %v1626_v13 = vpack.c.bf16 %v1593_v33, %v1589_v54 }
 0x36b   : > { %v1659_v48 = vld [vmem:[#allocation4 + $0x48] sm:$0xff]  ;;  %1705 = vrot.lane.b32.xlu1 %v6140_v26, %s5263_s10 }
 0x36c   : > { %1642 = vst.msk [vmem:[#allocation4 + $0x58] sm:$0xff] %vm1156_vm1, %v1626_v13  ;;  %v1596_v35 = vpop.f32.mrb[24].mxu0  ;;  %4510 = vmatprep.subr.bf16.mxu0 %v1659_v48 }
 0x36d   : > { %v1598_v52 = vpop.f32.mrb[25].mxu0  ;;  %4511 = vmatpush3.bf16.msra.mxu0 %v1659_v48  ;;  %v1597_v1 = vadd.f32 %v1596_v35, %v6067_v51 }
 0x36e   : > { %v1600_v60 = vpop.f32.mrb[26].mxu0  ;;  %v1599_v63 = vadd.f32 %v1598_v52, %v6071_v27 }
 0x36f   : > { %v1601_v58 = vadd.f32 %v1600_v60, %v6067_v51  ;;  %v1602_v0 = vpop.f32.mrb[27].mxu0 }
 0x370   : > { %v1603_v6 = vadd.f32 %v1602_v0, %v6071_v27 }
 0x371   : > { %v6149_v8 = vpack.c.bf16 %v1601_v58, %v1597_v1  ;;  %v1664_v58 = vld [vmem:[#allocation3 + $0x8] sm:$0xff] }
 0x372   : > { %v1628_v4 = vpack.c.bf16 %v1603_v6, %v1599_v63  ;;  %v1673_v0 = vunpack.c.l.bf16 %v1664_v58  ;;  %v1663_v63 = vld [vmem:[#allocation3] sm:$0xff] }
 0x373   : > { %v1660_v9 = vld [vmem:[#allocation4 + $0x58] sm:$0xff]  ;;  %1707 = vrot.lane.b32.xlu0 %v6149_v8, %s5263_s10 }
 0x374   : > { %1644 = vst.msk [vmem:[#allocation4 + $0x68] sm:$0xff] %vm1156_vm1, %v1628_v4  ;;  %v1606_v14 = vpop.f32.mrb[28].mxu0  ;;  %4512 = vmatprep.subr.bf16.mxu0 %v1660_v9 }
 0x375   : > { %v1608_v15 = vpop.f32.mrb[29].mxu0  ;;  %4513 = vmatpush3.bf16.msra.mxu0 %v1660_v9  ;;  %v1607_v5 = vadd.f32 %v1606_v14, %v6067_v51 }
 0x376   : > { %v1610_v10 = vpop.f32.mrb[30].mxu0  ;;  %v1609_v30 = vadd.f32 %v1608_v15, %v6071_v27 }
 0x377   : > { %v1611_v16 = vadd.f32 %v1610_v10, %v6067_v51  ;;  %v1612_v42 = vpop.f32.mrb[31].mxu0  ;;  %2187 = vrot.lane.b32.xlu0 %v6077_v50, %s5264_s29 }
 0x378   : > { %v1613_v2 = vadd.f32 %v1612_v42, %v6071_v27  ;;  %v1674_v42 = vunpack.c.h.bf16 %v1664_v58 }
 0x379   : > { %v6160_v25 = vpack.c.bf16 %v1611_v16, %v1607_v5 }
 0x37a   : > { %v1630_v47 = vpack.c.bf16 %v1613_v2, %v1609_v30  ;;  %v1666_v30 = vld [vmem:[#allocation3 + $0x18] sm:$0xff] }
 0x37b   : > { %v6162_v46 = vld [vmem:[#allocation4 + $0x68] sm:$0xff]  ;;  %2191 = vrot.lane.b32.xlu0 %v6101_v11, %s5264_s29  ;;  %1709 = vrot.lane.b32.xlu1 %v6160_v25, %s5263_s10  ;;  %v1678_v2 = vunpack.c.h.bf16 %v1666_v30 }
 0x37c   : > { %1646 = vst.msk [vmem:[#allocation4 + $0x78] sm:$0xff] %vm1156_vm1, %v1630_v47  ;;  %4514 = vmatprep.subr.bf16.mxu0 %v6162_v46 }
 0x37d   : > { %4515 = vmatpush3.bf16.msra.mxu0 %v6162_v46 }
 0x37f   : > { %2195 = vrot.lane.b32.xlu0 %v6127_v3, %s5264_s29  ;;  %2189 = vrot.lane.b32.xlu1 %v6088_v19, %s5264_s29 }
 0x383   : > { %v6175_v51 = vld [vmem:[#allocation4 + $0x78] sm:$0xff]  ;;  %2199 = vrot.lane.b32.xlu0 %v6149_v8, %s5264_s29  ;;  %2193 = vrot.lane.b32.xlu1 %v6114_v24, %s5264_s29 }
 0x384   : > { %4516 = vmatprep.subr.bf16.mxu0 %v6175_v51 }
 0x385   : > { %4517 = vmatpush3.bf16.msra.mxu0 %v6175_v51 }
 0x387   : > { %2171 = vrot.lane.b32.xlu0 %v6077_v50, %s5265_s0  ;;  %2197 = vrot.lane.b32.xlu1 %v6140_v26, %s5264_s29 }
 0x38b   : > { %2175 = vrot.lane.b32.xlu0 %v6101_v11, %s5265_s0  ;;  %2201 = vrot.lane.b32.xlu1 %v6160_v25, %s5264_s29 }
 0x38f   : > { %2179 = vrot.lane.b32.xlu0 %v6127_v3, %s5265_s0  ;;  %2173 = vrot.lane.b32.xlu1 %v6088_v19, %s5265_s0 }
 0x393   : > { %2183 = vrot.lane.b32.xlu0 %v6149_v8, %s5265_s0  ;;  %2177 = vrot.lane.b32.xlu1 %v6114_v24, %s5265_s0 }
 0x397   : > { %2508 = vrot.lane.b32.xlu0 %v6090_v59, %s5265_s0  ;;  %2181 = vrot.lane.b32.xlu1 %v6140_v26, %s5265_s0 }
 0x39b   : > { %2512 = vrot.lane.b32.xlu0 %v6116_v29, %s5265_s0  ;;  %2185 = vrot.lane.b32.xlu1 %v6160_v25, %s5265_s0 }
 0x39f   : > { %2514 = vrot.lane.b32.xlu0 %v6129_v32, %s5265_s0  ;;  %2510 = vrot.lane.b32.xlu1 %v6103_v17, %s5265_s0 }
 0x3a3   : > { %2516 = vrot.lane.b32.xlu0 %v1659_v48, %s5265_s0  ;;  %2518 = vrot.lane.b32.xlu1 %v1660_v9, %s5265_s0  ;;  %v1671_v9 = vunpack.c.l.bf16 %v1663_v63 }
 0x3b5   : > { %v1696_v27 = vpop.permute.xlu0 %1695 }
 0x3b6   : > { %4658 = vmatprep.subr.msk.bf16.mxu1 %vm1711_vm2, %v1696_v27  ;;  %v1737_v50 = vsel %vm1711_vm2, %v1696_v27, 0  ;;  %v1677_v27 = vunpack.c.l.bf16 %v1666_v30 }
 0x3b7   : > { %4471 = vmatpush3.bf16.xpose.msra.mxu1 %v1737_v50 }
 0x3bd   : > { %v1698_v59 = vpop.permute.xlu1 %1697 }
 0x3be   : > { %4659 = vmatprep.subr.msk.bf16.mxu1 %vm1711_vm2, %v1698_v59  ;;  %v1740_v45 = vsel %vm1711_vm2, %v1698_v59, 0  ;;  %v1665_v59 = vld [vmem:[#allocation3 + $0x10] sm:$0xff] }
 0x3bf   : > { %4473 = vmatpush3.bf16.xpose.msra.mxu1 %v1740_v45 }
 0x3c5   : > { %v1700_v41 = vpop.permute.xlu1 %1699 }
 0x3c6   : > { %4660 = vmatprep.subr.msk.bf16.mxu1 %vm1711_vm2, %v1700_v41  ;;  %v1743_v17 = vsel %vm1711_vm2, %v1700_v41, 0 }
 0x3c7   : > { %4475 = vmatpush3.bf16.xpose.msra.mxu1 %v1743_v17  ;;  %v1676_v17 = vunpack.c.h.bf16 %v1665_v59 }
 0x3cd   : > { %v1702_v36 = vpop.permute.xlu1 %1701 }
 0x3ce   : > { %4661 = vmatprep.subr.msk.bf16.mxu1 %vm1711_vm2, %v1702_v36  ;;  %v1746_v62 = vsel %vm1711_vm2, %v1702_v36, 0 }
 0x3cf   : > { %4477 = vmatpush3.bf16.xpose.msra.mxu1 %v1746_v62 }
 0x3d5   : > { %v1704_v40 = vpop.permute.xlu0 %1703 }
 0x3d6   : > { %4662 = vmatprep.subr.msk.bf16.mxu1 %vm1711_vm2, %v1704_v40  ;;  %v1749_v56 = vsel %vm1711_vm2, %v1704_v40, 0  ;;  %v1675_v40 = vunpack.c.l.bf16 %v1665_v59 }
 0x3d7   : > { %4479 = vmatpush3.bf16.xpose.msra.mxu1 %v1749_v56  ;;  %v1668_v56 = vld [vmem:[#allocation3 + $0x28] sm:$0xff] }
 0x3dd   : > { %v1706_v20 = vpop.permute.xlu1 %1705 }
 0x3de   : > { %4663 = vmatprep.subr.msk.bf16.mxu1 %vm1711_vm2, %v1706_v20  ;;  %v1752_v29 = vsel %vm1711_vm2, %v1706_v20, 0 }
 0x3df   : > { %4481 = vmatpush3.bf16.xpose.msra.mxu1 %v1752_v29  ;;  %v1682_v29 = vunpack.c.h.bf16 %v1668_v56 }
 0x3e5   : > { %v1708_v7 = vpop.permute.xlu0 %1707 }
 0x3e6   : > { %4664 = vmatprep.subr.msk.bf16.mxu1 %vm1711_vm2, %v1708_v7  ;;  %v1755_v53 = vsel %vm1711_vm2, %v1708_v7, 0 }
 0x3e7   : > { %4483 = vmatpush3.bf16.xpose.msra.mxu1 %v1755_v53 }
 0x3e9   : > { %v2188_v39 = vpop.permute.xlu0 %2187 }
 0x3ea   : > { %v2228_v34 = vsel %vm1711_vm2, %v2188_v39, 0 }
 0x3ed   : > { %v1710_v44 = vpop.permute.xlu1 %1709  ;;  %v2192_v31 = vpop.permute.xlu0 %2191 }
 0x3ee   : > { %4665 = vmatprep.subr.msk.bf16.mxu1 %vm1711_vm2, %v1710_v44  ;;  %v1758_v37 = vsel %vm1711_vm2, %v1710_v44, 0 }
 0x3ef   : > { %4485 = vmatpush3.bf16.xpose.msra.mxu1 %v1758_v37 }
 0x3f0   : > { %4666 = vmatprep.subr.msk.bf16.mxu1 %vm1711_vm2, %v2188_v39  ;;  %v1681_v39 = vunpack.c.l.bf16 %v1668_v56 }
 0x3f1   : > { %v2196_v49 = vpop.permute.xlu0 %2195  ;;  %v2190_v32 = vpop.permute.xlu1 %2189 }
 0x3f2   : > { %v2231_v21 = vsel %vm1711_vm2, %v2190_v32, 0  ;;  %v2240_v43 = vsel %vm1711_vm2, %v2196_v49, 0 }
 0x3f5   : > { %v2200_v38 = vpop.permute.xlu0 %2199  ;;  %v2194_v23 = vpop.permute.xlu1 %2193 }
 0x3f6   : > { %4487 = vmatmul.mubr.msk.bf16.vlgmr.msra.gmra.mrb[0].mxu1 %vm1711_vm2, %v6088_v19 }
 0x3f7   : > { %4490 = vmatprep.mubr.msk.bf16.mxu1 %vm1711_vm2, %v6101_v11  ;;  %4535 = vmatpush3.bf16.xpose.msra.mxu1 %v2228_v34  ;;  %v2234_v11 = vsel %vm1711_vm2, %v2192_v31, 0 }
 0x3f8   : > { %4667 = vmatprep.subr.msk.bf16.mxu1 %vm1711_vm2, %v2190_v32 }
 0x3f9   : > { %v2172_v61 = vpop.permute.xlu0 %2171  ;;  %v2198_v54 = vpop.permute.xlu1 %2197 }
 0x3fa   : > { %v2243_v33 = vsel %vm1711_vm2, %v2198_v54, 0 }
 0x3fd   : > { %v2176_v18 = vpop.permute.xlu0 %2175  ;;  %v2202_v13 = vpop.permute.xlu1 %2201 }
 0x3fe   : > { %4491 = vmatmul.mubr.msk.bf16.gmra.mrb[4].mxu1 %vm1711_vm2, %v6114_v24  ;;  %v2249_v48 = vsel %vm1711_vm2, %v2202_v13, 0 }
 0x3ff   : > { %4494 = vmatprep.mubr.msk.bf16.mxu1 %vm1711_vm2, %v6127_v3  ;;  %4537 = vmatpush3.bf16.xpose.msra.mxu1 %v2231_v21  ;;  %v2237_v3 = vsel %vm1711_vm2, %v2194_v23, 0 }
 0x400   : > { %4668 = vmatprep.subr.msk.bf16.mxu1 %vm1711_vm2, %v2192_v31  ;;  %v1667_v31 = vld [vmem:[#allocation3 + $0x20] sm:$0xff] }
 0x401   : > { %v2180_v19 = vpop.permute.xlu0 %2179  ;;  %v2174_v35 = vpop.permute.xlu1 %2173 }
 0x405   : > { %v2184_v55 = vpop.permute.xlu0 %2183  ;;  %v2178_v52 = vpop.permute.xlu1 %2177 }
 0x406   : > { %4495 = vmatmul.mubr.msk.bf16.gmra.mrb[8].mxu1 %vm1711_vm2, %v6140_v26  ;;  %v2246_v26 = vsel %vm1711_vm2, %v2200_v38, 0 }
 0x407   : > { %4498 = vmatprep.mubr.msk.bf16.mxu1 %vm1711_vm2, %v6149_v8  ;;  %4539 = vmatpush3.bf16.xpose.msra.mxu1 %v2234_v11  ;;  %v1672_v8 = vunpack.c.h.bf16 %v1663_v63 }
 0x408   : > { %4669 = vmatprep.subr.msk.bf16.mxu1 %vm1711_vm2, %v2194_v23 }
 0x409   : > { %v6248_v24 = vpop.permute.xlu0 %2508  ;;  %v2182_v60 = vpop.permute.xlu1 %2181 }
 0x40a   : > { %4566 = vmatprep.subr.bf16.mxu0 %v6248_v24 }
 0x40d   : > { %v2186_v1 = vpop.permute.xlu1 %2185 }
 0x40e   : > { %4499 = vmatmul.mubr.msk.bf16.gmra.mrb[12].mxu1 %vm1711_vm2, %v6160_v25 }
 0x40f   : > { %4541 = vmatpush3.bf16.xpose.msra.mxu1 %v2237_v3  ;;  %4550 = vmatprep.mubr.msk.bf16.mxu1 %vm1711_vm2, %v2172_v61  ;;  %v1679_v61 = vunpack.c.l.bf16 %v1667_v31 }
 0x410   : > { %4670 = vmatprep.subr.msk.bf16.mxu1 %vm1711_vm2, %v2196_v49 }
 0x417   : > { %4543 = vmatpush3.bf16.xpose.msra.mxu1 %v2240_v43  ;;  %v1669_v43 = vld [vmem:[#allocation3 + $0x30] sm:$0xff] }
 0x418   : > { %4671 = vmatprep.subr.msk.bf16.mxu1 %vm1711_vm2, %v2198_v54 }
 0x41f   : > { %4545 = vmatpush3.bf16.xpose.msra.mxu1 %v2243_v33 }
 0x420   : > { %4672 = vmatprep.subr.msk.bf16.mxu1 %vm1711_vm2, %v2200_v38  ;;  %v1680_v38 = vunpack.c.h.bf16 %v1667_v31 }
 0x427   : > { %4547 = vmatpush3.bf16.xpose.msra.mxu1 %v2246_v26  ;;  %v1684_v26 = vunpack.c.h.bf16 %v1669_v43 }
 0x428   : > { %4673 = vmatprep.subr.msk.bf16.mxu1 %vm1711_vm2, %v2202_v13 }
 0x42f   : > { %4549 = vmatpush3.bf16.xpose.msra.mxu1 %v2249_v48 }
 0x436   : > { %4551 = vmatmul.mubr.msk.bf16.vlgmr.msra.gmra.mrb[16].mxu1 %vm1711_vm2, %v2174_v35  ;;  %v1683_v35 = vunpack.c.l.bf16 %v1669_v43 }
 0x437   : > { %4554 = vmatprep.mubr.msk.bf16.mxu1 %vm1711_vm2, %v2176_v18  ;;  %v1670_v18 = vld [vmem:[#allocation3 + $0x38] sm:$0xff] }
 0x438   : > { %v1685_v23 = vunpack.c.l.bf16 %v1670_v18 }
 0x43e   : > { %4555 = vmatmul.mubr.msk.bf16.gmra.mrb[20].mxu1 %vm1711_vm2, %v2178_v52 }
 0x43f   : > { %4558 = vmatprep.mubr.msk.bf16.mxu1 %vm1711_vm2, %v2180_v19  ;;  %v1686_v19 = vunpack.c.h.bf16 %v1670_v18 }
 0x446   : > { %4559 = vmatmul.mubr.msk.bf16.gmra.mrb[24].mxu1 %vm1711_vm2, %v2182_v60 }
 0x447   : > { %4562 = vmatprep.mubr.msk.bf16.mxu1 %vm1711_vm2, %v2184_v55 }
 0x44e   : > { %4563 = vmatmul.mubr.msk.bf16.gmra.mrb[28].mxu1 %vm1711_vm2, %v2186_v1  ;;  %v2140_v1 = vld [vmem:[#allocation3 + $0x48] sm:$0xff] }
 0x44f   : > { %3256 = vmatprep.mubr.bf16.mxu1 %v5262_v57  ;;  %v2149_v58 = vunpack.c.l.bf16 %v2140_v1  ;;  %v2150_v63 = vunpack.c.h.bf16 %v2140_v1 }
 0x4c9   : > { %v4488_v6 = vpop.f32.mrb[0].mxu1 }
 0x4ca   : > { %v6271_v4 = vadd.f32 %v4488_v6, %v1673_v0  ;;  %v1794_v14 = vpop.f32.mrb[1].mxu1  ;;  %v2139_v0 = vld [vmem:[#allocation3 + $0x40] sm:$0xff] }
 0x4cb   : > { %v4489_v15 = vpop.f32.mrb[2].mxu1  ;;  %v6276_v16 = vadd.f32 %v1794_v14, %v1671_v9  ;;  %v2147_v9 = vunpack.c.l.bf16 %v2139_v0  ;;  %v2148_v30 = vunpack.c.h.bf16 %v2139_v0  ;;  %v2145_v0 = vld [vmem:[#allocation3 + $0x70] sm:$0xff] }
 0x4cc   : > { %1861 = vmax.xlane.f32.xlu0 %v6271_v4  ;;  %v1797_v10 = vpop.f32.mrb[3].mxu1  ;;  %v6280_v47 = vadd.f32 %v4489_v15, %v1674_v42 }
 0x4cd   : > { %v6274_v5 = vadd.f32 %v1797_v10, %v1672_v8  ;;  %v2142_v10 = vld [vmem:[#allocation3 + $0x58] sm:$0xff] }
 0x4cf   : > { %1859 = vmax.xlane.f32.xlu1 %v6274_v5 }
 0x4d0   : > { %1857 = vmax.xlane.f32.xlu0 %v6276_v16 }
 0x4d1   : > { %v4492_v25 = vpop.f32.mrb[4].mxu1 }
 0x4d2   : > { %v1810_v50 = vpop.f32.mrb[5].mxu1  ;;  %v6285_v62 = vadd.f32 %v4492_v25, %v1677_v27  ;;  %v2153_v27 = vunpack.c.l.bf16 %v2142_v10 }
 0x4d3   : > { %v4493_v45 = vpop.f32.mrb[6].mxu1  ;;  %v6291_v53 = vadd.f32 %v1810_v50, %v1675_v40  ;;  %v2141_v50 = vld [vmem:[#allocation3 + $0x50] sm:$0xff] }
 0x4d4   : > { %v6282_v41 = vadd.f32 %v4493_v45, %v1678_v2  ;;  %v1813_v36 = vpop.f32.mrb[7].mxu1  ;;  %1863 = vmax.xlane.f32.xlu0 %v6280_v47  ;;  %v2154_v45 = vunpack.c.h.bf16 %v2142_v10  ;;  %v2151_v40 = vunpack.c.l.bf16 %v2141_v50 }
 0x4d5   : > { %v6288_v20 = vadd.f32 %v1813_v36, %v1676_v17 }
 0x4d6   : > { %1871 = vmax.xlane.f32.xlu1 %v6282_v41 }
 0x4d8   : > { %1869 = vmax.xlane.f32.xlu0 %v6285_v62 }
 0x4d9   : > { %v4496_v7 = vpop.f32.mrb[8].mxu1 }
 0x4da   : > { %v1826_v44 = vpop.f32.mrb[9].mxu1  ;;  %1867 = vmax.xlane.f32.xlu1 %v6288_v20  ;;  %v6297_v32 = vadd.f32 %v4496_v7, %v1681_v39  ;;  %v2144_v7 = vld [vmem:[#allocation3 + $0x68] sm:$0xff] }
 0x4db   : > { %v4497_v37 = vpop.f32.mrb[10].mxu1  ;;  %v6303_v11 = vadd.f32 %v1826_v44, %v1679_v61  ;;  %v2152_v44 = vunpack.c.h.bf16 %v2141_v50  ;;  %v2158_v18 = vunpack.c.h.bf16 %v2144_v7 }
 0x4dc   : > { %v6294_v49 = vadd.f32 %v4497_v37, %v1682_v29  ;;  %v1829_v34 = vpop.f32.mrb[11].mxu1  ;;  %1865 = vmax.xlane.f32.xlu0 %v6291_v53 }
 0x4dd   : > { %v6300_v21 = vadd.f32 %v1829_v34, %v1680_v38  ;;  %v2157_v38 = vunpack.c.l.bf16 %v2144_v7  ;;  %v2143_v34 = vld [vmem:[#allocation3 + $0x60] sm:$0xff] }
 0x4de   : > { %1879 = vmax.xlane.f32.xlu1 %v6294_v49 }
 0x4e0   : > { %1877 = vmax.xlane.f32.xlu0 %v6297_v32 }
 0x4e1   : > { %v4500_v55 = vpop.f32.mrb[12].mxu1 }
 0x4e2   : > { %v1842_v3 = vpop.f32.mrb[13].mxu1  ;;  %1875 = vmax.xlane.f32.xlu1 %v6300_v21  ;;  %v6309_v48 = vadd.f32 %v4500_v55, %v1685_v23  ;;  %v2155_v23 = vunpack.c.l.bf16 %v2143_v34 }
 0x4e3   : > { %v4501_v54 = vpop.f32.mrb[14].mxu1  ;;  %v6315_v60 = vadd.f32 %v1842_v3, %v1683_v35 }
 0x4e4   : > { %v6306_v33 = vadd.f32 %v4501_v54, %v1686_v19  ;;  %v1845_v13 = vpop.f32.mrb[15].mxu1  ;;  %1873 = vmax.xlane.f32.xlu0 %v6303_v11  ;;  %v2146_v54 = vld [vmem:[#allocation3 + $0x78] sm:$0xff] }
 0x4e5   : > { %v6312_v52 = vadd.f32 %v1845_v13, %v1684_v26  ;;  %v2156_v13 = vunpack.c.h.bf16 %v2143_v34 }
 0x4e6   : > { %1887 = vmax.xlane.f32.xlu1 %v6306_v33 }
 0x4e8   : > { %1885 = vmax.xlane.f32.xlu0 %v6309_v48 }
 0x4ea   : > { %1883 = vmax.xlane.f32.xlu1 %v6312_v52 }
 0x4ec   : > { %1881 = vmax.xlane.f32.xlu0 %v6315_v60 }
 0x509   : > { %v4552_v6 = vpop.f32.mrb[16].mxu1 }
 0x50a   : > { %v6319_v8 = vadd.f32 %v4552_v6, %v2149_v58  ;;  %v2285_v14 = vpop.f32.mrb[17].mxu1  ;;  %v2161_v58 = vunpack.c.l.bf16 %v2146_v54  ;;  %v2162_v6 = vunpack.c.h.bf16 %v2146_v54 }
 0x50b   : > { %v4553_v15 = vpop.f32.mrb[18].mxu1  ;;  %v6324_v25 = vadd.f32 %v2285_v14, %v2147_v9 }
 0x50c   : > { %v6321_v42 = vadd.f32 %v4553_v15, %v2150_v63  ;;  %2352 = vmax.xlane.f32.xlu0 %v6319_v8  ;;  %v2288_v2 = vpop.f32.mrb[19].mxu1  ;;  %v2159_v15 = vunpack.c.l.bf16 %v2145_v0 }
 0x50d   : > { %v6327_v59 = vadd.f32 %v2288_v2, %v2148_v30 }
 0x50e   : > { %2354 = vmax.xlane.f32.xlu1 %v6321_v42 }
 0x510   : > { %2348 = vmax.xlane.f32.xlu0 %v6324_v25 }
 0x511   : > { %v4556_v17 = vpop.f32.mrb[20].mxu1 }
 0x512   : > { %v6330_v36 = vadd.f32 %v4556_v17, %v2153_v27  ;;  %2350 = vmax.xlane.f32.xlu1 %v6327_v59  ;;  %v2301_v56 = vpop.f32.mrb[21].mxu1  ;;  %v2160_v27 = vunpack.c.h.bf16 %v2145_v0 }
 0x513   : > { %v4557_v29 = vpop.f32.mrb[22].mxu1  ;;  %v6336_v37 = vadd.f32 %v2301_v56, %v2151_v40  ;;  %v6367_v40 = vpop.permute.xlu0 %2512 }
 0x514   : > { %v6333_v39 = vadd.f32 %v4557_v29, %v2154_v45  ;;  %2360 = vmax.xlane.f32.xlu0 %v6330_v36  ;;  %v2304_v31 = vpop.f32.mrb[23].mxu1  ;;  %v6371_v29 = vpop.permute.xlu1 %2510 }
 0x515   : > { %v6339_v61 = vadd.f32 %v2304_v31, %v2152_v44 }
 0x516   : > { %2362 = vmax.xlane.f32.xlu1 %v6333_v39 }
 0x517   : > { %v6369_v56 = vpop.permute.xlu0 %2514 }
 0x518   : > { %2356 = vmax.xlane.f32.xlu0 %v6336_v37  ;;  %v6375_v31 = vpop.permute.xlu1 %2518 }
 0x519   : > { %v4560_v19 = vpop.f32.mrb[24].mxu1 }
 0x51a   : > { %v6342_v55 = vadd.f32 %v4560_v19, %v2157_v38  ;;  %2358 = vmax.xlane.f32.xlu1 %v6339_v61  ;;  %v2317_v3 = vpop.f32.mrb[25].mxu1 }
 0x51b   : > { %v4561_v43 = vpop.f32.mrb[26].mxu1  ;;  %v6348_v1 = vadd.f32 %v2317_v3, %v2155_v23  ;;  %v6373_v7 = vpop.permute.xlu0 %2516 }
 0x51c   : > { %v6345_v26 = vadd.f32 %v4561_v43, %v2158_v18  ;;  %2368 = vmax.xlane.f32.xlu0 %v6342_v55  ;;  %v2320_v35 = vpop.f32.mrb[27].mxu1 }
 0x51d   : > { %v6351_v63 = vadd.f32 %v2320_v35, %v2156_v13 }
 0x51e   : > { %2370 = vmax.xlane.f32.xlu1 %v6345_v26 }
 0x520   : > { %2364 = vmax.xlane.f32.xlu0 %v6348_v1 }
 0x521   : > { %v4564_v9 = vpop.f32.mrb[28].mxu1 }
 0x522   : > { %v6354_v14 = vadd.f32 %v4564_v9, %v2161_v58  ;;  %2366 = vmax.xlane.f32.xlu1 %v6351_v63  ;;  %v2333_v10 = vpop.f32.mrb[29].mxu1 }
 0x523   : > { %v4565_v30 = vpop.f32.mrb[30].mxu1  ;;  %v6360_v45 = vadd.f32 %v2333_v10, %v2159_v15 }
 0x524   : > { %v6357_v2 = vadd.f32 %v4565_v30, %v2162_v6  ;;  %2376 = vmax.xlane.f32.xlu0 %v6354_v14  ;;  %v2336_v50 = vpop.f32.mrb[31].mxu1 }
 0x525   : > { %v6363_v17 = vadd.f32 %v2336_v50, %v2160_v27 }
 0x526   : > { %2378 = vmax.xlane.f32.xlu1 %v6357_v2 }
 0x528   : > { %2372 = vmax.xlane.f32.xlu0 %v6360_v45 }
 0x52a   : > { %2374 = vmax.xlane.f32.xlu1 %v6363_v17 }
 0x559   : > { %v1862_v44 = vpop.xlane.xlu0 %1861 }
 0x55a   : > { %v1891_v38 = vsub.f32 %v6271_v4, %v1862_v44 }
 0x55c   : > { %v1909_v34 = vmul.f32 1.442695, %v1891_v38  ;;  %v1860_v19 = vpop.xlane.xlu1 %1859 }
 0x55d   : > { %v1858_v18 = vpop.xlane.xlu0 %1857  ;;  %v1890_v43 = vsub.f32 %v6274_v5, %v1860_v19 }
 0x55e   : > { %4863 = vpow2.f32 %v1909_v34  ;;  %v1889_v23 = vsub.f32 %v6276_v16, %v1858_v18 }
 0x55f   : > { %v1907_v0 = vmul.f32 1.442695, %v1890_v43 }
 0x560   : > { %v1905_v3 = vmul.f32 1.442695, %v1889_v23 }
 0x561   : > { %v1864_v54 = vpop.xlane.xlu0 %1863 }
 0x562   : > { %4865 = vpow2.f32 %v1905_v3  ;;  %v1892_v13 = vsub.f32 %v6280_v47, %v1864_v54 }
 0x563   : > { %v1872_v35 = vpop.xlane.xlu1 %1871 }
 0x564   : > { %v1911_v58 = vmul.f32 1.442695, %v1892_v13  ;;  %v1896_v6 = vsub.f32 %v6282_v41, %v1872_v35 }
 0x565   : > { %v1870_v9 = vpop.xlane.xlu0 %1869 }
 0x566   : > { %4867 = vpow2.f32 %v1911_v58  ;;  %v1895_v4 = vsub.f32 %v6285_v62, %v1870_v9  ;;  %v1919_v30 = vmul.f32 1.442695, %v1896_v6 }
 0x567   : > { %v1868_v15 = vpop.xlane.xlu1 %1867  ;;  %4869 = vpow2.f32 %v1907_v0 }
 0x568   : > { %v6383_v10 = vpop.eup %4863  ;;  %v1917_v16 = vmul.f32 1.442695, %v1895_v4  ;;  %v1894_v5 = vsub.f32 %v6288_v20, %v1868_v15 }
 0x569   : > { %1941 = vadd.xlane.f32.xlu0 %v6383_v10  ;;  %v1866_v47 = vpop.xlane.xlu0 %1865 }
 0x56a   : > { %4871 = vpow2.f32 %v1917_v16  ;;  %v1893_v27 = vsub.f32 %v6291_v53, %v1866_v47  ;;  %v1915_v62 = vmul.f32 1.442695, %v1894_v5 }
 0x56b   : > { %v1880_v50 = vpop.xlane.xlu1 %1879  ;;  %4873 = vpow2.f32 %v1919_v30 }
 0x56c   : > { %v6388_v41 = vpop.eup %4865  ;;  %v1913_v44 = vmul.f32 1.442695, %v1893_v27  ;;  %v1900_v38 = vsub.f32 %v6294_v49, %v1880_v50 }
 0x56d   : > { %1937 = vadd.xlane.f32.xlu0 %v6388_v41  ;;  %v1878_v34 = vpop.xlane.xlu0 %1877 }
 0x56e   : > { %4875 = vpow2.f32 %v1913_v44  ;;  %v1899_v20 = vsub.f32 %v6297_v32, %v1878_v34  ;;  %v1927_v53 = vmul.f32 1.442695, %v1900_v38 }
 0x56f   : > { %v1876_v18 = vpop.xlane.xlu1 %1875  ;;  %4877 = vpow2.f32 %v1915_v62 }
 0x570   : > { %v6393_v19 = vpop.eup %4867  ;;  %v1925_v23 = vmul.f32 1.442695, %v1899_v20  ;;  %v1898_v3 = vsub.f32 %v6300_v21, %v1876_v18 }
 0x571   : > { %1943 = vadd.xlane.f32.xlu1 %v6393_v19  ;;  %v1874_v43 = vpop.xlane.xlu0 %1873  ;;  %v6398_v54 = vpop.eup %4869 }
 0x572   : > { %4879 = vpow2.f32 %v1925_v23  ;;  %v1897_v49 = vsub.f32 %v6303_v11, %v1874_v43  ;;  %v1923_v58 = vmul.f32 1.442695, %v1898_v3 }
 0x573   : > { %v1888_v13 = vpop.xlane.xlu1 %1887  ;;  %4881 = vpow2.f32 %v1927_v53 }
 0x574   : > { %v6400_v35 = vpop.eup %4871  ;;  %v1921_v32 = vmul.f32 1.442695, %v1897_v49  ;;  %v1904_v0 = vsub.f32 %v6306_v33, %v1888_v13 }
 0x575   : > { %1939 = vadd.xlane.f32.xlu1 %v6398_v54  ;;  %1949 = vadd.xlane.f32.xlu0 %v6400_v35  ;;  %v1886_v21 = vpop.xlane.xlu0 %1885  ;;  %v6406_v9 = vpop.eup %4873 }
 0x576   : > { %4883 = vpow2.f32 %v1921_v32  ;;  %v1903_v6 = vsub.f32 %v6309_v48, %v1886_v21  ;;  %v1935_v16 = vmul.f32 1.442695, %v1904_v0 }
 0x577   : > { %v1884_v11 = vpop.xlane.xlu1 %1883  ;;  %4885 = vpow2.f32 %v1923_v58 }
 0x578   : > { %v6408_v4 = vpop.eup %4875  ;;  %v1933_v15 = vmul.f32 1.442695, %v1903_v6  ;;  %v1902_v30 = vsub.f32 %v6312_v52, %v1884_v11 }
 0x579   : > { %1951 = vadd.xlane.f32.xlu1 %v6406_v9  ;;  %1945 = vadd.xlane.f32.xlu0 %v6408_v4  ;;  %v1882_v33 = vpop.xlane.xlu0 %1881  ;;  %v6414_v47 = vpop.eup %4877 }
 0x57a   : > { %4887 = vpow2.f32 %v1933_v15  ;;  %v1901_v5 = vsub.f32 %v6315_v60, %v1882_v33  ;;  %v1931_v50 = vmul.f32 1.442695, %v1902_v30 }
 0x57b   : > { %4889 = vpow2.f32 %v1935_v16 }
 0x57c   : > { %v6416_v48 = vpop.eup %4879  ;;  %v1929_v27 = vmul.f32 1.442695, %v1901_v5 }
 0x57d   : > { %1947 = vadd.xlane.f32.xlu1 %v6414_v47  ;;  %1957 = vadd.xlane.f32.xlu0 %v6416_v48  ;;  %v6420_v44 = vpop.eup %4881 }
 0x57e   : > { %4891 = vpow2.f32 %v1929_v27 }
 0x57f   : > { %4893 = vpow2.f32 %v1931_v50 }
 0x580   : > { %v6422_v62 = vpop.eup %4883 }
 0x581   : > { %1959 = vadd.xlane.f32.xlu1 %v6420_v44  ;;  %1953 = vadd.xlane.f32.xlu0 %v6422_v62  ;;  %v6426_v52 = vpop.eup %4885 }
 0x584   : > { %v6428_v60 = vpop.eup %4887 }
 0x585   : > { %1955 = vadd.xlane.f32.xlu1 %v6426_v52  ;;  %1965 = vadd.xlane.f32.xlu0 %v6428_v60  ;;  %v6432_v38 = vpop.eup %4889 }
 0x588   : > { %v6434_v34 = vpop.eup %4891 }
 0x589   : > { %1967 = vadd.xlane.f32.xlu1 %v6432_v38  ;;  %1961 = vadd.xlane.f32.xlu0 %v6434_v34  ;;  %v6438_v20 = vpop.eup %4893 }
 0x58d   : > { %1963 = vadd.xlane.f32.xlu1 %v6438_v20 }
 0x599   : > { %v2353_v18 = vpop.xlane.xlu0 %2352 }
 0x59a   : > { %v2382_v23 = vsub.f32 %v6319_v8, %v2353_v18 }
 0x59b   : > { %v2355_v53 = vpop.xlane.xlu1 %2354 }
 0x59c   : > { %v2400_v3 = vmul.f32 1.442695, %v2382_v23  ;;  %v2383_v43 = vsub.f32 %v6321_v42, %v2355_v53 }
 0x59d   : > { %v2349_v49 = vpop.xlane.xlu0 %2348 }
 0x59e   : > { %4895 = vpow2.f32 %v2400_v3  ;;  %v2380_v13 = vsub.f32 %v6324_v25, %v2349_v49  ;;  %v2402_v0 = vmul.f32 1.442695, %v2383_v43 }
 0x59f   : > { %v2351_v32 = vpop.xlane.xlu1 %2350 }
 0x5a0   : > { %v2396_v58 = vmul.f32 1.442695, %v2380_v13  ;;  %v2381_v21 = vsub.f32 %v6327_v59, %v2351_v32 }
 0x5a1   : > { %v2361_v6 = vpop.xlane.xlu0 %2360 }
 0x5a2   : > { %4897 = vpow2.f32 %v2396_v58  ;;  %v2386_v11 = vsub.f32 %v6330_v36, %v2361_v6  ;;  %v2398_v33 = vmul.f32 1.442695, %v2381_v21 }
 0x5a3   : > { %v2363_v15 = vpop.xlane.xlu1 %2362  ;;  %4899 = vpow2.f32 %v2402_v0 }
 0x5a4   : > { %v2408_v16 = vmul.f32 1.442695, %v2386_v11  ;;  %v2387_v8 = vsub.f32 %v6333_v39, %v2363_v15 }
 0x5a5   : > { %v2357_v42 = vpop.xlane.xlu0 %2356 }
 0x5a6   : > { %4901 = vpow2.f32 %v2408_v16  ;;  %v2410_v30 = vmul.f32 1.442695, %v2387_v8  ;;  %v2384_v25 = vsub.f32 %v6336_v37, %v2357_v42 }
 0x5a7   : > { %v2359_v5 = vpop.xlane.xlu1 %2358  ;;  %4903 = vpow2.f32 %v2398_v33 }
 0x5a8   : > { %v6448_v27 = vpop.eup %4895  ;;  %v2385_v59 = vsub.f32 %v6339_v61, %v2359_v5  ;;  %v2404_v50 = vmul.f32 1.442695, %v2384_v25  ;;  %4905 = vpow2.f32 %v2410_v30 }
 0x5a9   : > { %2432 = vadd.xlane.f32.xlu1 %v6448_v27  ;;  %v2369_v43 = vpop.xlane.xlu0 %2368 }
 0x5aa   : > { %v2406_v36 = vmul.f32 1.442695, %v2385_v59  ;;  %4907 = vpow2.f32 %v2404_v50  ;;  %v2390_v11 = vsub.f32 %v6342_v55, %v2369_v43 }
 0x5ab   : > { %v2371_v49 = vpop.xlane.xlu1 %2370 }
 0x5ac   : > { %v6452_v18 = vpop.eup %4897  ;;  %4909 = vpow2.f32 %v2406_v36  ;;  %v2391_v16 = vsub.f32 %v6345_v26, %v2371_v49  ;;  %v2416_v42 = vmul.f32 1.442695, %v2390_v11 }
 0x5ad   : > { %2428 = vadd.xlane.f32.xlu1 %v6452_v18  ;;  %v6455_v39 = vpop.eup %4899  ;;  %v2365_v13 = vpop.xlane.xlu0 %2364 }
 0x5ae   : > { %v2388_v0 = vsub.f32 %v6348_v1, %v2365_v13  ;;  %v2418_v30 = vmul.f32 1.442695, %v2391_v16 }
 0x5af   : > { %v2367_v32 = vpop.xlane.xlu1 %2366 }
 0x5b0   : > { %v6457_v37 = vpop.eup %4901  ;;  %v2389_v6 = vsub.f32 %v6351_v63, %v2367_v32  ;;  %v2412_v15 = vmul.f32 1.442695, %v2388_v0 }
 0x5b1   : > { %2434 = vadd.xlane.f32.xlu1 %v6455_v39  ;;  %2440 = vadd.xlane.f32.xlu0 %v6457_v37  ;;  %v6461_v61 = vpop.eup %4903  ;;  %v2377_v58 = vpop.xlane.xlu0 %2376 }
 0x5b2   : > { %v6463_v23 = vpop.eup %4905  ;;  %v2414_v8 = vmul.f32 1.442695, %v2389_v6  ;;  %4911 = vpow2.f32 %v2412_v15  ;;  %v2394_v1 = vsub.f32 %v6354_v14, %v2377_v58 }
 0x5b3   : > { %v2379_v21 = vpop.xlane.xlu1 %2378 }
 0x5b4   : > { %v6467_v53 = vpop.eup %4907  ;;  %4913 = vpow2.f32 %v2414_v8  ;;  %v2395_v55 = vsub.f32 %v6357_v2, %v2379_v21  ;;  %v2424_v26 = vmul.f32 1.442695, %v2394_v1 }
 0x5b5   : > { %2430 = vadd.xlane.f32.xlu1 %v6461_v61  ;;  %2442 = vadd.xlane.f32.xlu0 %v6463_v23  ;;  %4915 = vpow2.f32 %v2416_v42 }
 0x5b6   : > { %v6469_v3 = vpop.eup %4909  ;;  %4917 = vpow2.f32 %v2418_v30  ;;  %v2426_v59 = vmul.f32 1.442695, %v2395_v55 }
 0x5b7   : > { %v2375_v33 = vpop.xlane.xlu1 %2374 }
 0x5b8   : > { %v2393_v25 = vsub.f32 %v6363_v17, %v2375_v33 }
 0x5b9   : > { %2438 = vadd.xlane.f32.xlu0 %v6469_v3  ;;  %2436 = vadd.xlane.f32.xlu1 %v6467_v53 }
 0x5ba   : > { %v2422_v5 = vmul.f32 1.442695, %v2393_v25 }
 0x5bc   : > { %v6485_v50 = vpop.eup %4911 }
 0x5be   : > { %v6487_v36 = vpop.eup %4913 }
 0x5bf   : > { %v6491_v14 = vpop.eup %4915 }
 0x5ca   : > { %2522 = vrot.lane.b32.xlu1 %v6175_v51, %s5265_s0  ;;  %v2373_v51 = vpop.xlane.xlu0 %2372 }
 0x5cf   : > { %2520 = vrot.lane.b32.xlu0 %v6162_v46, %s5265_s0  ;;  %v2392_v46 = vsub.f32 %v6360_v45, %v2373_v51  ;;  %v6493_v45 = vpop.eup %4917 }
 0x5d1   : > { %v2420_v63 = vmul.f32 1.442695, %v2392_v46 }
 0x5d3   : > { %4919 = vpow2.f32 %v2420_v63 }
 0x5d4   : > { %4921 = vpow2.f32 %v2422_v5 }
 0x5d5   : > { %4923 = vpow2.f32 %v2424_v26 }
 0x5d6   : > { %4925 = vpow2.f32 %v2426_v59 }
 0x5dd   : > { %v6497_v2 = vpop.eup %4919 }
 0x5de   : > { %v6499_v17 = vpop.eup %4921 }
 0x5df   : > { %v6503_v43 = vpop.eup %4923 }
 0x5e0   : > { %v6505_v13 = vpop.eup %4925 }
 0x5ee   : > { %2446 = vadd.xlane.f32.xlu0 %v6487_v36  ;;  %2444 = vadd.xlane.f32.xlu1 %v6485_v50 }
 0x5f2   : > { %2448 = vadd.xlane.f32.xlu0 %v6491_v14  ;;  %2450 = vadd.xlane.f32.xlu1 %v6493_v45 }
 0x5f6   : > { %2454 = vadd.xlane.f32.xlu1 %v6499_v17  ;;  %2452 = vadd.xlane.f32.xlu0 %v6497_v2  ;;  %v1942_v49 = vpop.xlane.xlu0 %1941 }
 0x5fa   : > { %2458 = vadd.xlane.f32.xlu1 %v6505_v13  ;;  %2456 = vadd.xlane.f32.xlu0 %v6503_v43  ;;  %v1938_v32 = vpop.xlane.xlu0 %1937 }
 0x5fe   : > { %v1944_v58 = vpop.xlane.xlu1 %1943 }
 0x5ff   : > { %4927 = vrcp.f32 %v1944_v58 }
 0x600   : > { %4929 = vrcp.f32 %v1938_v32 }
 0x601   : > { %4931 = vrcp.f32 %v1942_v49 }
 0x602   : > { %v1940_v0 = vpop.xlane.xlu1 %1939  ;;  %v1950_v21 = vpop.xlane.xlu0 %1949 }
 0x603   : > { %4933 = vrcp.f32 %v1940_v0 }
 0x606   : > { %v1952_v6 = vpop.xlane.xlu1 %1951  ;;  %v1946_v11 = vpop.xlane.xlu0 %1945 }
 0x607   : > { %4935 = vrcp.f32 %v1952_v6 }
 0x608   : > { %4937 = vrcp.f32 %v1946_v11 }
 0x609   : > { %v4928_v15 = vpop.eup %4927  ;;  %4939 = vrcp.f32 %v1950_v21 }
 0x60a   : > { %v1948_v16 = vpop.xlane.xlu1 %1947  ;;  %v1958_v8 = vpop.xlane.xlu0 %1957  ;;  %v1988_v46 = vmul.f32 %v4928_v15, %v6393_v19 }
 0x60b   : > { %v4930_v51 = vpop.eup %4929  ;;  %4941 = vrcp.f32 %v1948_v16 }
 0x60c   : > { %v4932_v33 = vpop.eup %4931  ;;  %v1985_v1 = vmul.f32 %v4930_v51, %v6388_v41 }
 0x60d   : > { %v4934_v42 = vpop.eup %4933  ;;  %v1987_v55 = vmul.f32 %v4932_v33, %v6383_v10 }
 0x60e   : > { %v1960_v30 = vpop.xlane.xlu1 %1959  ;;  %v1954_v25 = vpop.xlane.xlu0 %1953  ;;  %v1986_v63 = vmul.f32 %v4934_v42, %v6398_v54 }
 0x60f   : > { %4943 = vrcp.f32 %v1960_v30  ;;  %v2002_v26 = vpack.c.bf16 %v1988_v46, %v1987_v55 }
 0x610   : > { %v2001_v5 = vpack.c.bf16 %v1986_v63, %v1985_v1  ;;  %4945 = vrcp.f32 %v1954_v25 }
 0x611   : > { %v4936_v59 = vpop.eup %4935  ;;  %4947 = vrcp.f32 %v1958_v8 }
 0x612   : > { %v1956_v49 = vpop.xlane.xlu1 %1955  ;;  %4518 = vmatprep.mubr.bf16.mxu0 %v2001_v5  ;;  %v1966_v32 = vpop.xlane.xlu0 %1965  ;;  %v1992_v10 = vmul.f32 %v4936_v59, %v6406_v9 }
 0x613   : > { %v4938_v58 = vpop.eup %4937  ;;  %4949 = vrcp.f32 %v1956_v49  ;;  %4519 = vmatmul.mubr.bf16.vlgmr.msra.gmra.mrb[32].mxu0 %v2002_v26 }
 0x614   : > { %v4940_v19 = vpop.eup %4939  ;;  %4567 = vmatpush3.bf16.msra.mxu0 %v6248_v24  ;;  %v1989_v21 = vmul.f32 %v4938_v58, %v6408_v4 }
 0x615   : > { %v4942_v41 = vpop.eup %4941  ;;  %4568 = vmatprep.subr.bf16.mxu0 %v6371_v29  ;;  %v1991_v11 = vmul.f32 %v4940_v19, %v6400_v35 }
 0x616   : > { %v1968_v54 = vpop.xlane.xlu1 %1967  ;;  %v1962_v0 = vpop.xlane.xlu0 %1961  ;;  %v1990_v6 = vmul.f32 %v4942_v41, %v6414_v47 }
 0x617   : > { %4951 = vrcp.f32 %v1968_v54  ;;  %v2004_v24 = vpack.c.bf16 %v1992_v10, %v1991_v11 }
 0x618   : > { %4569 = vmatpush3.bf16.msra.mxu0 %v6371_v29  ;;  %v2003_v15 = vpack.c.bf16 %v1990_v6, %v1989_v21  ;;  %4953 = vrcp.f32 %v1962_v0 }
 0x619   : > { %4570 = vmatprep.subr.bf16.mxu0 %v6367_v40  ;;  %v4944_v16 = vpop.eup %4943  ;;  %4955 = vrcp.f32 %v1966_v32 }
 0x61a   : > { %v1964_v8 = vpop.xlane.xlu1 %1963  ;;  %4522 = vmatprep.mubr.bf16.mxu0 %v2003_v15  ;;  %v4946_v9 = vpop.eup %4945  ;;  %v1996_v29 = vmul.f32 %v4944_v16, %v6420_v44 }
 0x61b   : > { %4957 = vrcp.f32 %v1964_v8  ;;  %4523 = vmatmul.mubr.bf16.gmra.mrb[36].mxu0 %v2004_v24  ;;  %v4948_v4 = vpop.eup %4947  ;;  %v1993_v35 = vmul.f32 %v4946_v9, %v6422_v62 }
 0x61c   : > { %4571 = vmatpush3.bf16.msra.mxu0 %v6367_v40  ;;  %v1995_v33 = vmul.f32 %v4948_v4, %v6416_v48 }
 0x61d   : > { %v4950_v47 = vpop.eup %4949  ;;  %4572 = vmatprep.subr.bf16.mxu0 %v6369_v56 }
 0x61e   : > { %v1994_v51 = vmul.f32 %v4950_v47, %v6426_v52  ;;  %v2006_v46 = vpack.c.bf16 %v1996_v29, %v1995_v33 }
 0x620   : > { %4573 = vmatpush3.bf16.msra.mxu0 %v6369_v56  ;;  %v2005_v42 = vpack.c.bf16 %v1994_v51, %v1993_v35 }
 0x621   : > { %4574 = vmatprep.subr.bf16.mxu0 %v6373_v7  ;;  %v4952_v30 = vpop.eup %4951 }
 0x622   : > { %4526 = vmatprep.mubr.bf16.mxu0 %v2005_v42  ;;  %v4954_v40 = vpop.eup %4953  ;;  %v2000_v62 = vmul.f32 %v4952_v30, %v6432_v38 }
 0x623   : > { %4527 = vmatmul.mubr.bf16.gmra.mrb[40].mxu0 %v2006_v46  ;;  %v4956_v25 = vpop.eup %4955  ;;  %v1997_v48 = vmul.f32 %v4954_v40, %v6434_v34 }
 0x624   : > { %4575 = vmatpush3.bf16.msra.mxu0 %v6373_v7  ;;  %v1999_v52 = vmul.f32 %v4956_v25, %v6428_v60 }
 0x625   : > { %v4958_v44 = vpop.eup %4957  ;;  %4576 = vmatprep.subr.bf16.mxu0 %v6375_v31 }
 0x626   : > { %v1998_v56 = vmul.f32 %v4958_v44, %v6438_v20  ;;  %v2008_v63 = vpack.c.bf16 %v2000_v62, %v1999_v52 }
 0x628   : > { %4577 = vmatpush3.bf16.msra.mxu0 %v6375_v31  ;;  %v2007_v1 = vpack.c.bf16 %v1998_v56, %v1997_v48 }
 0x62a   : > { %4530 = vmatprep.mubr.bf16.mxu0 %v2007_v1 }
 0x62b   : > { %4531 = vmatmul.mubr.bf16.gmra.mrb[44].mxu0 %v2008_v63 }
 0x636   : > { %v2433_v55 = vpop.xlane.xlu1 %2432 }
 0x63a   : > { %v2429_v5 = vpop.xlane.xlu1 %2428 }
 0x63e   : > { %v2435_v7 = vpop.xlane.xlu1 %2434  ;;  %v2441_v26 = vpop.xlane.xlu0 %2440 }
 0x63f   : > { %4959 = vrcp.f32 %v2435_v7 }
 0x640   : > { %4961 = vrcp.f32 %v2429_v5 }
 0x641   : > { %4963 = vrcp.f32 %v2433_v55 }
 0x642   : > { %v2431_v38 = vpop.xlane.xlu1 %2430  ;;  %v2443_v59 = vpop.xlane.xlu0 %2442 }
 0x643   : > { %4965 = vrcp.f32 %v2431_v38 }
 0x644   : > { %4967 = vrcp.f32 %v2443_v59 }
 0x646   : > { %v2437_v34 = vpop.xlane.xlu1 %2436  ;;  %v2439_v20 = vpop.xlane.xlu0 %2438 }
 0x647   : > { %4969 = vrcp.f32 %v2437_v34 }
 0x648   : > { %4971 = vrcp.f32 %v2439_v20 }
 0x649   : > { %v4960_v31 = vpop.eup %4959  ;;  %4973 = vrcp.f32 %v2441_v26 }
 0x64a   : > { %v2521_v60 = vpop.permute.xlu0 %2520  ;;  %v4962_v49 = vpop.eup %4961  ;;  %v2479_v41 = vmul.f32 %v4960_v31, %v6455_v39 }
 0x64b   : > { %4578 = vmatprep.subr.bf16.mxu0 %v2521_v60  ;;  %v4964_v32 = vpop.eup %4963  ;;  %v2523_v58 = vpop.permute.xlu1 %2522  ;;  %v2476_v10 = vmul.f32 %v4962_v49, %v6452_v18  ;;  %v4800_v49 = vld [vmem:[%s7257_s30 + $0x8] sm:$0xff]  }
 0x64c   : > { %4579 = vmatpush3.bf16.msra.mxu0 %v2521_v60  ;;  %v2478_v0 = vmul.f32 %v4964_v32, %v6448_v27 }
 0x64d   : > { %v4966_v19 = vpop.eup %4965  ;;  %4580 = vmatprep.subr.bf16.mxu0 %v2523_v58 }
 0x64e   : > { %v2477_v54 = vmul.f32 %v4966_v19, %v6461_v61  ;;  %v4968_v21 = vpop.eup %4967  ;;  %v2493_v15 = vpack.c.bf16 %v2479_v41, %v2478_v0 }
 0x64f   : > { %v2483_v18 = vmul.f32 %v4968_v21, %v6463_v23 }
 0x650   : > { %4581 = vmatpush3.bf16.msra.mxu0 %v2523_v58  ;;  %v2492_v6 = vpack.c.bf16 %v2477_v54, %v2476_v10 }
 0x651   : > { %v4970_v11 = vpop.eup %4969 }
 0x652   : > { %v4972_v24 = vpop.eup %4971  ;;  %4582 = vmatprep.mubr.bf16.mxu0 %v2492_v6  ;;  %v2480_v16 = vmul.f32 %v4970_v11, %v6467_v53 }
 0x653   : > { %4583 = vmatmul.mubr.bf16.vlgmr.msra.gmra.mrb[48].mxu0 %v2493_v15  ;;  %v2481_v8 = vmul.f32 %v4972_v24, %v6469_v3  ;;  %v4974_v39 = vpop.eup %4973 }
 0x654   : > { %v2482_v61 = vmul.f32 %v4974_v39, %v6457_v37  ;;  %v4802_v39 = vld [vmem:[%s7257_s30 + $0x18] sm:$0xff]  }
 0x655   : > { %v2494_v9 = vpack.c.bf16 %v2481_v8, %v2480_v16  ;;  %v4801_v8 = vld [vmem:[%s7257_s30 + $0x10] sm:$0xff]  }
 0x656   : > { %v2495_v27 = vpack.c.bf16 %v2483_v18, %v2482_v61 }
 0x657   : > { %4586 = vmatprep.mubr.bf16.mxu0 %v2494_v9 }
 0x65b   : > { %4587 = vmatmul.mubr.bf16.gmra.mrb[52].mxu0 %v2495_v27 }
 0x67b   : > { %v2445_v4 = vpop.xlane.xlu1 %2444  ;;  %v2447_v47 = vpop.xlane.xlu0 %2446 }
 0x67c   : > { %4975 = vrcp.f32 %v2445_v4 }
 0x67d   : > { %4977 = vrcp.f32 %v2447_v47 }
 0x67f   : > { %v2451_v29 = vpop.xlane.xlu1 %2450  ;;  %v2449_v35 = vpop.xlane.xlu0 %2448 }
 0x680   : > { %4979 = vrcp.f32 %v2451_v29 }
 0x681   : > { %4981 = vrcp.f32 %v2449_v35 }
 0x683   : > { %v2455_v53 = vpop.xlane.xlu1 %2454  ;;  %v2453_v51 = vpop.xlane.xlu0 %2452 }
 0x684   : > { %4983 = vrcp.f32 %v2455_v53 }
 0x685   : > { %4985 = vrcp.f32 %v2453_v51 }
 0x686   : > { %v4976_v3 = vpop.eup %4975 }
 0x687   : > { %v4978_v33 = vpop.eup %4977  ;;  %v2459_v23 = vpop.xlane.xlu1 %2458  ;;  %v2484_v37 = vmul.f32 %v4976_v3, %v6485_v50 }
 0x688   : > { %v2457_v42 = vpop.xlane.xlu0 %2456  ;;  %4987 = vrcp.f32 %v2459_v23  ;;  %v2485_v46 = vmul.f32 %v4978_v33, %v6487_v36 }
 0x689   : > { %4989 = vrcp.f32 %v2457_v42 }
 0x68a   : > { %v4980_v30 = vpop.eup %4979  ;;  %v2496_v40 = vpack.c.bf16 %v2485_v46, %v2484_v37 }
 0x68b   : > { %v4982_v25 = vpop.eup %4981  ;;  %v2487_v44 = vmul.f32 %v4980_v30, %v6493_v45 }
 0x68c   : > { %4590 = vmatprep.mubr.bf16.mxu0 %v2496_v40  ;;  %v2486_v62 = vmul.f32 %v4982_v25, %v6491_v14 }
 0x68e   : > { %v4984_v48 = vpop.eup %4983  ;;  %v2497_v56 = vpack.c.bf16 %v2487_v44, %v2486_v62 }
 0x68f   : > { %v4986_v52 = vpop.eup %4985  ;;  %v2489_v1 = vmul.f32 %v4984_v48, %v6499_v17 }
 0x690   : > { %4591 = vmatmul.mubr.bf16.gmra.mrb[56].mxu0 %v2497_v56  ;;  %v2488_v50 = vmul.f32 %v4986_v52, %v6497_v2 }
 0x692   : > { %v4988_v63 = vpop.eup %4987  ;;  %v2498_v55 = vpack.c.bf16 %v2489_v1, %v2488_v50 }
 0x693   : > { %v4990_v36 = vpop.eup %4989  ;;  %v2491_v5 = vmul.f32 %v4988_v63, %v6505_v13 }
 0x694   : > { %4594 = vmatprep.mubr.bf16.mxu0 %v2498_v55  ;;  %v2490_v7 = vmul.f32 %v4990_v36, %v6503_v43  ;;  %v4799_v43 = vld [vmem:[%s7257_s30] sm:$0xff]  }
 0x695   : > { %4598 = vmatprep.subr.bf16.mxu0 %v4799_v43 }
 0x696   : > { %v2499_v45 = vpack.c.bf16 %v2491_v5, %v2490_v7  ;;  %4599 = vmatpush3.bf16.msra.mxu0 %v4799_v43  ;;  %v5087_v43 = vld [vmem:[#allocation2 + $0x10] sm:$0xff] }
 0x697   : > { %4600 = vmatprep.subr.bf16.mxu0 %v4800_v49 }
 0x698   : > { %4595 = vmatmul.mubr.bf16.gmra.mrb[60].mxu0 %v2499_v45 }
 0x69a   : > { %4601 = vmatpush3.bf16.msra.mxu0 %v4800_v49 }
 0x69b   : > { %4602 = vmatprep.subr.bf16.mxu0 %v4801_v8 }
 0x69e   : > { %4603 = vmatpush3.bf16.msra.mxu0 %v4801_v8 }
 0x69f   : > { %4604 = vmatprep.subr.bf16.mxu0 %v4802_v39 }
 0x6a2   : > { %4605 = vmatpush3.bf16.msra.mxu0 %v4802_v39 }
 0x6e6   : > { %v4520_v14 = vpop.f32.mrb[32].mxu0 }
 0x6e7   : > { %v2043_v26 = vpop.f32.mrb[33].mxu0 }
 0x6e8   : > { %v4521_v38 = vpop.f32.mrb[34].mxu0 }
 0x6e9   : > { %v2107_v59 = vpack.c.bf16 %v4521_v38, %v4520_v14  ;;  %v2046_v17 = vpop.f32.mrb[35].mxu0 }
 0x6ea   : > { %v2106_v34 = vpack.c.bf16 %v2046_v17, %v2043_v26 }
 0x6eb   : > { %2115 = vst.msk [vmem:[#allocation5 + $0x8] sm:$0xff] %vm1711_vm2, %v2107_v59 }
 0x6ec   : > { %2114 = vst.msk [vmem:[#allocation5] sm:$0xff] %vm1711_vm2, %v2106_v34 }
 0x6ee   : > { %v4524_v2 = vpop.f32.mrb[36].mxu0 }
 0x6ef   : > { %v2059_v20 = vpop.f32.mrb[37].mxu0 }
 0x6f0   : > { %v4525_v13 = vpop.f32.mrb[38].mxu0 }
 0x6f1   : > { %v2109_v31 = vpack.c.bf16 %v4525_v13, %v4524_v2  ;;  %v2062_v60 = vpop.f32.mrb[39].mxu0 }
 0x6f2   : > { %v2108_v32 = vpack.c.bf16 %v2062_v60, %v2059_v20 }
 0x6f3   : > { %2117 = vst.msk [vmem:[#allocation5 + $0x18] sm:$0xff] %vm1711_vm2, %v2109_v31  ;;  %v6593_v31 = vld [vmem:[%s7259_s28] ss:$0 sm:$0xff] }
 0x6f4   : > { %2116 = vst.msk [vmem:[#allocation5 + $0x10] sm:$0xff] %vm1711_vm2, %v2108_v32  ;;  %v5088_v32 = vld [vmem:[#allocation2] sm:$0xff] }
 0x6f6   : > { %v4528_v58 = vpop.f32.mrb[40].mxu0 }
 0x6f7   : > { %v2075_v19 = vpop.f32.mrb[41].mxu0 }
 0x6f8   : > { %v4529_v41 = vpop.f32.mrb[42].mxu0 }
 0x6f9   : > { %v2111_v10 = vpack.c.bf16 %v4529_v41, %v4528_v58  ;;  %v2078_v54 = vpop.f32.mrb[43].mxu0 }
 0x6fa   : > { %v2110_v0 = vpack.c.bf16 %v2078_v54, %v2075_v19  ;;  %v5089_v54 = vld [vmem:[#allocation2 + $0x8] sm:$0xff] }
 0x6fb   : > { %2119 = vst.msk [vmem:[#allocation5 + $0x28] sm:$0xff] %vm1711_vm2, %v2111_v10 }
 0x6fc   : > { %2118 = vst.msk [vmem:[#allocation5 + $0x20] sm:$0xff] %vm1711_vm2, %v2110_v0 }
 0x6fe   : > { %v4532_v21 = vpop.f32.mrb[44].mxu0 }
 0x6ff   : > { %v2091_v6 = vpop.f32.mrb[45].mxu0 }
 0x700   : > { %v4533_v11 = vpop.f32.mrb[46].mxu0 }
 0x701   : > { %v2113_v15 = vpack.c.bf16 %v4533_v11, %v4532_v21  ;;  %v2094_v24 = vpop.f32.mrb[47].mxu0 }
 0x702   : > { %v2112_v16 = vpack.c.bf16 %v2094_v24, %v2091_v6  ;;  %v5090_v6 = vld [vmem:[#allocation2 + $0x18] sm:$0xff] }
 0x703   : > { %2121 = vst.msk [vmem:[#allocation5 + $0x38] sm:$0xff] %vm1711_vm2, %v2113_v15 }
 0x704   : > { %2120 = vst.msk [vmem:[#allocation5 + $0x30] sm:$0xff] %vm1711_vm2, %v2112_v16 }
 0x726   : > { %v4584_v9 = vpop.f32.mrb[48].mxu0 }
 0x727   : > { %v2566_v18 = vpop.f32.mrb[49].mxu0 }
 0x728   : > { %v4585_v61 = vpop.f32.mrb[50].mxu0 }
 0x729   : > { %v2630_v27 = vpack.c.bf16 %v4585_v61, %v4584_v9  ;;  %v2569_v4 = vpop.f32.mrb[51].mxu0  ;;  %v5091_v61 = vld [vmem:[#allocation2 + $0x20] sm:$0xff] }
 0x72a   : > { %v2629_v47 = vpack.c.bf16 %v2569_v4, %v2566_v18 }
 0x72b   : > { %2647 = vrot.lane.b32.xlu1 %v2630_v27, %s5264_s29 }
 0x72c   : > { %2645 = vrot.lane.b32.xlu0 %v2629_v47, %s5264_s29  ;;  %v5092_v47 = vld [vmem:[#allocation2 + $0x30] sm:$0xff] }
 0x72e   : > { %v4588_v29 = vpop.f32.mrb[52].mxu0 }
 0x72f   : > { %v2582_v35 = vpop.f32.mrb[53].mxu0 }
 0x730   : > { %v4589_v53 = vpop.f32.mrb[54].mxu0 }
 0x731   : > { %v2632_v51 = vpack.c.bf16 %v4589_v53, %v4588_v29  ;;  %v2585_v3 = vpop.f32.mrb[55].mxu0 }
 0x732   : > { %v2631_v33 = vpack.c.bf16 %v2585_v3, %v2582_v35  ;;  %v5093_v3 = vld [vmem:[#allocation2 + $0x38] sm:$0xff] }
 0x734   : > { %2649 = vrot.lane.b32.xlu1 %v2631_v33, %s5264_s29 }
 0x738   : > { %2651 = vrot.lane.b32.xlu1 %v2632_v51, %s5264_s29 }
 0x763   : > { %v4592_v23 = vpop.f32.mrb[56].mxu0 }
 0x764   : > { %v2598_v42 = vpop.f32.mrb[57].mxu0 }
 0x765   : > { %v4593_v37 = vpop.f32.mrb[58].mxu0 }
 0x766   : > { %v2634_v46 = vpack.c.bf16 %v4593_v37, %v4592_v23  ;;  %v2601_v30 = vpop.f32.mrb[59].mxu0  ;;  %v5094_v23 = vld [vmem:[#allocation2 + $0x28] sm:$0xff] }
 0x767   : > { %v2633_v40 = vpack.c.bf16 %v2601_v30, %v2598_v42 }
 0x768   : > { %2655 = vrot.lane.b32.xlu1 %v2634_v46, %s5264_s29 }
 0x769   : > { %2653 = vrot.lane.b32.xlu0 %v2633_v40, %s5264_s29 }
 0x76b   : > { %v4596_v25 = vpop.f32.mrb[60].mxu0 }
 0x76c   : > { %v2614_v44 = vpop.f32.mrb[61].mxu0 }
 0x76d   : > { %v4597_v62 = vpop.f32.mrb[62].mxu0 }
 0x76e   : > { %v2636_v48 = vpack.c.bf16 %v4597_v62, %v4596_v25  ;;  %v2617_v56 = vpop.f32.mrb[63].mxu0 }
 0x76f   : > { %v2635_v52 = vpack.c.bf16 %v2617_v56, %v2614_v44 }
 0x770   : > { %2659 = vrot.lane.b32.xlu1 %v2636_v48, %s5264_s29 }
 0x771   : > { %2657 = vrot.lane.b32.xlu0 %v2635_v52, %s5264_s29  ;;  %v5095_v52 = vld [vmem:[#allocation2 + $0x50] sm:$0xff] }
 0x79d   : > { %v2648_v1 = vpop.permute.xlu1 %2647 }
 0x79e   : > { %2671 = vst.msk [vmem:[#allocation5 + $0x8] sm:$0xff] %vm2669_vm3, %v2648_v1  ;;  %v2646_v50 = vpop.permute.xlu0 %2645 }
 0x79f   : > { %2670 = vst.msk [vmem:[#allocation5] sm:$0xff] %vm2669_vm3, %v2646_v50  ;;  %v5096_v50 = vld [vmem:[#allocation2 + $0x40] sm:$0xff] }
 0x7a5   : > { %v2679_v36 = vld [vmem:[#allocation5 + $0x8] sm:$0xff] }
 0x7a6   : > { %v2650_v63 = vpop.permute.xlu1 %2649  ;;  %v2678_v55 = vld [vmem:[#allocation5] sm:$0xff] }
 0x7a7   : > { %2672 = vst.msk [vmem:[#allocation5 + $0x10] sm:$0xff] %vm2669_vm3, %v2650_v63  ;;  %4606 = vmatprep.mubr.msk.bf16.mxu0 %vm1156_vm1, %v2678_v55 }
 0x7a8   : > { %4607 = vmatmul.mubr.msk.bf16.vlgmr.msra.gmra.mrb[64].mxu0 %vm1156_vm1, %v2679_v36 }
 0x7aa   : > { %v2652_v5 = vpop.permute.xlu1 %2651 }
 0x7ab   : > { %2673 = vst.msk [vmem:[#allocation5 + $0x18] sm:$0xff] %vm2669_vm3, %v2652_v5 }
 0x7ae   : > { %v2680_v7 = vld [vmem:[#allocation5 + $0x10] sm:$0xff] }
 0x7af   : > { %4610 = vmatprep.mubr.msk.bf16.mxu0 %vm1156_vm1, %v2680_v7  ;;  %v5097_v7 = vld [vmem:[#allocation2 + $0x58] sm:$0xff] }
 0x7b2   : > { %v2681_v45 = vld [vmem:[#allocation5 + $0x18] sm:$0xff] }
 0x7b3   : > { %4611 = vmatmul.mubr.msk.bf16.gmra.mrb[68].mxu0 %vm1156_vm1, %v2681_v45 }
 0x7da   : > { %v2656_v14 = vpop.permute.xlu1 %2655 }
 0x7db   : > { %2675 = vst.msk [vmem:[#allocation5 + $0x28] sm:$0xff] %vm2669_vm3, %v2656_v14  ;;  %v2654_v26 = vpop.permute.xlu0 %2653  ;;  %v5098_v14 = vld [vmem:[#allocation2 + $0x48] sm:$0xff] }
 0x7dc   : > { %2674 = vst.msk [vmem:[#allocation5 + $0x20] sm:$0xff] %vm2669_vm3, %v2654_v26 }
 0x7e2   : > { %v2660_v38 = vpop.permute.xlu1 %2659  ;;  %v2683_v34 = vld [vmem:[#allocation5 + $0x28] sm:$0xff] }
 0x7e3   : > { %2677 = vst.msk [vmem:[#allocation5 + $0x38] sm:$0xff] %vm2669_vm3, %v2660_v38  ;;  %v2658_v59 = vpop.permute.xlu0 %2657  ;;  %v2682_v17 = vld [vmem:[#allocation5 + $0x20] sm:$0xff] }
 0x7e4   : > { %2676 = vst.msk [vmem:[#allocation5 + $0x30] sm:$0xff] %vm2669_vm3, %v2658_v59  ;;  %4614 = vmatprep.mubr.msk.bf16.mxu0 %vm1156_vm1, %v2682_v17 }
 0x7e5   : > { %4615 = vmatmul.mubr.msk.bf16.gmra.mrb[72].mxu0 %vm1156_vm1, %v2683_v34 }
 0x7ea   : > { %v2685_v20 = vld [vmem:[#allocation5 + $0x38] sm:$0xff] }
 0x7eb   : > { %v2684_v2 = vld [vmem:[#allocation5 + $0x30] sm:$0xff] }
 0x7ec   : > { %4618 = vmatprep.mubr.msk.bf16.mxu0 %vm1156_vm1, %v2684_v2 }
 0x7ed   : > { %4619 = vmatmul.mubr.msk.bf16.gmra.mrb[76].mxu0 %vm1156_vm1, %v2685_v20 }
 0x87b   : > { %v4608_v13 = vpop.f32.mrb[64].mxu0 }
 0x87c   : > { %v2776_v60 = vpop.f32.mrb[65].mxu0  ;;  %v2841_v49 = vadd.f32 %v5087_v43, %v4608_v13 }
 0x87d   : > { %v2839_v58 = vadd.f32 %v5088_v32, %v2776_v60  ;;  %v4609_v19 = vpop.f32.mrb[66].mxu0  ;;  %v5099_v60 = vld [vmem:[#allocation2 + $0x70] sm:$0xff] }
 0x87e   : > { %v2779_v41 = vpop.f32.mrb[67].mxu0  ;;  %v6599_v21 = vadd.f32 %v6593_v31, %v2841_v49  ;;  %v2842_v11 = vadd.f32 %v5090_v6, %v4609_v19  ;;  %v5100_v49 = vld [vmem:[#allocation2 + $0x60] sm:$0xff] }
 0x87f   : > { %v6596_v10 = vadd.f32 %v6593_v31, %v2839_v58  ;;  %v2840_v0 = vadd.f32 %v5089_v54, %v2779_v41 }
 0x880   : > { %v6609_v8 = vadd.f32 %v6593_v31, %v2842_v11  ;;  %v2886_v39 = vsel %vm1156_vm1, %v6599_v21, 0.0  ;;  %v5102_v11 = vld [vmem:[#allocation2 + $0x68] sm:$0xff] }
 0x881   : > { %v6602_v15 = vadd.f32 %v6593_v31, %v2840_v0  ;;  %v2880_v24 = vsel %vm1156_vm1, %v6596_v10, 0.0  ;;  %v5101_v0 = vld [vmem:[#allocation2 + $0x78] sm:$0xff] }
 0x882   : > { %2881 = vadd.xlane.f32.xlu0 %v2880_v24  ;;  %v2889_v53 = vsel %vm1156_vm1, %v6609_v8, 0.0 }
 0x883   : > { %v2883_v16 = vsel %vm1156_vm1, %v6602_v15, 0.0 }
 0x884   : > { %2884 = vadd.xlane.f32.xlu1 %v2883_v16 }
 0x886   : > { %2887 = vadd.xlane.f32.xlu0 %v2886_v39  ;;  %v4612_v9 = vpop.f32.mrb[68].mxu0 }
 0x887   : > { %v2792_v18 = vpop.f32.mrb[69].mxu0  ;;  %v2845_v29 = vadd.f32 %v5092_v47, %v4612_v9 }
 0x888   : > { %v2843_v27 = vadd.f32 %v5091_v61, %v2792_v18  ;;  %v4613_v4 = vpop.f32.mrb[70].mxu0 }
 0x889   : > { %v2795_v35 = vpop.f32.mrb[71].mxu0  ;;  %v2846_v33 = vadd.f32 %v5093_v3, %v4613_v4  ;;  %v6624_v30 = vadd.f32 %v6593_v31, %v2845_v29 }
 0x88a   : > { %v6616_v51 = vadd.f32 %v6593_v31, %v2843_v27  ;;  %v2844_v42 = vadd.f32 %v5094_v23, %v2795_v35  ;;  %2890 = vadd.xlane.f32.xlu0 %v2889_v53 }
 0x88b   : > { %v6627_v40 = vadd.f32 %v6593_v31, %v2846_v33  ;;  %v2898_v44 = vsel %vm1156_vm1, %v6624_v30, 0.0 }
 0x88c   : > { %v6619_v37 = vadd.f32 %v6593_v31, %v2844_v42  ;;  %v2892_v46 = vsel %vm1156_vm1, %v6616_v51, 0.0 }
 0x88d   : > { %v2901_v62 = vsel %vm1156_vm1, %v6627_v40, 0.0 }
 0x88e   : > { %2893 = vadd.xlane.f32.xlu0 %v2892_v46  ;;  %v2895_v25 = vsel %vm1156_vm1, %v6619_v37, 0.0 }
 0x88f   : > { %2896 = vadd.xlane.f32.xlu1 %v2895_v25 }
 0x892   : > { %2899 = vadd.xlane.f32.xlu0 %v2898_v44 }
 0x893   : > { %2902 = vadd.xlane.f32.xlu1 %v2901_v62 }
 0x8b8   : > { %v4616_v48 = vpop.f32.mrb[72].mxu0 }
 0x8b9   : > { %v2808_v56 = vpop.f32.mrb[73].mxu0  ;;  %v2849_v1 = vadd.f32 %v5095_v52, %v4616_v48 }
 0x8ba   : > { %v2847_v63 = vadd.f32 %v5096_v50, %v2808_v56  ;;  %v4617_v55 = vpop.f32.mrb[74].mxu0 }
 0x8bb   : > { %v2811_v36 = vpop.f32.mrb[75].mxu0  ;;  %v2850_v45 = vadd.f32 %v5097_v7, %v4617_v55  ;;  %v6639_v38 = vadd.f32 %v6593_v31, %v2849_v1 }
 0x8bc   : > { %v6636_v5 = vadd.f32 %v6593_v31, %v2847_v63  ;;  %v2848_v26 = vadd.f32 %v5098_v14, %v2811_v36 }
 0x8bd   : > { %v6647_v34 = vadd.f32 %v6593_v31, %v2850_v45  ;;  %v2910_v19 = vsel %vm1156_vm1, %v6639_v38, 0.0 }
 0x8be   : > { %v6642_v59 = vadd.f32 %v6593_v31, %v2848_v26  ;;  %v2904_v17 = vsel %vm1156_vm1, %v6636_v5, 0.0 }
 0x8bf   : > { %2905 = vadd.xlane.f32.xlu0 %v2904_v17  ;;  %v2913_v16 = vsel %vm1156_vm1, %v6647_v34, 0.0 }
 0x8c0   : > { %v4620_v2 = vpop.f32.mrb[76].mxu0  ;;  %v2907_v20 = vsel %vm1156_vm1, %v6642_v59, 0.0 }
 0x8c1   : > { %2908 = vadd.xlane.f32.xlu1 %v2907_v20  ;;  %v2824_v13 = vpop.f32.mrb[77].mxu0  ;;  %v2853_v43 = vadd.f32 %v5099_v60, %v4620_v2 }
 0x8c2   : > { %v2851_v32 = vadd.f32 %v5100_v49, %v2824_v13  ;;  %v4621_v58 = vpop.f32.mrb[78].mxu0 }
 0x8c3   : > { %2911 = vadd.xlane.f32.xlu0 %v2910_v19  ;;  %v2827_v41 = vpop.f32.mrb[79].mxu0  ;;  %v2854_v6 = vadd.f32 %v5101_v0, %v4621_v58  ;;  %v6659_v39 = vadd.f32 %v6593_v31, %v2853_v43 }
 0x8c4   : > { %v6654_v54 = vadd.f32 %v6593_v31, %v2851_v32  ;;  %v2852_v24 = vadd.f32 %v5102_v11, %v2827_v41 }
 0x8c5   : > { %2914 = vadd.xlane.f32.xlu1 %v2913_v16  ;;  %v6667_v61 = vadd.f32 %v6593_v31, %v2854_v6  ;;  %v2922_v4 = vsel %vm1156_vm1, %v6659_v39, 0.0 }
 0x8c6   : > { %v6662_v9 = vadd.f32 %v6593_v31, %v2852_v24  ;;  %v2916_v18 = vsel %vm1156_vm1, %v6654_v54, 0.0 }
 0x8c7   : > { %2917 = vadd.xlane.f32.xlu0 %v2916_v18  ;;  %v2925_v47 = vsel %vm1156_vm1, %v6667_v61, 0.0  ;;  %v4805_v18 = vld [vmem:[%s5584_s7 + $0x4] ss:$8 sps:$4 sm:$0xff]  }
 0x8c8   : > { %v2919_v27 = vsel %vm1156_vm1, %v6662_v9, 0.0  ;;  %3224 = vmatprep.subr.bf16.mxu1 %v4805_v18 }
 0x8c9   : > { %2920 = vadd.xlane.f32.xlu1 %v2919_v27  ;;  %v4803_v27 = vld [vmem:[%s5584_s7] ss:$8 sps:$4 sm:$0xff]  }
 0x8ca   : > { %3225 = vmatpush1.bf16.msra.mxu1 %v4803_v27 }
 0x8cb   : > { %2923 = vadd.xlane.f32.xlu0 %v2922_v4  ;;  %v4808_v4 = vld [vmem:[%s5584_s7 + $0x14] ss:$8 sps:$4 sm:$0xff]  }
 0x8cc   : > { %3226 = vmatprep.subr.bf16.mxu1 %v4808_v4 }
 0x8cd   : > { %2926 = vadd.xlane.f32.xlu1 %v2925_v47  ;;  %v4806_v47 = vld [vmem:[%s5584_s7 + $0x10] ss:$8 sps:$4 sm:$0xff]  }
 0x8ce   : > { %3227 = vmatpush1.bf16.msra.mxu1 %v4806_v47 }
 0x90f   : > { %v2882_v29 = vpop.xlane.xlu0 %2881 }
 0x910   : > { %v2928_v35 = vmul.f32 0.015625, %v2882_v29  ;;  %v4811_v29 = vld [vmem:[%s5584_s7 + $0x24] ss:$8 sps:$4 sm:$0xff]  }
 0x911   : > { %v2885_v53 = vpop.xlane.xlu1 %2884  ;;  %3228 = vmatprep.subr.bf16.mxu1 %v4811_v29 }
 0x912   : > { %v6676_v3 = vsub.f32 %v6596_v10, %v2928_v35  ;;  %v2929_v31 = vmul.f32 0.015625, %v2885_v53  ;;  %v4809_v35 = vld [vmem:[%s5584_s7 + $0x20] ss:$8 sps:$4 sm:$0xff]   ;;  %v4814_v53 = vld [vmem:[%s5584_s7 + $0x34] ss:$8 sps:$4 sm:$0xff]  }
 0x913   : > { %v2888_v33 = vpop.xlane.xlu0 %2887  ;;  %3229 = vmatpush1.bf16.msra.mxu1 %v4809_v35 }
 0x914   : > { %v6679_v23 = vsub.f32 %v6602_v15, %v2929_v31  ;;  %v2930_v42 = vmul.f32 0.015625, %v2888_v33  ;;  %v2960_v46 = vmul.f32 %v6676_v3, %v6676_v3  ;;  %v4812_v31 = vld [vmem:[%s5584_s7 + $0x30] ss:$8 sps:$4 sm:$0xff]   ;;  %3230 = vmatprep.subr.bf16.mxu1 %v4814_v53 }
 0x916   : > { %v6684_v25 = vsub.f32 %v6599_v21, %v2930_v42  ;;  %v2976_v44 = vsel %vm1156_vm1, %v2960_v46, 0.0  ;;  %v2961_v62 = vmul.f32 %v6679_v23, %v6679_v23 }
 0x917   : > { %2977 = vadd.xlane.f32.xlu0 %v2976_v44  ;;  %v2891_v48 = vpop.xlane.xlu0 %2890  ;;  %3231 = vmatpush1.bf16.msra.mxu1 %v4812_v31 }
 0x918   : > { %v2931_v56 = vmul.f32 0.015625, %v2891_v48  ;;  %v2979_v52 = vsel %vm1156_vm1, %v2961_v62, 0.0  ;;  %v2962_v1 = vmul.f32 %v6684_v25, %v6684_v25 }
 0x919   : > { %2980 = vadd.xlane.f32.xlu1 %v2979_v52 }
 0x91a   : > { %v6693_v50 = vsub.f32 %v6609_v8, %v2931_v56  ;;  %v2982_v63 = vsel %vm1156_vm1, %v2962_v1, 0.0 }
 0x91b   : > { %2983 = vadd.xlane.f32.xlu0 %v2982_v63  ;;  %v2894_v55 = vpop.xlane.xlu0 %2893 }
 0x91c   : > { %v2932_v36 = vmul.f32 0.015625, %v2894_v55  ;;  %v2897_v7 = vpop.xlane.xlu1 %2896  ;;  %v2963_v45 = vmul.f32 %v6693_v50, %v6693_v50 }
 0x91d   : > { %v2933_v14 = vmul.f32 0.015625, %v2897_v7 }
 0x91e   : > { %v6699_v26 = vsub.f32 %v6616_v51, %v2932_v36  ;;  %v2985_v17 = vsel %vm1156_vm1, %v2963_v45, 0.0 }
 0x91f   : > { %v6703_v2 = vsub.f32 %v6619_v37, %v2933_v14  ;;  %2986 = vadd.xlane.f32.xlu1 %v2985_v17  ;;  %v2900_v20 = vpop.xlane.xlu0 %2899 }
 0x920   : > { %v2934_v13 = vmul.f32 0.015625, %v2900_v20  ;;  %v2903_v60 = vpop.xlane.xlu1 %2902  ;;  %v2964_v43 = vmul.f32 %v6699_v26, %v6699_v26 }
 0x921   : > { %v2935_v49 = vmul.f32 0.015625, %v2903_v60  ;;  %v2965_v32 = vmul.f32 %v6703_v2, %v6703_v2 }
 0x922   : > { %v6710_v58 = vsub.f32 %v6624_v30, %v2934_v13  ;;  %v2988_v19 = vsel %vm1156_vm1, %v2964_v43, 0.0 }
 0x923   : > { %v6714_v41 = vsub.f32 %v6627_v40, %v2935_v49  ;;  %2989 = vadd.xlane.f32.xlu0 %v2988_v19  ;;  %v2991_v0 = vsel %vm1156_vm1, %v2965_v32, 0.0 }
 0x924   : > { %2992 = vadd.xlane.f32.xlu1 %v2991_v0  ;;  %v2966_v6 = vmul.f32 %v6710_v58, %v6710_v58 }
 0x925   : > { %v2967_v11 = vmul.f32 %v6714_v41, %v6714_v41 }
 0x926   : > { %v2994_v24 = vsel %vm1156_vm1, %v2966_v6, 0.0 }
 0x927   : > { %2995 = vadd.xlane.f32.xlu0 %v2994_v24  ;;  %v2997_v16 = vsel %vm1156_vm1, %v2967_v11, 0.0 }
 0x928   : > { %2998 = vadd.xlane.f32.xlu1 %v2997_v16 }
 0x94c   : > { %v2906_v33 = vpop.xlane.xlu0 %2905 }
 0x94d   : > { %v2936_v42 = vmul.f32 0.015625, %v2906_v33 }
 0x94e   : > { %v2909_v46 = vpop.xlane.xlu1 %2908 }
 0x94f   : > { %v6732_v44 = vsub.f32 %v6636_v5, %v2936_v42  ;;  %v2937_v62 = vmul.f32 0.015625, %v2909_v46 }
 0x950   : > { %v2912_v48 = vpop.xlane.xlu0 %2911 }
 0x951   : > { %v6735_v56 = vsub.f32 %v6642_v59, %v2937_v62  ;;  %v2938_v52 = vmul.f32 0.015625, %v2912_v48  ;;  %v2968_v1 = vmul.f32 %v6732_v44, %v6732_v44  ;;  %v4815_v48 = vld [vmem:[%s5595_s21 + $0x40] sm:$0xff]  }
 0x952   : > { %v2915_v63 = vpop.xlane.xlu1 %2914  ;;  %4397 = vmatprep.subr.bf16.mxu0 %v4815_v48  ;;  %4642 = vmatprep.subr.bf16.mxu1 %v4815_v48 }
 0x953   : > { %v6740_v55 = vsub.f32 %v6639_v38, %v2938_v52  ;;  %v2939_v36 = vmul.f32 0.015625, %v2915_v63  ;;  %v3000_v7 = vsel %vm1156_vm1, %v2968_v1, 0.0  ;;  %v2969_v45 = vmul.f32 %v6735_v56, %v6735_v56  ;;  %v4816_v52 = vld [vmem:[%s5595_s21] sm:$0xff]   ;;  %v6782_v1 = vld [vmem:[%s5595_s21 + $0x48] sm:$0xff]  }
 0x954   : > { %3001 = vadd.xlane.f32.xlu0 %v3000_v7  ;;  %v2918_v14 = vpop.xlane.xlu0 %2917  ;;  %4398 = vmatpush3.bf16.msra.mxu0 %v4816_v52  ;;  %v4818_v63 = vld [vmem:[%s5595_s21 + $0x8] sm:$0xff]  }
 0x955   : > { %v6746_v17 = vsub.f32 %v6647_v34, %v2939_v36  ;;  %v2940_v20 = vmul.f32 0.015625, %v2918_v14  ;;  %v3003_v13 = vsel %vm1156_vm1, %v2969_v45, 0.0  ;;  %v2970_v60 = vmul.f32 %v6740_v55, %v6740_v55  ;;  %4399 = vmatprep.subr.bf16.mxu0 %v6782_v1 }
 0x956   : > { %v2921_v43 = vpop.xlane.xlu1 %2920  ;;  %3004 = vadd.xlane.f32.xlu1 %v3003_v13 }
 0x957   : > { %v6752_v49 = vsub.f32 %v6654_v54, %v2940_v20  ;;  %v2941_v32 = vmul.f32 0.015625, %v2921_v43  ;;  %v3006_v19 = vsel %vm1156_vm1, %v2970_v60, 0.0  ;;  %v2971_v0 = vmul.f32 %v6746_v17, %v6746_v17 }
 0x958   : > { %3007 = vadd.xlane.f32.xlu0 %v3006_v19  ;;  %v2924_v6 = vpop.xlane.xlu0 %2923  ;;  %4400 = vmatpush3.bf16.msra.mxu0 %v4818_v63 }
 0x959   : > { %v6758_v11 = vsub.f32 %v6662_v9, %v2941_v32  ;;  %v2942_v24 = vmul.f32 0.015625, %v2924_v6  ;;  %v3009_v16 = vsel %vm1156_vm1, %v2971_v0, 0.0  ;;  %v2972_v18 = vmul.f32 %v6752_v49, %v6752_v49 }
 0x95a   : > { %v2927_v27 = vpop.xlane.xlu1 %2926  ;;  %3010 = vadd.xlane.f32.xlu1 %v3009_v16 }
 0x95b   : > { %v6764_v4 = vsub.f32 %v6659_v39, %v2942_v24  ;;  %v2943_v47 = vmul.f32 0.015625, %v2927_v27  ;;  %v3012_v29 = vsel %vm1156_vm1, %v2972_v18, 0.0  ;;  %v2973_v35 = vmul.f32 %v6758_v11, %v6758_v11 }
 0x95c   : > { %3013 = vadd.xlane.f32.xlu0 %v3012_v29  ;;  %v6791_v29 = vld [vmem:[%s7260_s3] ss:$0 sm:$0xff] }
 0x95d   : > { %v6770_v53 = vsub.f32 %v6667_v61, %v2943_v47  ;;  %v3015_v31 = vsel %vm1156_vm1, %v2973_v35, 0.0  ;;  %v2974_v33 = vmul.f32 %v6764_v4, %v6764_v4 }
 0x95e   : > { %3016 = vadd.xlane.f32.xlu1 %v3015_v31 }
 0x95f   : > { %v3018_v42 = vsel %vm1156_vm1, %v2974_v33, 0.0  ;;  %v2975_v46 = vmul.f32 %v6770_v53, %v6770_v53 }
 0x960   : > { %3019 = vadd.xlane.f32.xlu0 %v3018_v42 }
 0x961   : > { %v3021_v62 = vsel %vm1156_vm1, %v2975_v46, 0.0 }
 0x962   : > { %3022 = vadd.xlane.f32.xlu1 %v3021_v62 }
 0x9a4   : > { %v2978_v36 = vpop.xlane.xlu0 %2977 }
 0x9a5   : > { %v3024_v7 = vmul.f32 0.015625, %v2978_v36 }
 0x9a6   : > { %v2981_v45 = vpop.xlane.xlu1 %2980 }
 0x9a7   : > { %v3040_v14 = vadd.f32 1e-05, %v3024_v7  ;;  %v3025_v20 = vmul.f32 0.015625, %v2981_v45 }
 0x9a8   : > { %v2984_v13 = vpop.xlane.xlu0 %2983 }
 0x9a9   : > { %4991 = vrsqrt.f32 %v3040_v14  ;;  %v3041_v60 = vadd.f32 1e-05, %v3025_v20  ;;  %v3026_v43 = vmul.f32 0.015625, %v2984_v13  ;;  %v6801_v20 = vld [vmem:[%s7261_s16] ss:$0 sm:$0xff] }
 0x9ab   : > { %4993 = vrsqrt.f32 %v3041_v60  ;;  %v3042_v32 = vadd.f32 1e-05, %v3026_v43 }
 0x9ac   : > { %v2987_v19 = vpop.xlane.xlu1 %2986 }
 0x9ad   : > { %4995 = vrsqrt.f32 %v3042_v32  ;;  %v3027_v0 = vmul.f32 0.015625, %v2987_v19 }
 0x9af   : > { %v3043_v6 = vadd.f32 1e-05, %v3027_v0 }
 0x9b0   : > { %v2990_v24 = vpop.xlane.xlu0 %2989 }
 0x9b1   : > { %4997 = vrsqrt.f32 %v3043_v6  ;;  %v3028_v16 = vmul.f32 0.015625, %v2990_v24  ;;  %v2993_v18 = vpop.xlane.xlu1 %2992 }
 0x9b2   : > { %v3029_v27 = vmul.f32 0.015625, %v2993_v18 }
 0x9b3   : > { %v4992_v47 = vpop.eup %4991  ;;  %v3044_v35 = vadd.f32 1e-05, %v3028_v16 }
 0x9b4   : > { %v3072_v31 = vmul.f32 %v4992_v47, %v6676_v3  ;;  %v3045_v33 = vadd.f32 1e-05, %v3029_v27  ;;  %v2996_v42 = vpop.xlane.xlu0 %2995 }
 0x9b5   : > { %v4994_v46 = vpop.eup %4993  ;;  %4999 = vrsqrt.f32 %v3044_v35  ;;  %v3030_v62 = vmul.f32 0.015625, %v2996_v42  ;;  %v2999_v48 = vpop.xlane.xlu1 %2998 }
 0x9b6   : > { %v3094_v36 = vmul.f32 %v6791_v29, %v3072_v31  ;;  %v3073_v7 = vmul.f32 %v4994_v46, %v6679_v23  ;;  %5001 = vrsqrt.f32 %v3045_v33  ;;  %v3031_v45 = vmul.f32 0.015625, %v2999_v48 }
 0x9b7   : > { %v4996_v14 = vpop.eup %4995  ;;  %v3046_v3 = vadd.f32 1e-05, %v3030_v62 }
 0x9b8   : > { %v3095_v13 = vmul.f32 %v6791_v29, %v3073_v7  ;;  %v3047_v60 = vadd.f32 1e-05, %v3031_v45  ;;  %v3116_v43 = vadd.f32 %v6801_v20, %v3094_v36  ;;  %v3074_v19 = vmul.f32 %v4996_v14, %v6684_v25 }
 0x9b9   : > { %5003 = vrsqrt.f32 %v3046_v3 }
 0x9ba   : > { %v3117_v32 = vadd.f32 %v6801_v20, %v3095_v13  ;;  %5005 = vrsqrt.f32 %v3047_v60  ;;  %v3096_v24 = vmul.f32 %v6791_v29, %v3074_v19 }
 0x9bb   : > { %v4998_v23 = vpop.eup %4997 }
 0x9bc   : > { %v3075_v0 = vmul.f32 %v4998_v23, %v6693_v50  ;;  %v3132_v6 = vpack.c.bf16 %v3117_v32, %v3116_v43  ;;  %v3118_v35 = vadd.f32 %v6801_v20, %v3096_v24 }
 0x9be   : > { %4205 = vmatmul.mubr.msk.bf16.vlgmr.msra.gmra.mrb[32].mxu1 %vm1156_vm1, %v3132_v6  ;;  %v3097_v16 = vmul.f32 %v6791_v29, %v3075_v0 }
 0x9bf   : > { %v5000_v18 = vpop.eup %4999  ;;  %3266 = vmatprep.mubr.bf16.mxu1 %v5262_v57  ;;  %4650 = vmatpush3.bf16.msra.mxu1 %v4816_v52 }
 0x9c0   : > { %v5002_v27 = vpop.eup %5001  ;;  %v3076_v47 = vmul.f32 %v5000_v18, %v6699_v26  ;;  %v3119_v25 = vadd.f32 %v6801_v20, %v3097_v16  ;;  %4643 = vmatprep.subr.bf16.mxu1 %v6782_v1 }
 0x9c1   : > { %v3077_v50 = vmul.f32 %v5002_v27, %v6703_v2 }
 0x9c2   : > { %v3133_v33 = vpack.c.bf16 %v3119_v25, %v3118_v35  ;;  %v3098_v42 = vmul.f32 %v6791_v29, %v3076_v47 }
 0x9c3   : > { %4651 = vmatpush3.bf16.msra.mxu1 %v4818_v63  ;;  %v5004_v31 = vpop.eup %5003  ;;  %v3099_v46 = vmul.f32 %v6791_v29, %v3077_v50 }
 0x9c4   : > { %v5006_v62 = vpop.eup %5005  ;;  %v3078_v26 = vmul.f32 %v5004_v31, %v6710_v58  ;;  %v3120_v2 = vadd.f32 %v6801_v20, %v3098_v42 }
 0x9c5   : > { %v3079_v52 = vmul.f32 %v5006_v62, %v6714_v41  ;;  %v3121_v1 = vadd.f32 %v6801_v20, %v3099_v46 }
 0x9c6   : > { %4206 = vmatmul.mubr.msk.bf16.gmra.mrb[36].mxu1 %vm1156_vm1, %v3133_v33  ;;  %v3100_v48 = vmul.f32 %v6791_v29, %v3078_v26 }
 0x9c7   : > { %3276 = vmatprep.mubr.bf16.mxu1 %v5262_v57  ;;  %v3134_v63 = vpack.c.bf16 %v3121_v1, %v3120_v2  ;;  %v3101_v36 = vmul.f32 %v6791_v29, %v3079_v52 }
 0x9c8   : > { %v3122_v7 = vadd.f32 %v6801_v20, %v3100_v48 }
 0x9c9   : > { %v3123_v45 = vadd.f32 %v6801_v20, %v3101_v36 }
 0x9cb   : > { %v3135_v58 = vpack.c.bf16 %v3123_v45, %v3122_v7 }
 0x9ce   : > { %4207 = vmatmul.mubr.msk.bf16.gmra.mrb[40].mxu1 %vm1156_vm1, %v3134_v63 }
 0x9cf   : > { %3286 = vmatprep.mubr.bf16.mxu1 %v5262_v57 }
 0x9d6   : > { %4208 = vmatmul.mubr.msk.bf16.gmra.mrb[44].mxu1 %vm1156_vm1, %v3135_v58 }
 0x9d7   : > { %3296 = vmatprep.mubr.bf16.mxu1 %v5262_v57 }
 0x9e1   : > { %v3002_v41 = vpop.xlane.xlu0 %3001 }
 0x9e2   : > { %v3032_v14 = vmul.f32 0.015625, %v3002_v41 }
 0x9e3   : > { %v3005_v3 = vpop.xlane.xlu1 %3004 }
 0x9e4   : > { %v3048_v13 = vadd.f32 1e-05, %v3032_v14  ;;  %v3033_v60 = vmul.f32 0.015625, %v3005_v3 }
 0x9e5   : > { %v3008_v43 = vpop.xlane.xlu0 %3007 }
 0x9e6   : > { %5007 = vrsqrt.f32 %v3048_v13  ;;  %v3049_v32 = vadd.f32 1e-05, %v3033_v60  ;;  %v3034_v19 = vmul.f32 0.015625, %v3008_v43 }
 0x9e7   : > { %v3011_v23 = vpop.xlane.xlu1 %3010 }
 0x9e8   : > { %5009 = vrsqrt.f32 %v3049_v32  ;;  %v3050_v0 = vadd.f32 1e-05, %v3034_v19  ;;  %v3035_v6 = vmul.f32 0.015625, %v3011_v23 }
 0x9e9   : > { %v3014_v24 = vpop.xlane.xlu0 %3013 }
 0x9ea   : > { %5011 = vrsqrt.f32 %v3050_v0  ;;  %v3051_v16 = vadd.f32 1e-05, %v3035_v6  ;;  %v3036_v18 = vmul.f32 0.015625, %v3014_v24 }
 0x9eb   : > { %v3017_v27 = vpop.xlane.xlu1 %3016 }
 0x9ec   : > { %5013 = vrsqrt.f32 %v3051_v16  ;;  %v3037_v47 = vmul.f32 0.015625, %v3017_v27  ;;  %v3052_v25 = vadd.f32 1e-05, %v3036_v18 }
 0x9ed   : > { %v3020_v35 = vpop.xlane.xlu0 %3019 }
 0x9ee   : > { %v3053_v50 = vadd.f32 1e-05, %v3037_v47  ;;  %v3038_v26 = vmul.f32 0.015625, %v3020_v35  ;;  %v4819_v35 = vld [vmem:[%s5595_s21 + $0x50] sm:$0xff]  }
 0x9ef   : > { %v3023_v31 = vpop.xlane.xlu1 %3022  ;;  %4401 = vmatprep.subr.bf16.mxu0 %v4819_v35  ;;  %4644 = vmatprep.subr.bf16.mxu1 %v4819_v35 }
 0x9f0   : > { %v5008_v33 = vpop.eup %5007  ;;  %5015 = vrsqrt.f32 %v3053_v50  ;;  %v3039_v42 = vmul.f32 0.015625, %v3023_v31  ;;  %v3054_v7 = vadd.f32 1e-05, %v3038_v26  ;;  %v4820_v31 = vld [vmem:[%s5595_s21 + $0x10] sm:$0xff]  }
 0x9f1   : > { %v3080_v46 = vmul.f32 %v5008_v33, %v6732_v44  ;;  %5017 = vrsqrt.f32 %v3052_v25  ;;  %4402 = vmatpush3.bf16.msra.mxu0 %v4820_v31  ;;  %4652 = vmatpush3.bf16.msra.mxu1 %v4820_v31  ;;  %v4822_v33 = vld [vmem:[%s5595_s21 + $0x18] sm:$0xff]   ;;  %v4828_v26 = vld [vmem:[%s5595_s21 + $0x30] sm:$0xff]  }
 0x9f2   : > { %v5010_v62 = vpop.eup %5009  ;;  %v3055_v63 = vadd.f32 1e-05, %v3039_v42  ;;  %v4825_v42 = vld [vmem:[%s5595_s21 + $0x68] sm:$0xff]  }
 0x9f3   : > { %v3081_v52 = vmul.f32 %v5010_v62, %v6735_v56  ;;  %v3102_v2 = vmul.f32 %v6791_v29, %v3080_v46  ;;  %v4826_v46 = vld [vmem:[%s5595_s21 + $0x28] sm:$0xff]   ;;  %v4827_v62 = vld [vmem:[%s5595_s21 + $0x70] sm:$0xff]  }
 0x9f4   : > { %v5012_v1 = vpop.eup %5011  ;;  %5019 = vrsqrt.f32 %v3055_v63 }
 0x9f5   : > { %v3103_v48 = vmul.f32 %v6791_v29, %v3081_v52  ;;  %v3082_v45 = vmul.f32 %v5012_v1, %v6740_v55  ;;  %v3124_v41 = vadd.f32 %v6801_v20, %v3102_v2  ;;  %5021 = vrsqrt.f32 %v3054_v7  ;;  %v4829_v52 = vld [vmem:[%s5595_s21 + $0x78] sm:$0xff]   ;;  %v3148_v1 = vld [vmem:[%s5589_s20] sm:$0x3] }
 0x9f6   : > { %v5014_v36 = vpop.eup %5013  ;;  %v4830_v2 = vld [vmem:[%s5595_s21 + $0x38] sm:$0xff]   ;;  %v6879_v63 = vrot.slane %v3148_v1, %v1430_v22 }
 0x9f7   : > { %v3083_v58 = vmul.f32 %v5014_v36, %v6746_v17  ;;  %v3125_v44 = vadd.f32 %v6801_v20, %v3103_v48  ;;  %v3104_v13 = vmul.f32 %v6791_v29, %v3082_v45  ;;  %v6883_v48 = vrot.slane %v3148_v1, %v1434_v12 }
 0x9f9   : > { %v3136_v14 = vpack.c.bf16 %v3125_v44, %v3124_v41  ;;  %v3105_v56 = vmul.f32 %v6791_v29, %v3083_v58  ;;  %v3126_v32 = vadd.f32 %v6801_v20, %v3104_v13 }
 0x9fa   : > { %v5016_v3 = vpop.eup %5015 }
 0x9fb   : > { %4209 = vmatmul.mubr.msk.bf16.gmra.mrb[48].mxu1 %vm1156_vm1, %v3136_v14  ;;  %v5018_v60 = vpop.eup %5017  ;;  %v3085_v55 = vmul.f32 %v5016_v3, %v6758_v11  ;;  %v3127_v17 = vadd.f32 %v6801_v20, %v3105_v56 }
 0x9fc   : > { %3306 = vmatprep.mubr.bf16.mxu1 %v5262_v57  ;;  %v3084_v43 = vmul.f32 %v5018_v60, %v6752_v49 }
 0x9fd   : > { %v3137_v19 = vpack.c.bf16 %v3127_v17, %v3126_v32  ;;  %v3107_v23 = vmul.f32 %v6791_v29, %v3085_v55 }
 0x9fe   : > { %v5020_v0 = vpop.eup %5019  ;;  %v3106_v6 = vmul.f32 %v6791_v29, %v3084_v43 }
 0x9ff   : > { %v5022_v24 = vpop.eup %5021  ;;  %v3087_v11 = vmul.f32 %v5020_v0, %v6770_v53  ;;  %v3129_v16 = vadd.f32 %v6801_v20, %v3107_v23 }
 0xa00   : > { %v3086_v49 = vmul.f32 %v5022_v24, %v6764_v4  ;;  %v3128_v18 = vadd.f32 %v6801_v20, %v3106_v6 }
 0xa01   : > { %v3109_v47 = vmul.f32 %v6791_v29, %v3087_v11 }
 0xa02   : > { %v3138_v27 = vpack.c.bf16 %v3129_v16, %v3128_v18  ;;  %v3108_v25 = vmul.f32 %v6791_v29, %v3086_v49  ;;  %v4821_v29 = vld [vmem:[%s5595_s21 + $0x58] sm:$0xff]  }
 0xa03   : > { %4210 = vmatmul.mubr.msk.bf16.gmra.mrb[52].mxu1 %vm1156_vm1, %v3137_v19  ;;  %v3131_v50 = vadd.f32 %v6801_v20, %v3109_v47  ;;  %4403 = vmatprep.subr.bf16.mxu0 %v4821_v29 }
 0xa04   : > { %3316 = vmatprep.mubr.bf16.mxu1 %v5262_v57  ;;  %v3130_v53 = vadd.f32 %v6801_v20, %v3108_v25  ;;  %4645 = vmatprep.subr.bf16.mxu1 %v4821_v29  ;;  %v4824_v20 = vld [vmem:[%s5595_s21 + $0x20] sm:$0xff]  }
 0xa05   : > { %4404 = vmatpush3.bf16.msra.mxu0 %v4822_v33  ;;  %4653 = vmatpush3.bf16.msra.mxu1 %v4822_v33 }
 0xa06   : > { %v3139_v4 = vpack.c.bf16 %v3131_v50, %v3130_v53 }
 0xa0b   : > { %4211 = vmatmul.mubr.msk.bf16.gmra.mrb[56].mxu1 %vm1156_vm1, %v3138_v27 }
 0xa0c   : > { %3326 = vmatprep.mubr.bf16.mxu1 %v5262_v57  ;;  %v4823_v57 = vld [vmem:[%s5595_s21 + $0x60] sm:$0xff]  }
 0xa0d   : > { %4405 = vmatprep.subr.bf16.mxu0 %v4823_v57  ;;  %4646 = vmatprep.subr.bf16.mxu1 %v4823_v57 }
 0xa0e   : > { %4406 = vmatpush3.bf16.msra.mxu0 %v4824_v20  ;;  %4654 = vmatpush3.bf16.msra.mxu1 %v4824_v20 }
 0xa0f   : > { %4407 = vmatprep.subr.bf16.mxu0 %v4825_v42  ;;  %4647 = vmatprep.subr.bf16.mxu1 %v4825_v42 }
 0xa12   : > { %4408 = vmatpush3.bf16.msra.mxu0 %v4826_v46  ;;  %4655 = vmatpush3.bf16.msra.mxu1 %v4826_v46 }
 0xa13   : > { %4212 = vmatmul.mubr.msk.bf16.gmra.mrb[60].mxu1 %vm1156_vm1, %v3139_v4  ;;  %4409 = vmatprep.subr.bf16.mxu0 %v4827_v62 }
 0xa14   : > { %4648 = vmatprep.subr.bf16.mxu1 %v4827_v62 }
 0xa16   : > { %4410 = vmatpush3.bf16.msra.mxu0 %v4828_v26  ;;  %4656 = vmatpush3.bf16.msra.mxu1 %v4828_v26 }
 0xa17   : > { %4411 = vmatprep.subr.bf16.mxu0 %v4829_v52  ;;  %4649 = vmatprep.subr.bf16.mxu1 %v4829_v52 }
 0xa1a   : > { %4412 = vmatpush3.bf16.msra.mxu0 %v4830_v2  ;;  %4657 = vmatpush3.bf16.msra.mxu1 %v4830_v2 }
 0xa91   : > { %v3258_v36 = vpop.f32.mrb[32].mxu1 }
 0xa92   : > { %v3259_v7 = vadd.f32 %v3258_v36, %v6879_v63  ;;  %v3260_v45 = vpop.f32.mrb[33].mxu1 }
 0xa93   : > { %v3261_v58 = vadd.f32 %v3260_v45, %v6883_v48  ;;  %v3262_v41 = vpop.f32.mrb[34].mxu1 }
 0xa94   : > { %v3369_v44 = vmul.f32 0.70710677, %v3259_v7  ;;  %v3263_v14 = vadd.f32 %v3262_v41, %v6879_v63  ;;  %v3264_v56 = vpop.f32.mrb[35].mxu1  ;;  %v3337_v35 = vmul.f32 0.5, %v3259_v7 }
 0xa95   : > { %v3370_v3 = vmul.f32 0.70710677, %v3261_v58  ;;  %v3265_v13 = vadd.f32 %v3264_v56, %v6883_v48  ;;  %v3338_v20 = vmul.f32 0.5, %v3261_v58 }
 0xa96   : > { %5023 = verf.f32 %v3369_v44  ;;  %v3371_v22 = vmul.f32 0.70710677, %v3263_v14  ;;  %v3339_v31 = vmul.f32 0.5, %v3263_v14 }
 0xa97   : > { %5025 = verf.f32 %v3370_v3  ;;  %v3372_v28 = vmul.f32 0.70710677, %v3265_v13  ;;  %v3340_v42 = vmul.f32 0.5, %v3265_v13 }
 0xa98   : > { %5027 = verf.f32 %v3371_v22 }
 0xa99   : > { %5029 = verf.f32 %v3372_v28  ;;  %v3268_v12 = vpop.f32.mrb[36].mxu1 }
 0xa9a   : > { %v3269_v60 = vadd.f32 %v3268_v12, %v6879_v63  ;;  %v3270_v55 = vpop.f32.mrb[37].mxu1 }
 0xa9b   : > { %v3271_v17 = vadd.f32 %v3270_v55, %v6883_v48  ;;  %v3272_v43 = vpop.f32.mrb[38].mxu1 }
 0xa9c   : > { %v3373_v32 = vmul.f32 0.70710677, %v3269_v60  ;;  %v3273_v19 = vadd.f32 %v3272_v43, %v6879_v63  ;;  %v3274_v23 = vpop.f32.mrb[39].mxu1 }
 0xa9d   : > { %v3374_v0 = vmul.f32 0.70710677, %v3271_v17  ;;  %v3275_v6 = vadd.f32 %v3274_v23, %v6883_v48 }
 0xa9e   : > { %5031 = verf.f32 %v3373_v32  ;;  %v3375_v24 = vmul.f32 0.70710677, %v3273_v19 }
 0xa9f   : > { %5033 = verf.f32 %v3374_v0  ;;  %v3376_v11 = vmul.f32 0.70710677, %v3275_v6  ;;  %v3341_v0 = vmul.f32 0.5, %v3269_v60 }
 0xaa0   : > { %v5024_v16 = vpop.eup %5023  ;;  %5035 = verf.f32 %v3375_v24  ;;  %v3343_v24 = vmul.f32 0.5, %v3273_v19 }
 0xaa1   : > { %v5026_v49 = vpop.eup %5025  ;;  %v3433_v18 = vadd.f32 1.0, %v5024_v16  ;;  %5037 = verf.f32 %v3376_v11  ;;  %v3278_v27 = vpop.f32.mrb[40].mxu1 }
 0xaa2   : > { %v5028_v47 = vpop.eup %5027  ;;  %v3434_v25 = vadd.f32 1.0, %v5026_v49  ;;  %v6894_v50 = vadd.f32 %v3278_v27, %v6879_v63  ;;  %v3280_v53 = vpop.f32.mrb[41].mxu1  ;;  %v3344_v27 = vmul.f32 0.5, %v3275_v6 }
 0xaa3   : > { %v5030_v4 = vpop.eup %5029  ;;  %v3435_v29 = vadd.f32 1.0, %v5028_v47  ;;  %v6897_v33 = vadd.f32 %v3280_v53, %v6883_v48  ;;  %v3282_v57 = vpop.f32.mrb[42].mxu1  ;;  %v3465_v52 = vmul.f32 %v3433_v18, %v3337_v35  ;;  %v3342_v18 = vmul.f32 0.5, %v3271_v17 }
 0xaa4   : > { %v3436_v46 = vadd.f32 1.0, %v5030_v4  ;;  %v3377_v62 = vmul.f32 0.70710677, %v6894_v50  ;;  %v3284_v26 = vpop.f32.mrb[43].mxu1  ;;  %v3283_v36 = vadd.f32 %v3282_v57, %v6879_v63  ;;  %v3466_v45 = vmul.f32 %v3434_v25, %v3338_v20 }
 0xaa5   : > { %v3467_v2 = vmul.f32 %v3435_v29, %v3339_v31  ;;  %v3378_v1 = vmul.f32 0.70710677, %v6897_v33  ;;  %v3285_v41 = vadd.f32 %v3284_v26, %v6883_v48 }
 0xaa6   : > { %v3468_v7 = vmul.f32 %v3436_v46, %v3340_v42  ;;  %5039 = verf.f32 %v3377_v62  ;;  %v3379_v14 = vmul.f32 0.70710677, %v3283_v36 }
 0xaa7   : > { %v3497_v44 = vpack.c.bf16 %v3467_v2, %v3465_v52  ;;  %5041 = verf.f32 %v3378_v1  ;;  %v3380_v56 = vmul.f32 0.70710677, %v3285_v41 }
 0xaa8   : > { %v5032_v58 = vpop.eup %5031  ;;  %v3498_v3 = vpack.c.bf16 %v3468_v7, %v3466_v45  ;;  %5043 = verf.f32 %v3379_v14  ;;  %v3345_v45 = vmul.f32 0.5, %v6894_v50  ;;  %v3347_v7 = vmul.f32 0.5, %v3283_v36 }
 0xaa9   : > { %v5034_v13 = vpop.eup %5033  ;;  %v3437_v22 = vadd.f32 1.0, %v5032_v58  ;;  %v3288_v28 = vpop.f32.mrb[44].mxu1  ;;  %5045 = verf.f32 %v3380_v56  ;;  %v3346_v14 = vmul.f32 0.5, %v6897_v33  ;;  %v3348_v58 = vmul.f32 0.5, %v3285_v41 }
 0xaaa   : > { %v5036_v12 = vpop.eup %5035  ;;  %v3438_v55 = vadd.f32 1.0, %v5034_v13  ;;  %v3289_v43 = vadd.f32 %v3288_v28, %v6879_v63  ;;  %v3290_v32 = vpop.f32.mrb[45].mxu1  ;;  %3673 = vmatprep.mubr.bf16.mxu0 %v3498_v3 }
 0xaab   : > { %v5038_v23 = vpop.eup %5037  ;;  %v3439_v11 = vadd.f32 1.0, %v5036_v12  ;;  %v3291_v16 = vadd.f32 %v3290_v32, %v6883_v48  ;;  %v3292_v49 = vpop.f32.mrb[46].mxu1  ;;  %3674 = vmatmul.mubr.bf16.vlgmr.msra.gmra.mrb[80].mxu0 %v3497_v44  ;;  %v3469_v4 = vmul.f32 %v3437_v22, %v3341_v0 }
 0xaac   : > { %v3440_v47 = vadd.f32 1.0, %v5038_v23  ;;  %v3381_v25 = vmul.f32 0.70710677, %v3289_v43  ;;  %v3294_v53 = vpop.f32.mrb[47].mxu1  ;;  %v3293_v29 = vadd.f32 %v3292_v49, %v6879_v63  ;;  %v3470_v57 = vmul.f32 %v3438_v55, %v3342_v18 }
 0xaad   : > { %v3471_v35 = vmul.f32 %v3439_v11, %v3343_v24  ;;  %v3382_v31 = vmul.f32 0.70710677, %v3291_v16  ;;  %v3295_v60 = vadd.f32 %v3294_v53, %v6883_v48  ;;  %v3349_v50 = vmul.f32 0.5, %v3289_v43 }
 0xaae   : > { %v3472_v20 = vmul.f32 %v3440_v47, %v3344_v27  ;;  %5047 = verf.f32 %v3381_v25  ;;  %v3383_v19 = vmul.f32 0.70710677, %v3293_v29  ;;  %v3351_v36 = vmul.f32 0.5, %v3293_v29 }
 0xaaf   : > { %5049 = verf.f32 %v3382_v31  ;;  %v3499_v42 = vpack.c.bf16 %v3471_v35, %v3469_v4  ;;  %v3384_v62 = vmul.f32 0.70710677, %v3295_v60  ;;  %v3350_v33 = vmul.f32 0.5, %v3291_v16 }
 0xab0   : > { %v5040_v46 = vpop.eup %5039  ;;  %v3500_v17 = vpack.c.bf16 %v3472_v20, %v3470_v57  ;;  %5051 = verf.f32 %v3383_v19  ;;  %v3352_v41 = vmul.f32 0.5, %v3295_v60 }
 0xab1   : > { %v5042_v6 = vpop.eup %5041  ;;  %v3441_v26 = vadd.f32 1.0, %v5040_v46  ;;  %5053 = verf.f32 %v3384_v62 }
 0xab2   : > { %3681 = vmatprep.mubr.bf16.mxu0 %v3500_v17  ;;  %v5044_v52 = vpop.eup %5043  ;;  %v3442_v2 = vadd.f32 1.0, %v5042_v6 }
 0xab3   : > { %3682 = vmatmul.mubr.bf16.gmra.mrb[84].mxu0 %v3499_v42  ;;  %v5046_v1 = vpop.eup %5045  ;;  %v3443_v44 = vadd.f32 1.0, %v5044_v52  ;;  %v3473_v3 = vmul.f32 %v3441_v26, %v3345_v45 }
 0xab4   : > { %v3444_v56 = vadd.f32 1.0, %v5046_v1  ;;  %v3474_v22 = vmul.f32 %v3442_v2, %v3346_v14 }
 0xab5   : > { %v3475_v13 = vmul.f32 %v3443_v44, %v3347_v7 }
 0xab6   : > { %v3476_v28 = vmul.f32 %v3444_v56, %v3348_v58 }
 0xab7   : > { %v3501_v55 = vpack.c.bf16 %v3475_v13, %v3473_v3 }
 0xab8   : > { %v5048_v12 = vpop.eup %5047  ;;  %v3502_v23 = vpack.c.bf16 %v3476_v28, %v3474_v22 }
 0xab9   : > { %v5050_v32 = vpop.eup %5049  ;;  %v3445_v0 = vadd.f32 1.0, %v5048_v12 }
 0xaba   : > { %v5052_v24 = vpop.eup %5051  ;;  %v3446_v11 = vadd.f32 1.0, %v5050_v32  ;;  %3689 = vmatprep.mubr.bf16.mxu0 %v3502_v23 }
 0xabb   : > { %v5054_v49 = vpop.eup %5053  ;;  %v3447_v18 = vadd.f32 1.0, %v5052_v24  ;;  %3690 = vmatmul.mubr.bf16.gmra.mrb[88].mxu0 %v3501_v55  ;;  %v3477_v47 = vmul.f32 %v3445_v0, %v3349_v50 }
 0xabc   : > { %v3448_v27 = vadd.f32 1.0, %v5054_v49  ;;  %v3478_v53 = vmul.f32 %v3446_v11, %v3350_v33 }
 0xabd   : > { %v3479_v25 = vmul.f32 %v3447_v18, %v3351_v36 }
 0xabe   : > { %v3480_v4 = vmul.f32 %v3448_v27, %v3352_v41 }
 0xabf   : > { %v3503_v35 = vpack.c.bf16 %v3479_v25, %v3477_v47 }
 0xac0   : > { %v3504_v31 = vpack.c.bf16 %v3480_v4, %v3478_v53 }
 0xac2   : > { %3697 = vmatprep.mubr.bf16.mxu0 %v3504_v31 }
 0xac3   : > { %3698 = vmatmul.mubr.bf16.gmra.mrb[92].mxu0 %v3503_v35 }
 0xace   : > { %v3298_v57 = vpop.f32.mrb[48].mxu1 }
 0xacf   : > { %v3299_v20 = vadd.f32 %v3298_v57, %v6879_v63  ;;  %v3300_v19 = vpop.f32.mrb[49].mxu1 }
 0xad0   : > { %v3301_v43 = vadd.f32 %v3300_v19, %v6883_v48  ;;  %v3302_v29 = vpop.f32.mrb[50].mxu1 }
 0xad1   : > { %v3385_v42 = vmul.f32 0.70710677, %v3299_v20  ;;  %v3303_v16 = vadd.f32 %v3302_v29, %v6879_v63  ;;  %v3304_v60 = vpop.f32.mrb[51].mxu1  ;;  %v3353_v49 = vmul.f32 0.5, %v3299_v20 }
 0xad2   : > { %v3386_v46 = vmul.f32 0.70710677, %v3301_v43  ;;  %v3305_v62 = vadd.f32 %v3304_v60, %v6883_v48  ;;  %v3354_v41 = vmul.f32 0.5, %v3301_v43 }
 0xad3   : > { %5055 = verf.f32 %v3385_v42  ;;  %v3387_v17 = vmul.f32 0.70710677, %v3303_v16  ;;  %v3355_v50 = vmul.f32 0.5, %v3303_v16 }
 0xad4   : > { %5057 = verf.f32 %v3386_v46  ;;  %v3388_v6 = vmul.f32 0.70710677, %v3305_v62  ;;  %v3356_v27 = vmul.f32 0.5, %v3305_v62 }
 0xad5   : > { %5059 = verf.f32 %v3387_v17 }
 0xad6   : > { %5061 = verf.f32 %v3388_v6  ;;  %v3308_v26 = vpop.f32.mrb[52].mxu1 }
 0xad7   : > { %v3309_v52 = vadd.f32 %v3308_v26, %v6879_v63  ;;  %v3310_v2 = vpop.f32.mrb[53].mxu1 }
 0xad8   : > { %v3311_v1 = vadd.f32 %v3310_v2, %v6883_v48  ;;  %v3312_v45 = vpop.f32.mrb[54].mxu1 }
 0xad9   : > { %v3389_v7 = vmul.f32 0.70710677, %v3309_v52  ;;  %v3313_v44 = vadd.f32 %v3312_v45, %v6879_v63  ;;  %v3314_v14 = vpop.f32.mrb[55].mxu1 }
 0xada   : > { %v3390_v58 = vmul.f32 0.70710677, %v3311_v1  ;;  %v3315_v56 = vadd.f32 %v3314_v14, %v6883_v48 }
 0xadb   : > { %5063 = verf.f32 %v3389_v7  ;;  %v3391_v3 = vmul.f32 0.70710677, %v3313_v44 }
 0xadc   : > { %5065 = verf.f32 %v3390_v58  ;;  %v3392_v13 = vmul.f32 0.70710677, %v3315_v56  ;;  %v3357_v58 = vmul.f32 0.5, %v3309_v52 }
 0xadd   : > { %v5056_v22 = vpop.eup %5055  ;;  %5067 = verf.f32 %v3391_v3  ;;  %v3359_v3 = vmul.f32 0.5, %v3313_v44 }
 0xade   : > { %v5058_v28 = vpop.eup %5057  ;;  %v3449_v12 = vadd.f32 1.0, %v5056_v22  ;;  %5069 = verf.f32 %v3392_v13  ;;  %v3318_v55 = vpop.f32.mrb[56].mxu1 }
 0xadf   : > { %v5060_v32 = vpop.eup %5059  ;;  %v3450_v23 = vadd.f32 1.0, %v5058_v28  ;;  %v6918_v0 = vadd.f32 %v3318_v55, %v6879_v63  ;;  %v3320_v24 = vpop.f32.mrb[57].mxu1  ;;  %v3360_v55 = vmul.f32 0.5, %v3315_v56 }
 0xae0   : > { %v5062_v11 = vpop.eup %5061  ;;  %v3451_v36 = vadd.f32 1.0, %v5060_v32  ;;  %v6921_v18 = vadd.f32 %v3320_v24, %v6883_v48  ;;  %v3322_v33 = vpop.f32.mrb[58].mxu1  ;;  %v3481_v4 = vmul.f32 %v3449_v12, %v3353_v49  ;;  %v3358_v12 = vmul.f32 0.5, %v3311_v1 }
 0xae1   : > { %v3452_v47 = vadd.f32 1.0, %v5062_v11  ;;  %v3393_v25 = vmul.f32 0.70710677, %v6918_v0  ;;  %v3324_v53 = vpop.f32.mrb[59].mxu1  ;;  %v3323_v57 = vadd.f32 %v3322_v33, %v6879_v63  ;;  %v3482_v19 = vmul.f32 %v3450_v23, %v3354_v41 }
 0xae2   : > { %v3483_v35 = vmul.f32 %v3451_v36, %v3355_v50  ;;  %v3394_v31 = vmul.f32 0.70710677, %v6921_v18  ;;  %v3325_v29 = vadd.f32 %v3324_v53, %v6883_v48 }
 0xae3   : > { %v3484_v20 = vmul.f32 %v3452_v47, %v3356_v27  ;;  %5071 = verf.f32 %v3393_v25  ;;  %v3395_v42 = vmul.f32 0.70710677, %v3323_v57 }
 0xae4   : > { %5073 = verf.f32 %v3394_v31  ;;  %v3505_v16 = vpack.c.bf16 %v3483_v35, %v3481_v4  ;;  %v3396_v60 = vmul.f32 0.70710677, %v3325_v29  ;;  %v3361_v31 = vmul.f32 0.5, %v6918_v0 }
 0xae5   : > { %v5064_v43 = vpop.eup %5063  ;;  %v3506_v46 = vpack.c.bf16 %v3484_v20, %v3482_v19  ;;  %5075 = verf.f32 %v3395_v42  ;;  %v3363_v19 = vmul.f32 0.5, %v3323_v57  ;;  %v3364_v42 = vmul.f32 0.5, %v3325_v29 }
 0xae6   : > { %v5066_v62 = vpop.eup %5065  ;;  %v3453_v17 = vadd.f32 1.0, %v5064_v43  ;;  %v3328_v6 = vpop.f32.mrb[60].mxu1  ;;  %5077 = verf.f32 %v3396_v60 }
 0xae7   : > { %v5068_v26 = vpop.eup %5067  ;;  %v3454_v2 = vadd.f32 1.0, %v5066_v62  ;;  %v3329_v45 = vadd.f32 %v3328_v6, %v6879_v63  ;;  %v3330_v7 = vpop.f32.mrb[61].mxu1  ;;  %3705 = vmatprep.mubr.bf16.mxu0 %v3506_v46 }
 0xae8   : > { %v5070_v14 = vpop.eup %5069  ;;  %v3455_v13 = vadd.f32 1.0, %v5068_v26  ;;  %v3331_v22 = vadd.f32 %v3330_v7, %v6883_v48  ;;  %v3332_v28 = vpop.f32.mrb[62].mxu1  ;;  %3706 = vmatmul.mubr.bf16.gmra.mrb[96].mxu0 %v3505_v16  ;;  %v3485_v11 = vmul.f32 %v3453_v17, %v3357_v58 }
 0xae9   : > { %v3456_v32 = vadd.f32 1.0, %v5070_v14  ;;  %v3397_v23 = vmul.f32 0.70710677, %v3329_v45  ;;  %v3334_v24 = vpop.f32.mrb[63].mxu1  ;;  %v3333_v36 = vadd.f32 %v3332_v28, %v6879_v63  ;;  %v3486_v33 = vmul.f32 %v3454_v2, %v3358_v12 }
 0xaea   : > { %v3487_v49 = vmul.f32 %v3455_v13, %v3359_v3  ;;  %v3398_v50 = vmul.f32 0.70710677, %v3331_v22  ;;  %v3335_v52 = vadd.f32 %v3334_v24, %v6883_v48  ;;  %v3362_v48 = vmul.f32 0.5, %v6921_v18 }
 0xaeb   : > { %v3488_v41 = vmul.f32 %v3456_v32, %v3360_v55  ;;  %5079 = verf.f32 %v3397_v23  ;;  %v3399_v44 = vmul.f32 0.70710677, %v3333_v36  ;;  %v3365_v0 = vmul.f32 0.5, %v3329_v45  ;;  %v6938_v45 = vld [vmem:[%s864_s23] ss:$0 sm:$0xff] }
 0xaec   : > { %5081 = verf.f32 %v3398_v50  ;;  %v3507_v27 = vpack.c.bf16 %v3487_v49, %v3485_v11  ;;  %v3400_v25 = vmul.f32 0.70710677, %v3335_v52  ;;  %v3367_v57 = vmul.f32 0.5, %v3333_v36 }
 0xaed   : > { %v5072_v47 = vpop.eup %5071  ;;  %v3508_v1 = vpack.c.bf16 %v3488_v41, %v3486_v33  ;;  %5083 = verf.f32 %v3399_v44  ;;  %v3366_v18 = vmul.f32 0.5, %v3331_v22  ;;  %v3368_v29 = vmul.f32 0.5, %v3335_v52 }
 0xaee   : > { %v5074_v56 = vpop.eup %5073  ;;  %v3457_v53 = vadd.f32 1.0, %v5072_v47  ;;  %5085 = verf.f32 %v3400_v25 }
 0xaef   : > { %3713 = vmatprep.mubr.bf16.mxu0 %v3508_v1  ;;  %v5076_v4 = vpop.eup %5075  ;;  %v3458_v35 = vadd.f32 1.0, %v5074_v56 }
 0xaf0   : > { %3714 = vmatmul.mubr.bf16.gmra.mrb[100].mxu0 %v3507_v27  ;;  %v5078_v63 = vpop.eup %5077  ;;  %v3459_v20 = vadd.f32 1.0, %v5076_v4  ;;  %v3489_v43 = vmul.f32 %v3457_v53, %v3361_v31 }
 0xaf1   : > { %v3460_v16 = vadd.f32 1.0, %v5078_v63  ;;  %v3490_v46 = vmul.f32 %v3458_v35, %v3362_v48 }
 0xaf2   : > { %v3491_v60 = vmul.f32 %v3459_v20, %v3363_v19 }
 0xaf3   : > { %v3492_v62 = vmul.f32 %v3460_v16, %v3364_v42 }
 0xaf4   : > { %v3509_v6 = vpack.c.bf16 %v3491_v60, %v3489_v43 }
 0xaf5   : > { %v5080_v17 = vpop.eup %5079  ;;  %v3510_v2 = vpack.c.bf16 %v3492_v62, %v3490_v46 }
 0xaf6   : > { %v5082_v26 = vpop.eup %5081  ;;  %v3461_v7 = vadd.f32 1.0, %v5080_v17 }
 0xaf7   : > { %v5084_v14 = vpop.eup %5083  ;;  %v3462_v58 = vadd.f32 1.0, %v5082_v26  ;;  %3721 = vmatprep.mubr.bf16.mxu0 %v3510_v2 }
 0xaf8   : > { %v5086_v3 = vpop.eup %5085  ;;  %v3463_v13 = vadd.f32 1.0, %v5084_v14  ;;  %3722 = vmatmul.mubr.bf16.gmra.mrb[104].mxu0 %v3509_v6  ;;  %v3493_v12 = vmul.f32 %v3461_v7, %v3365_v0 }
 0xaf9   : > { %v3464_v28 = vadd.f32 1.0, %v5086_v3  ;;  %v3494_v32 = vmul.f32 %v3462_v58, %v3366_v18 }
 0xafa   : > { %v3495_v55 = vmul.f32 %v3463_v13, %v3367_v57 }
 0xafb   : > { %v3496_v23 = vmul.f32 %v3464_v28, %v3368_v29 }
 0xafc   : > { %v3511_v24 = vpack.c.bf16 %v3495_v55, %v3493_v12 }
 0xafd   : > { %v3512_v11 = vpack.c.bf16 %v3496_v23, %v3494_v32 }
 0xaff   : > { %3729 = vmatprep.mubr.bf16.mxu1 %v3512_v11 }
 0xb00   : > { %3730 = vmatmul.mubr.bf16.vlgmr.msra.gmra.mrb[64].mxu1 %v3511_v24 }
 0xb7e   : > { %v4413_v49 = vpop.f32.mrb[80].mxu0 }
 0xb7f   : > { %v4414_v50 = vpop.f32.mrb[81].mxu0 }
 0xb80   : > { %v4415_v33 = vadd.f32 %v4414_v50, %v4413_v49  ;;  %v4416_v41 = vpop.f32.mrb[82].mxu0 }
 0xb81   : > { %v4417_v22 = vpop.f32.mrb[83].mxu0 }
 0xb82   : > { %v3738_v36 = vadd.f32 %v4415_v33, %v6596_v10  ;;  %v4418_v52 = vadd.f32 %v4417_v22, %v4416_v41 }
 0xb84   : > { %v6942_v44 = vadd.f32 %v6938_v45, %v3738_v36  ;;  %v3739_v27 = vadd.f32 %v4418_v52, %v6602_v15 }
 0xb86   : > { %3777 = vst.msk [vmem:[#allocation2] sm:$0xff] %vm1156_vm1, %v6942_v44  ;;  %v6948_v47 = vadd.f32 %v6938_v45, %v3739_v27  ;;  %v4419_v25 = vpop.f32.mrb[84].mxu0 }
 0xb87   : > { %v4420_v1 = vpop.f32.mrb[85].mxu0 }
 0xb88   : > { %3778 = vst.msk [vmem:[#allocation2 + $0x8] sm:$0xff] %vm1156_vm1, %v6948_v47  ;;  %v4421_v56 = vadd.f32 %v4420_v1, %v4419_v25  ;;  %v4422_v53 = vpop.f32.mrb[86].mxu0 }
 0xb89   : > { %v4423_v10 = vpop.f32.mrb[87].mxu0 }
 0xb8a   : > { %v3740_v4 = vadd.f32 %v4421_v56, %v6599_v21  ;;  %v4424_v35 = vadd.f32 %v4423_v10, %v4422_v53 }
 0xb8c   : > { %v6954_v63 = vadd.f32 %v6938_v45, %v3740_v4  ;;  %v3741_v15 = vadd.f32 %v4424_v35, %v6609_v8 }
 0xb8e   : > { %3779 = vst.msk [vmem:[#allocation2 + $0x10] sm:$0xff] %vm1156_vm1, %v6954_v63  ;;  %v6960_v31 = vadd.f32 %v6938_v45, %v3741_v15  ;;  %v4425_v19 = vpop.f32.mrb[88].mxu0 }
 0xb8f   : > { %v4426_v20 = vpop.f32.mrb[89].mxu0 }
 0xb90   : > { %3780 = vst.msk [vmem:[#allocation2 + $0x18] sm:$0xff] %vm1156_vm1, %v6960_v31  ;;  %v4427_v48 = vadd.f32 %v4426_v20, %v4425_v19  ;;  %v4428_v42 = vpop.f32.mrb[90].mxu0 }
 0xb91   : > { %v4429_v21 = vpop.f32.mrb[91].mxu0 }
 0xb92   : > { %v3742_v16 = vadd.f32 %v4427_v48, %v6616_v51  ;;  %v4430_v43 = vadd.f32 %v4429_v21, %v4428_v42  ;;  %v3798_v42 = vpack.c.bf16 (!%p4230_p4), %v6948_v47, %v6942_v44  ;;  %v5266_v21 = vmov (!%p4230_p4), 0.0  }
 0xb93   : > { %4622 = vmatprep.subr.bf16.mxu0 (!%p4230_p4), %v5266_v21  ;;  %4638 = vmatprep.mubr.msk.bf16.mxu0 (!%p4230_p4), %vm5267_vm4, %v5266_v21 }
 0xb94   : > { %v6966_v60 = vadd.f32 %v6938_v45, %v3742_v16  ;;  %v3743_v8 = vadd.f32 %v4430_v43, %v6619_v37  ;;  %v5268_v16 = vmov (!%p4230_p4), 0  }
 0xb95   : > { %5103 = vset.pattern.permute.xlu0 (!%p4230_p4), %v5268_v16 }
 0xb96   : > { %3781 = vst.msk [vmem:[#allocation2 + $0x20] sm:$0xff] %vm1156_vm1, %v6966_v60  ;;  %v6972_v46 = vadd.f32 %v6938_v45, %v3743_v8  ;;  %v4431_v62 = vpop.f32.mrb[92].mxu0 }
 0xb97   : > { %v4432_v17 = vpop.f32.mrb[93].mxu0 }
 0xb98   : > { %3782 = vst.msk [vmem:[#allocation2 + $0x28] sm:$0xff] %vm1156_vm1, %v6972_v46  ;;  %v4433_v6 = vadd.f32 %v4432_v17, %v4431_v62  ;;  %v4434_v26 = vpop.f32.mrb[94].mxu0  ;;  %v3800_v47 = vpack.c.bf16 (!%p4230_p4), %v6972_v46, %v6966_v60 }
 0xb99   : > { %v4435_v51 = vpop.f32.mrb[95].mxu0 }
 0xb9a   : > { %v3744_v2 = vadd.f32 %v4433_v6, %v6624_v30  ;;  %v4436_v7 = vadd.f32 %v4435_v51, %v4434_v26  ;;  %v3822_v43 = vsel (!%p4230_p4), %vm1156_vm1, %v3800_v47, 0 }
 0xb9c   : > { %v6978_v14 = vadd.f32 %v6938_v45, %v3744_v2  ;;  %v3745_v37 = vadd.f32 %v4436_v7, %v6627_v40  ;;  %v3797_v2 = vld [vmem:[%s7264_s8] sm:$0x1] (!%p4230_p4) }
 0xb9e   : > { %3783 = vst.msk [vmem:[#allocation2 + $0x30] sm:$0xff] %vm1156_vm1, %v6978_v14  ;;  %v6984_v58 = vadd.f32 %v6938_v45, %v3745_v37 }
 0xba0   : > { %3784 = vst.msk [vmem:[#allocation2 + $0x38] sm:$0xff] %vm1156_vm1, %v6984_v58  ;;  %v3801_v8 = vpack.c.bf16 (!%p4230_p4), %v6984_v58, %v6978_v14 }
 0xbbb   : > { %v4437_v3 = vpop.f32.mrb[96].mxu0 }
 0xbbc   : > { %v4438_v0 = vpop.f32.mrb[97].mxu0 }
 0xbbd   : > { %v4439_v57 = vadd.f32 %v4438_v0, %v4437_v3  ;;  %v4440_v13 = vpop.f32.mrb[98].mxu0 }
 0xbbe   : > { %v4441_v30 = vpop.f32.mrb[99].mxu0 }
 0xbbf   : > { %v3746_v18 = vadd.f32 %v4439_v57, %v6636_v5  ;;  %v4442_v29 = vadd.f32 %v4441_v30, %v4440_v13 }
 0xbc1   : > { %v6990_v28 = vadd.f32 %v6938_v45, %v3746_v18  ;;  %v3747_v40 = vadd.f32 %v4442_v29, %v6642_v59 }
 0xbc3   : > { %3785 = vst.msk [vmem:[#allocation2 + $0x40] sm:$0xff] %vm1156_vm1, %v6990_v28  ;;  %v6996_v12 = vadd.f32 %v6938_v45, %v3747_v40  ;;  %v4443_v55 = vpop.f32.mrb[100].mxu0 }
 0xbc4   : > { %v4444_v32 = vpop.f32.mrb[101].mxu0 }
 0xbc5   : > { %3786 = vst.msk [vmem:[#allocation2 + $0x48] sm:$0xff] %vm1156_vm1, %v6996_v12  ;;  %v4445_v23 = vadd.f32 %v4444_v32, %v4443_v55  ;;  %v4446_v24 = vpop.f32.mrb[102].mxu0 }
 0xbc6   : > { %v4447_v5 = vpop.f32.mrb[103].mxu0 }
 0xbc7   : > { %v3748_v11 = vadd.f32 %v4445_v23, %v6639_v38  ;;  %v4448_v49 = vadd.f32 %v4447_v5, %v4446_v24 }
 0xbc9   : > { %v3771_v50 = vadd.f32 %v6938_v45, %v3748_v11  ;;  %v3749_v59 = vadd.f32 %v4448_v49, %v6647_v34 }
 0xbcb   : > { %3787 = vst.msk [vmem:[#allocation2 + $0x50] sm:$0xff] %vm1156_vm1, %v3771_v50  ;;  %v3772_v33 = vadd.f32 %v6938_v45, %v3749_v59  ;;  %v4449_v41 = vpop.f32.mrb[104].mxu0 }
 0xbcc   : > { %v4450_v22 = vpop.f32.mrb[105].mxu0 }
 0xbcd   : > { %3788 = vst.msk [vmem:[#allocation2 + $0x58] sm:$0xff] %vm1156_vm1, %v3772_v33  ;;  %v4451_v36 = vadd.f32 %v4450_v22, %v4449_v41  ;;  %v4452_v52 = vpop.f32.mrb[106].mxu0  ;;  %v3803_v17 = vpack.c.bf16 (!%p4230_p4), %v3772_v33, %v3771_v50 }
 0xbce   : > { %v4453_v27 = vpop.f32.mrb[107].mxu0 }
 0xbcf   : > { %v3750_v25 = vadd.f32 %v4451_v36, %v6654_v54  ;;  %v4454_v1 = vadd.f32 %v4453_v27, %v4452_v52  ;;  %v3831_v60 = vsel (!%p4230_p4), %vm1156_vm1, %v3803_v17, 0 }
 0xbd1   : > { %v3773_v38 = vadd.f32 %v6938_v45, %v3750_v25  ;;  %v3751_v56 = vadd.f32 %v4454_v1, %v6662_v9 }
 0xbd3   : > { %3789 = vst.msk [vmem:[#allocation2 + $0x60] sm:$0xff] %vm1156_vm1, %v3773_v38  ;;  %v3774_v34 = vadd.f32 %v6938_v45, %v3751_v56  ;;  %v4455_v53 = vpop.f32.mrb[64].mxu1 }
 0xbd4   : > { %v4456_v10 = vpop.f32.mrb[65].mxu1 }
 0xbd5   : > { %3790 = vst.msk [vmem:[#allocation2 + $0x68] sm:$0xff] %vm1156_vm1, %v3774_v34  ;;  %v4457_v4 = vadd.f32 %v4456_v10, %v4455_v53  ;;  %v4458_v35 = vpop.f32.mrb[66].mxu1  ;;  %v3804_v46 = vpack.c.bf16 (!%p4230_p4), %v3774_v34, %v3773_v38 }
 0xbd6   : > { %v4459_v15 = vpop.f32.mrb[67].mxu1 }
 0xbd7   : > { %v3752_v19 = vadd.f32 %v4457_v4, %v6659_v39  ;;  %v4460_v20 = vadd.f32 %v4459_v15, %v4458_v35  ;;  %3796 = sbr.rel (%p4230_p4) target bundleno = 3310 (0xcee), region = 108  ;;  %v3816_v39 = vsel (!%p4230_p4), %vm1156_vm1, %v3798_v42, 0  ;;  %v3834_v6 = vsel (!%p4230_p4), %vm1156_vm1, %v3804_v46, 0 }
 0xbd8   : > { %4623 = vmatpush3.bf16.xpose.msra.mxu0 (!%p4230_p4), %v3816_v39 }
 0xbd9   : > { %v3775_v54 = vadd.f32 %v6938_v45, %v3752_v19  ;;  %v3753_v48 = vadd.f32 %v4460_v20, %v6667_v61  ;;  %v3806_v61 = vld [vmem:[%s7263_s19] sm:$0x3] (!%p4230_p4)  ;;  %4624 = vmatprep.subr.bf16.mxu0 (!%p4230_p4), %v5266_v21 }
 0xbda   : > { %3809 = vperm.xlu0 (!%p4230_p4), %5103, %v3806_v61  }
 0xbdb   : > { %3791 = vst.msk [vmem:[#allocation2 + $0x70] sm:$0xff] %vm1156_vm1, %v3775_v54  ;;  %v3776_v9 = vadd.f32 %v6938_v45, %v3753_v48  ;;  %v3799_v45 = vpack.c.bf16 (!%p4230_p4), %v6960_v31, %v6954_v63  ;;  %v3825_v63 = vsel (!%p4230_p4), %vm1156_vm1, %v3801_v8, 0  ;;  %v3802_v31 = vpack.c.bf16 (!%p4230_p4), %v6996_v12, %v6990_v28 }
 0xbdd   : > { %3792 = vst.msk [vmem:[#allocation2 + $0x78] sm:$0xff] %vm1156_vm1, %v3776_v9  ;;  %v3819_v44 = vsel (!%p4230_p4), %vm1156_vm1, %v3799_v45, 0  ;;  %v3828_v62 = vsel (!%p4230_p4), %vm1156_vm1, %v3802_v31, 0  ;;  %v3805_v26 = vpack.c.bf16 (!%p4230_p4), %v3776_v9, %v3775_v54 }
 0xbdf   : > { %v3837_v51 = vsel %vm1156_vm1, %v3805_v26, 0 }
 0xbe0   : > { %4625 = vmatpush3.bf16.xpose.msra.mxu0 %v3819_v44 }
 0xbe1   : > { %4626 = vmatprep.subr.bf16.mxu0 %v5266_v21 }
 0xbe8   : > { %4627 = vmatpush3.bf16.xpose.msra.mxu0 %v3822_v43 }
 0xbe9   : > { %4628 = vmatprep.subr.bf16.mxu0 %v5266_v21 }
 0xbf0   : > { %4629 = vmatpush3.bf16.xpose.msra.mxu0 %v3825_v63 }
 0xbf1   : > { %4630 = vmatprep.subr.bf16.mxu0 %v5266_v21 }
 0xbf8   : > { %4631 = vmatpush3.bf16.xpose.msra.mxu0 %v3828_v62 }
 0xbf9   : > { %4632 = vmatprep.subr.bf16.mxu0 %v5266_v21 }
 0xc00   : > { %4633 = vmatpush3.bf16.xpose.msra.mxu0 %v3831_v60 }
 0xc01   : > { %4634 = vmatprep.subr.bf16.mxu0 %v5266_v21 }
 0xc08   : > { %4635 = vmatpush3.bf16.xpose.msra.mxu0 %v3834_v6 }
 0xc09   : > { %4636 = vmatprep.subr.bf16.mxu0 %v5266_v21 }
 0xc10   : > { %4637 = vmatpush3.bf16.xpose.msra.mxu0 %v3837_v51 }
 0xc17   : > { %4639 = vmatmul.mubr.msk.bf16.vlgmr.msra.gmra.mrb[0].mxu0 %vm1156_vm1, %v3797_v2 }
 0xc59   : > { %v3810_v7 = vpop.permute.xlu0 %3809 }
 0xcea   : > { %v3873_v14 = vpop.f32.mrb[0].mxu0 }
 0xceb   : > { %v3874_v37 = vadd.f32 %v3873_v14, %v3810_v7  ;;  %v4640_v58 = vpop.f32.mrb[1].mxu0 }
 0xcec   : > { %v3876_v3 = vpop.f32.mrb[2].mxu0 }
 0xced   : > { %3879 = vst [vmem:[%s810_s18] sm:$0x3] %v3874_v37  ;;  %v4641_v0 = vpop.f32.mrb[3].mxu0 }
 0xcee PF: > { %s7265_s10 = sld [smem:[#allocation17_spill]]  ;;  %s7266_s29 = sld [smem:[#allocation13_spill]] }
 0xcef   : > { %s7267_s0 = sld [smem:[#allocation25_spill]]  ;;  %s7268_s4 = sld [smem:[#allocation48_spill]] }
 0xcf0   : > { %s3894_s7 = sshll.u32 %s810_s18, 4  ;;  %s5269_s24 = smov [#allocation9]   ;;  %s3895_s7 = int_to_ptr.vmem [resolvable:$true] %s3894_s7 }
 0xcf1   : > { %s5134_s26 = scalar_lea.vmem %s3895_s7, 32  ;;  %s5138_s16 = sshll.u32 %s5269_s24, 4  ;;  %s5139_s16 = int_to_ptr.vmem [resolvable:$false] %s5138_s16 }
 0xcf2   : > { %p5135_p0 = scmp.ne.s32.totalorder %s3895_s7, %s5134_s26  ;;  %s5140_s20 = scalar_lea.vmem %s5139_s16, 64 }
 0xcf3   : > { %p5141_p3 = scmp.lt.s32.totalorder %s3895_s7, %s5139_s16  ;;  %p5142_p10 = scmp.lt.s32.totalorder %s5140_s20, %s5134_s26 }
 0xcf4   : > { %s4233_s30 = sshll.u32 %s7265_s10, 5  ;;  %s7269_s9 = sand.u32 1, %s7266_s29  }
 0xcf5   : > { %s7050_s28 = scalar_lea.hbm %s7268_s4, %s4233_s30  ;;  %s3881_s3 = scalar_lea.sflag [#allocation8], %s7269_s9 }
 0xcf6   : > { %p7270_p1 = scmp.ne.s32.totalorder %s7267_s0, 0  ;;  %p5143_p11 = por %p5142_p10, %p5141_p3 }
 0xcf8   : > { %p5136_p5 = pnand %p5135_p0, %p7270_p1 }
 0xcfa   : > { %p5137_p7 = pneg %p5136_p5 }
 0xcfc   : > { %p5144_p6 = pnand %p5143_p11, %p5137_p7 }
 0xcfe   : > { %5147 = shalt.err (!%p5144_p6)
}
 0xcff   : > { %s5148_s18 = scalar_lea.hbm %s7050_s28, 32  ;;  %s5152_s14 = scalar_lea.hbm %s7268_s4, 64 }
 0xd00   : > { %p5149_p9 = scmp.ne.s32.totalorder %s7050_s28, %s5148_s18  ;;  %p5153_p2 = scmp.lt.u32.totalorder %s7050_s28, %s7268_s4 }
 0xd01   : > { %p5154_p8 = scmp.lt.u32.totalorder %s5152_s14, %s5148_s18  ;;  %p5156_p0 = scmp.lt.u32.totalorder %s5148_s18, %s7050_s28 }
 0xd02   : > { %p5150_p13 = pnand %p5149_p9, %p7270_p1 }
 0xd03   : > { %p5155_p4 = por %p5154_p8, %p5153_p2 }
 0xd04   : > { %p5151_p12 = pneg %p5150_p13 }
 0xd05   : > { %p5157_p5 = por %p5156_p0, %p5155_p4 }
 0xd07   : > { %p5158_p7 = pnand %p5157_p5, %p5151_p12 }
 0xd09   : > { %5161 = shalt.err (!%p5158_p7)
}
 0xd0a   : > { %4676 = dma.vmem_to_hbm [thread:$0]  (%p7270_p1), %s3895_s7, 32, %s7050_s28, %s3881_s3  }
 0xd0b PF: > { %s7271_s19 = sld [smem:[#allocation20_spill]]  ;;  %s7272_s2 = sld [smem:[#allocation12_spill]] }
 0xd0c   : > { %s7273_s25 = sld [smem:[#allocation26_spill]] }
 0xd11   : > { %p4687_p3 = scmp.ge.s32.totalorder %s7271_s19, 2  ;;  %s3906_s8 = sand.u32 1, %s7272_s2  }
 0xd12   : > { %p7274_p10 = scmp.ne.s32.totalorder %s7273_s25, 0  ;;  %s3907_s10 = scalar_lea.sflag [#allocation8], %s3906_s8 }
 0xd14   : > { %p4683_p11 = pnand %p4687_p3, %p7274_p10 }
 0xd16   : > { %5211 = dma.done.wait (!%p4683_p11), %s3907_s10, 32  }
 0xd17   : > { %5213 = vsyncadd (!%p4683_p11), %s3907_s10, 4294967264  ;;  %s35_s3 = sadd.s32 1, %s7271_s19   ;;  %s7275_s0 = sld [smem:[#allocation13_spill]] }
 0xd18   : > { %p32_p6 = scmp.ge.s32.totalorder %s35_s3, 6   ;;  %s7276_s30 = sld [smem:[#allocation14_spill]] }
 0xd19   : > { %s7277_s20 = sld [smem:[#allocation24_spill]]  ;;  %s7278_s21 = sld [smem:[#allocation15_spill]] }
 0xd1a   : > { %s7279_s1 = sld [smem:[#allocation16_spill]]  ;;  %s7280_s22 = sld [smem:[#allocation23_spill]] }
 0xd1b   : > { %s7281_s2 = sld [smem:[#allocation18_spill]]  ;;  %s7282_s23 = sld [smem:[#allocation19_spill]] }
 0xd1c   : > { %s7283_s24 = sld [smem:[#allocation21_spill]]  ;;  %s7284_s25 = sld [smem:[#allocation22_spill]] }
 0xd1d   :  { %34 = sbr.rel (!%p32_p6) target bundleno = 26 (0x1a), region = 192 }
 0xd24   :  { %3912 = vsyncpa [#allocation7], 1 }
 0xd25   :  { %3914 = vsyncpa [#allocation7 + $0x1], 1 }
 0xd26   :  { %3915 = vsyncpa [#allocation8], 1 }
 0xd27   :  { %3917 = vsyncpa [#allocation8 + $0x1], 1 }

</bundles_post_ra>
